<compile_context>
chip_gen: v6e
topology: v6e:2x2x1
jax: 0.10.0
libtpu: 0.0.40
codegen_flags: <defaults>
</compile_context>

<pallas_src>
import functools

import jax
import jax.numpy as jnp
from jax.experimental import pallas as pl
from jax.experimental.pallas import tpu as pltpu

# ----------------------------- model config ---------------------------------
NUM_FEATURES = 32      # stub backbone feature width (timm num_features stand-in)
HIDDEN1 = 2048         # from the module definition
HIDDEN2 = 512          # from the module definition
NUM_CLASSES = 2        # Config.NUM_CLASSES (real / fake)
OUT_PAD = 128          # lane-dense padded logits width (>= NUM_CLASSES)
K_PAD = 128            # zero-padded contraction dim for the pooled->h1 matmul

# resident weight/bias bytes (single-buffered): wp1, bp1, w2, b2, w3, b3
_W_BYTES = (K_PAD * HIDDEN1 * 2 + HIDDEN1 * 4 +
            HIDDEN1 * HIDDEN2 * 2 + HIDDEN2 * 4 +
            HIDDEN2 * OUT_PAD * 2 + OUT_PAD * 4)


def _round_up(n, m):
    return ((n + m - 1) // m) * m


# ------------------------------- kernel -------------------------------------
def deepfake_kernel(x_ref, wp1_ref, bp1_ref, w2_ref, b2_ref, w3_ref, b3_ref,
                    out_ref, pooled_acc, *, channels):
    # x_ref: (C, TB, HW_TILE) bf16.  Grid = (batch tiles, HW tiles); the HW
    # axis is the innermost reduction ("arbitrary") axis.
    j = pl.program_id(1)

    @pl.when(j == 0)
    def _():
        pooled_acc[...] = jnp.zeros_like(pooled_acc)   # (TB, K_PAD) f32

    # Partial GAP sums over this HW tile, accumulated in f32 (x is bf16).
    # channels is tiny (3-4): a short static loop of clean 2-D lane reductions.
    for c in range(channels):
        col = jnp.sum(x_ref[c].astype(jnp.float32), axis=-1, keepdims=True)
        pooled_acc[:, c:c + 1] = pooled_acc[:, c:c + 1] + col

    @pl.when(j == pl.num_programs(1) - 1)
    def _():
        # Fused GAP(mean) -> stub projection -> Linear(F, 2048): a single bf16
        # MXU matmul.  The 1/HW scale and projection are folded into wp1 at
        # pack time; contraction dim is zero-padded to K_PAD lanes (lanes
        # >= channels of pooled_acc stay zero from the j==0 init).
        pooled = pooled_acc[...].astype(jnp.bfloat16)               # (TB, 128)
        h1 = jnp.dot(pooled, wp1_ref[...],
                     preferred_element_type=jnp.float32) + bp1_ref[...]
        h1 = jnp.maximum(h1, 0.0)
        # nn.Dropout layers: identity in eval/inference mode.

        # Linear(2048, 512) + ReLU — bf16 MXU matmul, f32 accumulate/bias/ReLU.
        h2 = jnp.dot(h1.astype(jnp.bfloat16), w2_ref[...],
                     preferred_element_type=jnp.float32) + b2_ref[...]
        h2 = jnp.maximum(h2, 0.0)

        # Linear(512, NUM_CLASSES) padded to 128 output lanes (zero columns).
        logits = jnp.dot(h2.astype(jnp.bfloat16), w3_ref[...],
                         preferred_element_type=jnp.float32) + b3_ref[...]
        out_ref[...] = logits.astype(out_ref.dtype)                 # (TB, 128)


# --------------------------- parameter packing --------------------------------
def pack_params(p, hw):
    """Fold / pad / cast parameters into the kernel-friendly layout.

    hw = H*W of the input images (the 1/HW mean scale is folded into wp1 in
    f32 before the bf16 cast, so the GAP mean stays exact in the fold)."""
    c = p["wp"].shape[0]
    # Fold stub projection into the first head Linear (exact: dropout is
    # identity and there is no nonlinearity between them), plus the GAP scale.
    wp1 = (p["wp"] @ p["w1"]) * (1.0 / hw)        # [C, H1] f32
    bp1 = p["bp"] @ p["w1"] + p["b1"]             # [1, H1] f32
    wp1_pad = jnp.zeros((K_PAD, HIDDEN1), jnp.float32).at[:c, :].set(wp1)
    # Pad the final layer to 128 lanes so the output store is lane-dense.
    w3_pad = jnp.zeros((HIDDEN2, OUT_PAD), jnp.float32)
    w3_pad = w3_pad.at[:, :NUM_CLASSES].set(p["w3"])
    b3_pad = jnp.zeros((1, OUT_PAD), jnp.float32)
    b3_pad = b3_pad.at[:, :NUM_CLASSES].set(p["b3"])
    return {
        "wp1": wp1_pad.astype(jnp.bfloat16),      # [128, 2048] MXU weight
        "bp1": bp1,                               # f32
        "w2": p["w2"].astype(jnp.bfloat16),       # [2048, 512] MXU weight
        "b2": p["b2"],                            # f32
        "w3": w3_pad.astype(jnp.bfloat16),        # [512, 128] MXU weight
        "b3": b3_pad,                             # f32
    }


# ------------------------------- wrapper -------------------------------------
def deepfake_forward(x, packed):
    """x: [B, C, H, W] float32 (NCHW). Returns logits [B, NUM_CLASSES] f32."""
    B, C, H, W = x.shape
    HW = H * W
    assert C <= K_PAD, "channel count must fit the padded contraction dim"

    # ---- VMEM budget (v7x: 64 MiB/TC, v5e/v6e: 128 MiB) ---------------------
    try:
        vmem_cap = int(pltpu.get_tpu_info().vmem_capacity_bytes)
    except Exception:
        vmem_cap = 64 << 20                       # conservative (v7x) fallback
    budget = int(vmem_cap * 0.7)

    # ---- batch tile ---------------------------------------------------------
    B_pad = _round_up(B, 8)
    TB = min(B_pad, 256)
    # Megacore: keep >= 2 batch tiles whenever the batch allows it so the
    # "parallel" batch axis actually shards across both v7x TensorCores.
    if B_pad // TB < 2 and TB > 8:
        TB = max(8, _round_up(B_pad // 2, 8))
    B_pad = _round_up(B_pad, TB)

    # ---- HW streaming tile (lane-aligned, multiple of 128) ------------------
    HW_pad = _round_up(HW, 128)
    HW_TILE = min(HW_pad, 16 * 128)               # up to 2048 lanes per step
    X_BUFFERS = 3                                 # deep-buffer the HBM-bound x

    def footprint(tb, hwt, nbuf):
        x_tiles = C * tb * hwt * 2 * nbuf         # bf16 x, nbuf-deep
        out_tiles = tb * OUT_PAD * 2 * 2          # bf16 out, double-buffered
        scratch = tb * K_PAD * 4                  # pooled accumulator (f32)
        return x_tiles + out_tiles + scratch + _W_BYTES

    # Shrink HW tile first (keeps MXU M tall), then the batch tile.
    while HW_TILE > 128 and footprint(TB, HW_TILE, X_BUFFERS) > budget:
        HW_TILE = _round_up(HW_TILE // 2, 128)
    while TB > 8 and footprint(TB, HW_TILE, X_BUFFERS) > budget:
        TB = max(8, _round_up(TB // 2, 8))
    B_pad = _round_up(B_pad, TB)
    HW_pad = _round_up(HW_pad, HW_TILE)

    n_b = B_pad // TB
    n_hw = HW_pad // HW_TILE
    x_buffers = X_BUFFERS if n_b * n_hw >= 3 else 2

    # ---- input layout: [C, B_pad, HW_pad] bf16 (channel slab = clean tile) --
    x3 = jnp.transpose(x.reshape(B, C, HW), (1, 0, 2)).astype(jnp.bfloat16)
    if B_pad != B or HW_pad != HW:
        x3 = jnp.pad(x3, ((0, 0), (0, B_pad - B), (0, HW_pad - HW)))

    vmem_limit = min(vmem_cap,
                     max(16 << 20,
                         int(footprint(TB, HW_TILE, x_buffers) * 1.3) + (2 << 20)))

    const = lambda i, j: (0, 0)                   # weights resident across tiles
    out = pl.pallas_call(
        functools.partial(deepfake_kernel, channels=C),
        out_shape=jax.ShapeDtypeStruct((B_pad, OUT_PAD), jnp.bfloat16),
        grid=(n_b, n_hw),
        in_specs=[
            pl.BlockSpec((C, TB, HW_TILE), lambda i, j: (0, i, j),
                         pipeline_mode=pl.Buffered(x_buffers)),       # x stream
            pl.BlockSpec((K_PAD, HIDDEN1), const,
                         pipeline_mode=pl.Buffered(1)),               # wp1 (bf16)
            pl.BlockSpec((1, HIDDEN1), const,
                         pipeline_mode=pl.Buffered(1)),               # bp1
            pl.BlockSpec((HIDDEN1, HIDDEN2), const,
                         pipeline_mode=pl.Buffered(1)),               # w2 (bf16)
            pl.BlockSpec((1, HIDDEN2), const,
                         pipeline_mode=pl.Buffered(1)),               # b2
            pl.BlockSpec((HIDDEN2, OUT_PAD), const,
                         pipeline_mode=pl.Buffered(1)),               # w3 (bf16)
            pl.BlockSpec((1, OUT_PAD), const,
                         pipeline_mode=pl.Buffered(1)),               # b3
        ],
        out_specs=pl.BlockSpec((TB, OUT_PAD), lambda i, j: (i, 0)),
        scratch_shapes=[pltpu.VMEM((TB, K_PAD), jnp.float32)],        # pooled acc
        compiler_params=pltpu.CompilerParams(
            dimension_semantics=("parallel", "arbitrary"),
            vmem_limit_bytes=vmem_limit,
        ),
    )(x3, packed["wp1"], packed["bp1"], packed["w2"], packed["b2"],
      packed["w3"], packed["b3"])

    return out[:B, :NUM_CLASSES].astype(jnp.float32)


# --------------------------- parameter init ----------------------------------
def init_params(key, in_channels):
    ks = jax.random.split(key, 8)

    def lin(k, fan_in, fan_out):
        scale = 1.0 / jnp.sqrt(jnp.float32(fan_in))
        return jax.random.uniform(k, (fan_in, fan_out), jnp.float32,
                                  -scale, scale)

    return {
        # stub backbone projection: C -> NUM_FEATURES
        "wp": lin(ks[0], in_channels, NUM_FEATURES),
        "bp": jnp.zeros((1, NUM_FEATURES), jnp.float32),
        # head
        "w1": lin(ks[1], NUM_FEATURES, HIDDEN1),
        "b1": 0.01 * jax.random.normal(ks[2], (1, HIDDEN1), jnp.float32),
        "w2": lin(ks[3], HIDDEN1, HIDDEN2),
        "b2": 0.01 * jax.random.normal(ks[4], (1, HIDDEN2), jnp.float32),
        "w3": lin(ks[5], HIDDEN2, NUM_CLASSES),
        "b3": 0.01 * jax.random.normal(ks[6], (1, NUM_CLASSES), jnp.float32),
    }


# ------------------------- pure-JAX reference --------------------------------
def reference_forward(x, p):
    B, C, H, W = x.shape
    pooled = jnp.mean(x.reshape(B, C, H * W), axis=-1)
    feats = pooled @ p["wp"] + p["bp"]
    h = jnp.maximum(feats @ p["w1"] + p["b1"], 0.0)
    h = jnp.maximum(h @ p["w2"] + p["b2"], 0.0)
    return h @ p["w3"] + p["b3"]


# --------------------------------- main --------------------------------------
if __name__ == "__main__":
    key = jax.random.PRNGKey(0)
    kx, kp = jax.random.split(key)

    B, C, H, W = 2, 4, 16, 16
    x = jax.random.normal(kx, (B, C, H, W), jnp.float32)
    params = init_params(kp, C)
    packed = pack_params(params, H * W)

    out = deepfake_forward(x, packed)
    out = jax.block_until_ready(out)

    ref = reference_forward(x, params)
    assert out.shape == (B, NUM_CLASSES), out.shape
    # bf16 input/matmuls with f32 accumulation: loose but meaningful tolerance.
    err = jnp.max(jnp.abs(out - ref))
    assert jnp.allclose(out, ref, atol=2e-2, rtol=2e-2), (
        f"mismatch: max abs err {err}")

    print("KERNEL_OK")
</pallas_src>

<mosaic_0001>
module attributes {stable_mosaic.version = 11 : i64} {
  func.func @deepfake_kernel(%arg0: i32, %arg1: i32, %arg2: memref<4x8x256xbf16, #tpu.memory_space<vmem>>, %arg3: memref<128x2048xbf16, #tpu.memory_space<vmem>>, %arg4: memref<1x2048xf32, #tpu.memory_space<vmem>>, %arg5: memref<2048x512xbf16, #tpu.memory_space<vmem>>, %arg6: memref<1x512xf32, #tpu.memory_space<vmem>>, %arg7: memref<512x128xbf16, #tpu.memory_space<vmem>>, %arg8: memref<1x128xf32, #tpu.memory_space<vmem>>, %arg9: memref<8x128xbf16, #tpu.memory_space<vmem>>, %arg10: memref<8x128xf32, #tpu.memory_space<vmem>>) attributes {dimension_semantics = [#tpu.dimension_semantics<parallel>, #tpu.dimension_semantics<arbitrary>], iteration_bounds = array<i64: 1, 1>, scalar_prefetch = 0 : i64, scratch_operands = 1 : i64, tpu.core_type = #tpu.core_type<tc>, window_params = [{pipeline_mode = #tpu.pipeline_mode<double_buffered>, transform_indices = @transform_0, window_bounds = array<i64: 4, 8, 256>}, {pipeline_mode = #tpu.pipeline_mode<synchronous>, transform_indices = @transform_1, window_bounds = array<i64: 128, 2048>}, {pipeline_mode = #tpu.pipeline_mode<synchronous>, transform_indices = @transform_2, window_bounds = array<i64: 1, 2048>}, {pipeline_mode = #tpu.pipeline_mode<synchronous>, transform_indices = @transform_3, window_bounds = array<i64: 2048, 512>}, {pipeline_mode = #tpu.pipeline_mode<synchronous>, transform_indices = @transform_4, window_bounds = array<i64: 1, 512>}, {pipeline_mode = #tpu.pipeline_mode<synchronous>, transform_indices = @transform_5, window_bounds = array<i64: 512, 128>}, {pipeline_mode = #tpu.pipeline_mode<synchronous>, transform_indices = @transform_6, window_bounds = array<i64: 1, 128>}, {transform_indices = @transform_7, window_bounds = array<i64: 8, 128>}]} {
    %c0_i32 = arith.constant 0 : i32
    %0 = arith.cmpi eq, %arg1, %c0_i32 : i32
    %1 = arith.extui %0 : i1 to i32
    %c0_i32_0 = arith.constant 0 : i32
    %2 = arith.cmpi ne, %1, %c0_i32_0 : i32
    scf.if %2 {
      %cst_30 = arith.constant 0.000000e+00 : f32
      %38 = vector.broadcast %cst_30 : f32 to vector<8x128xf32>
      %c0_31 = arith.constant 0 : index
      %c0_32 = arith.constant 0 : index
      %39 = vector.load %arg10[%c0_31, %c0_32] : memref<8x128xf32, #tpu.memory_space<vmem>>, vector<8x128xf32>
      tpu.vector_store %arg10[%c0_31, %c0_32], %38 {strides = array<i32>} : memref<8x128xf32, #tpu.memory_space<vmem>>, vector<8x128xf32>,
    } else {
    }
    %c0 = arith.constant 0 : index
    %c0_1 = arith.constant 0 : index
    %c0_2 = arith.constant 0 : index
    %3 = vector.load %arg2[%c0, %c0_1, %c0_2] : memref<4x8x256xbf16, #tpu.memory_space<vmem>>, vector<1x8x256xbf16>
    %4 = vector.shape_cast %3 : vector<1x8x256xbf16> to vector<8x256xbf16>
    %5 = arith.extf %4 : vector<8x256xbf16> to vector<8x256xf32>
    %cst = arith.constant dense<0.000000e+00> : vector<8xf32>
    %6 = vector.multi_reduction <add>, %5, %cst [1] : vector<8x256xf32> to vector<8xf32>
    %7 = vector.shape_cast %6 : vector<8xf32> to vector<8x1xf32>
    %c0_3 = arith.constant 0 : index
    %c0_4 = arith.constant 0 : index
    %8 = vector.load %arg10[%c0_3, %c0_4] : memref<8x128xf32, #tpu.memory_space<vmem>>, vector<8x1xf32>
    %9 = arith.addf %8, %7 : vector<8x1xf32>
    %c0_5 = arith.constant 0 : index
    %c0_6 = arith.constant 0 : index
    %10 = vector.load %arg10[%c0_5, %c0_6] : memref<8x128xf32, #tpu.memory_space<vmem>>, vector<8x1xf32>
    tpu.vector_store %arg10[%c0_5, %c0_6], %9 {strides = array<i32>} : memref<8x128xf32, #tpu.memory_space<vmem>>, vector<8x1xf32>,
    %c1 = arith.constant 1 : index
    %c0_7 = arith.constant 0 : index
    %c0_8 = arith.constant 0 : index
    %11 = vector.load %arg2[%c1, %c0_7, %c0_8] : memref<4x8x256xbf16, #tpu.memory_space<vmem>>, vector<1x8x256xbf16>
    %12 = vector.shape_cast %11 : vector<1x8x256xbf16> to vector<8x256xbf16>
    %13 = arith.extf %12 : vector<8x256xbf16> to vector<8x256xf32>
    %cst_9 = arith.constant dense<0.000000e+00> : vector<8xf32>
    %14 = vector.multi_reduction <add>, %13, %cst_9 [1] : vector<8x256xf32> to vector<8xf32>
    %15 = vector.shape_cast %14 : vector<8xf32> to vector<8x1xf32>
    %c0_10 = arith.constant 0 : index
    %c1_11 = arith.constant 1 : index
    %16 = vector.load %arg10[%c0_10, %c1_11] : memref<8x128xf32, #tpu.memory_space<vmem>>, vector<8x1xf32>
    %17 = arith.addf %16, %15 : vector<8x1xf32>
    %c0_12 = arith.constant 0 : index
    %c1_13 = arith.constant 1 : index
    %18 = vector.load %arg10[%c0_12, %c1_13] : memref<8x128xf32, #tpu.memory_space<vmem>>, vector<8x1xf32>
    tpu.vector_store %arg10[%c0_12, %c1_13], %17 {strides = array<i32>} : memref<8x128xf32, #tpu.memory_space<vmem>>, vector<8x1xf32>,
    %c2 = arith.constant 2 : index
    %c0_14 = arith.constant 0 : index
    %c0_15 = arith.constant 0 : index
    %19 = vector.load %arg2[%c2, %c0_14, %c0_15] : memref<4x8x256xbf16, #tpu.memory_space<vmem>>, vector<1x8x256xbf16>
    %20 = vector.shape_cast %19 : vector<1x8x256xbf16> to vector<8x256xbf16>
    %21 = arith.extf %20 : vector<8x256xbf16> to vector<8x256xf32>
    %cst_16 = arith.constant dense<0.000000e+00> : vector<8xf32>
    %22 = vector.multi_reduction <add>, %21, %cst_16 [1] : vector<8x256xf32> to vector<8xf32>
    %23 = vector.shape_cast %22 : vector<8xf32> to vector<8x1xf32>
    %c0_17 = arith.constant 0 : index
    %c2_18 = arith.constant 2 : index
    %24 = vector.load %arg10[%c0_17, %c2_18] : memref<8x128xf32, #tpu.memory_space<vmem>>, vector<8x1xf32>
    %25 = arith.addf %24, %23 : vector<8x1xf32>
    %c0_19 = arith.constant 0 : index
    %c2_20 = arith.constant 2 : index
    %26 = vector.load %arg10[%c0_19, %c2_20] : memref<8x128xf32, #tpu.memory_space<vmem>>, vector<8x1xf32>
    tpu.vector_store %arg10[%c0_19, %c2_20], %25 {strides = array<i32>} : memref<8x128xf32, #tpu.memory_space<vmem>>, vector<8x1xf32>,
    %c3 = arith.constant 3 : index
    %c0_21 = arith.constant 0 : index
    %c0_22 = arith.constant 0 : index
    %27 = vector.load %arg2[%c3, %c0_21, %c0_22] : memref<4x8x256xbf16, #tpu.memory_space<vmem>>, vector<1x8x256xbf16>
    %28 = vector.shape_cast %27 : vector<1x8x256xbf16> to vector<8x256xbf16>
    %29 = arith.extf %28 : vector<8x256xbf16> to vector<8x256xf32>
    %cst_23 = arith.constant dense<0.000000e+00> : vector<8xf32>
    %30 = vector.multi_reduction <add>, %29, %cst_23 [1] : vector<8x256xf32> to vector<8xf32>
    %31 = vector.shape_cast %30 : vector<8xf32> to vector<8x1xf32>
    %c0_24 = arith.constant 0 : index
    %c3_25 = arith.constant 3 : index
    %32 = vector.load %arg10[%c0_24, %c3_25] : memref<8x128xf32, #tpu.memory_space<vmem>>, vector<8x1xf32>
    %33 = arith.addf %32, %31 : vector<8x1xf32>
    %c0_26 = arith.constant 0 : index
    %c3_27 = arith.constant 3 : index
    %34 = vector.load %arg10[%c0_26, %c3_27] : memref<8x128xf32, #tpu.memory_space<vmem>>, vector<8x1xf32>
    tpu.vector_store %arg10[%c0_26, %c3_27], %33 {strides = array<i32>} : memref<8x128xf32, #tpu.memory_space<vmem>>, vector<8x1xf32>,
    %c0_i32_28 = arith.constant 0 : i32
    %35 = arith.cmpi eq, %arg1, %c0_i32_28 : i32
    %36 = arith.extui %35 : i1 to i32
    %c0_i32_29 = arith.constant 0 : i32
    %37 = arith.cmpi ne, %36, %c0_i32_29 : i32
    scf.if %37 {
      %c0_30 = arith.constant 0 : index
      %c0_31 = arith.constant 0 : index
      %38 = vector.load %arg10[%c0_30, %c0_31] : memref<8x128xf32, #tpu.memory_space<vmem>>, vector<8x128xf32>
      %39 = arith.truncf %38 : vector<8x128xf32> to vector<8x128xbf16>
      %c0_32 = arith.constant 0 : index
      %c0_33 = arith.constant 0 : index
      %40 = vector.load %arg3[%c0_32, %c0_33] : memref<128x2048xbf16, #tpu.memory_space<vmem>>, vector<128x2048xbf16>
      %cst_34 = arith.constant dense<0.000000e+00> : vector<8x2048xf32>
      %41 = tpu.matmul %39, %40, %cst_34 {dimension_numbers = #tpu.dot_dimension_numbers<[1], [0], [0], [1], [0, 0, 1, 1], [], []>} : vector<8x128xbf16>, vector<128x2048xbf16>, vector<8x2048xf32> -> vector<8x2048xf32>
      %c0_35 = arith.constant 0 : index
      %c0_36 = arith.constant 0 : index
      %42 = vector.load %arg4[%c0_35, %c0_36] : memref<1x2048xf32, #tpu.memory_space<vmem>>, vector<1x2048xf32>
      %43 = vector.broadcast %42 : vector<1x2048xf32> to vector<8x2048xf32>
      %44 = arith.addf %41, %43 : vector<8x2048xf32>
      %cst_37 = arith.constant 0.000000e+00 : f32
      %45 = vector.broadcast %cst_37 : f32 to vector<8x2048xf32>
      %46 = arith.maximumf %44, %45 : vector<8x2048xf32>
      %47 = arith.truncf %46 : vector<8x2048xf32> to vector<8x2048xbf16>
      %c0_38 = arith.constant 0 : index
      %c0_39 = arith.constant 0 : index
      %48 = vector.load %arg5[%c0_38, %c0_39] : memref<2048x512xbf16, #tpu.memory_space<vmem>>, vector<2048x512xbf16>
      %cst_40 = arith.constant dense<0.000000e+00> : vector<8x512xf32>
      %49 = tpu.matmul %47, %48, %cst_40 {dimension_numbers = #tpu.dot_dimension_numbers<[1], [0], [0], [1], [0, 0, 1, 1], [], []>} : vector<8x2048xbf16>, vector<2048x512xbf16>, vector<8x512xf32> -> vector<8x512xf32>
      %c0_41 = arith.constant 0 : index
      %c0_42 = arith.constant 0 : index
      %50 = vector.load %arg6[%c0_41, %c0_42] : memref<1x512xf32, #tpu.memory_space<vmem>>, vector<1x512xf32>
      %51 = vector.broadcast %50 : vector<1x512xf32> to vector<8x512xf32>
      %52 = arith.addf %49, %51 : vector<8x512xf32>
      %cst_43 = arith.constant 0.000000e+00 : f32
      %53 = vector.broadcast %cst_43 : f32 to vector<8x512xf32>
      %54 = arith.maximumf %52, %53 : vector<8x512xf32>
      %55 = arith.truncf %54 : vector<8x512xf32> to vector<8x512xbf16>
      %c0_44 = arith.constant 0 : index
      %c0_45 = arith.constant 0 : index
      %56 = vector.load %arg7[%c0_44, %c0_45] : memref<512x128xbf16, #tpu.memory_space<vmem>>, vector<512x128xbf16>
      %cst_46 = arith.constant dense<0.000000e+00> : vector<8x128xf32>
      %57 = tpu.matmul %55, %56, %cst_46 {dimension_numbers = #tpu.dot_dimension_numbers<[1], [0], [0], [1], [0, 0, 1, 1], [], []>} : vector<8x512xbf16>, vector<512x128xbf16>, vector<8x128xf32> -> vector<8x128xf32>
      %c0_47 = arith.constant 0 : index
      %c0_48 = arith.constant 0 : index
      %58 = vector.load %arg8[%c0_47, %c0_48] : memref<1x128xf32, #tpu.memory_space<vmem>>, vector<1x128xf32>
      %59 = vector.broadcast %58 : vector<1x128xf32> to vector<8x128xf32>
      %60 = arith.addf %57, %59 : vector<8x128xf32>
      %61 = arith.truncf %60 : vector<8x128xf32> to vector<8x128xbf16>
      %c0_49 = arith.constant 0 : index
      %c0_50 = arith.constant 0 : index
      %62 = vector.load %arg9[%c0_49, %c0_50] : memref<8x128xbf16, #tpu.memory_space<vmem>>, vector<8x128xbf16>
      tpu.vector_store %arg9[%c0_49, %c0_50], %61 {strides = array<i32>} : memref<8x128xbf16, #tpu.memory_space<vmem>>, vector<8x128xbf16>,
    } else {
    }
    return
  }
  func.func @transform_0(%arg0: i32, %arg1: i32) -> (i32, i32, i32) {
    %c0_i32 = arith.constant 0 : i32
    %c0_i32_0 = arith.constant 0 : i32
    return %c0_i32, %arg0, %arg1 : i32, i32, i32
  }
  func.func @transform_1(%arg0: i32, %arg1: i32) -> (i32, i32) {
    %c0_i32 = arith.constant 0 : i32
    %c0_i32_0 = arith.constant 0 : i32
    %c0_i32_1 = arith.constant 0 : i32
    return %c0_i32, %c0_i32_0 : i32, i32
  }
  func.func @transform_2(%arg0: i32, %arg1: i32) -> (i32, i32) {
    %c0_i32 = arith.constant 0 : i32
    %c0_i32_0 = arith.constant 0 : i32
    %c0_i32_1 = arith.constant 0 : i32
    return %c0_i32, %c0_i32_0 : i32, i32
  }
  func.func @transform_3(%arg0: i32, %arg1: i32) -> (i32, i32) {
    %c0_i32 = arith.constant 0 : i32
    %c0_i32_0 = arith.constant 0 : i32
    %c0_i32_1 = arith.constant 0 : i32
    return %c0_i32, %c0_i32_0 : i32, i32
  }
  func.func @transform_4(%arg0: i32, %arg1: i32) -> (i32, i32) {
    %c0_i32 = arith.constant 0 : i32
    %c0_i32_0 = arith.constant 0 : i32
    %c0_i32_1 = arith.constant 0 : i32
    return %c0_i32, %c0_i32_0 : i32, i32
  }
  func.func @transform_5(%arg0: i32, %arg1: i32) -> (i32, i32) {
    %c0_i32 = arith.constant 0 : i32
    %c0_i32_0 = arith.constant 0 : i32
    %c0_i32_1 = arith.constant 0 : i32
    return %c0_i32, %c0_i32_0 : i32, i32
  }
  func.func @transform_6(%arg0: i32, %arg1: i32) -> (i32, i32) {
    %c0_i32 = arith.constant 0 : i32
    %c0_i32_0 = arith.constant 0 : i32
    %c0_i32_1 = arith.constant 0 : i32
    return %c0_i32, %c0_i32_0 : i32, i32
  }
  func.func @transform_7(%arg0: i32, %arg1: i32) -> (i32, i32) {
    %c0_i32 = arith.constant 0 : i32
    %c0_i32_0 = arith.constant 0 : i32
    return %arg0, %c0_i32 : i32, i32
  }
}

</mosaic_0001>

<bundles_post_ra>
// kernel: tpu_custom_call.1
= control target key start
LH: loop header
LB: loop body
LE: loop exit
PB: predicated region body
PF: predicated region fallthrough
CT: control target
= control target key end

     0   :  { %12 = vsyncpa [#allocation4], 0  ;;  %s7491_s0 = inlined_call_operand.hbm [shape: bf16[4,8,256], index: 0, kind: input, shape index: {}]   ;;  %s7492_s1 = inlined_call_operand.hbm [shape: bf16[128,2048], index: 1, kind: input, shape index: {}]   ;;  %s7493_s2 = inlined_call_operand.hbm [shape: f32[1,2048], index: 2, kind: input, shape index: {}]   ;;  %s7494_s3 = inlined_call_operand.hbm [shape: bf16[2048,512], index: 3, kind: input, shape index: {}]   ;;  %s7495_s4 = inlined_call_operand.hbm [shape: f32[1,512], index: 4, kind: input, shape index: {}]   ;;  %s7496_s5 = inlined_call_operand.hbm [shape: bf16[512,128], index: 5, kind: input, shape index: {}]   ;;  %s7497_s6 = inlined_call_operand.hbm [shape: f32[1,128], index: 6, kind: input, shape index: {}]   ;;  %s7498_s7 = inlined_call_operand.hbm [shape: bf16[8,128], index: 7, kind: output, shape index: {}]  }
   0x1   :  { %13 = vsyncpa [#allocation7], 0 }
   0x2   :  { %14 = vsyncpa [#allocation10], 0 }
   0x3   :  { %15 = vsyncpa [#allocation13], 0 }
   0x4   :  { %16 = vsyncpa [#allocation5], 0  ;;  %s7208_s24 = smov [#allocation6]  }
   0x5   :  { %s34_s25 = sshll.u32 %s7208_s24, 4  ;;  %s35_s25 = int_to_ptr.vmem [resolvable:$true] %s34_s25 }
   0x6   :  { %s7046_s26 = scalar_lea.vmem %s35_s25, 16384  ;;  %p7051_p1 = scmp.lt.s32.totalorder %s35_s25, %s35_s25 }
   0x7   :  { %p7047_p0 = scmp.ne.s32.totalorder %s35_s25, %s7046_s26  ;;  %p7052_p2 = scmp.lt.s32.totalorder %s7046_s26, %s7046_s26 }
   0x9   :  { %p7053_p3 = por %p7052_p2, %p7051_p1 }
   0xb   :  { %p7054_p4 = pnand %p7053_p3, %p7047_p0 }
   0xd   :  { %7057 = shalt.err (!%p7054_p4)
}
   0xe   :  { %s7209_s27 = smov 1024   ;;  %s7210_s28 = smov 64  }
   0xf   :  { %40 = dma.hbm_to_vmem [thread:$0]  %s7492_s1, 16384, %s35_s25, [#allocation7], %s7209_s27, %s7209_s27, %s7210_s28  }
  0x10   :  { %s7211_s8 = smov [#allocation9]  }
  0x11   :  { %s56_s9 = sshll.u32 %s7211_s8, 4  ;;  %s57_s9 = int_to_ptr.vmem [resolvable:$true] %s56_s9 }
  0x12   :  { %s7066_s10 = scalar_lea.vmem %s57_s9, 65536  ;;  %p7071_p6 = scmp.lt.s32.totalorder %s57_s9, %s57_s9 }
  0x13   :  { %p7067_p5 = scmp.ne.s32.totalorder %s57_s9, %s7066_s10  ;;  %p7072_p7 = scmp.lt.s32.totalorder %s7066_s10, %s7066_s10 }
  0x15   :  { %p7073_p8 = por %p7072_p7, %p7071_p6 }
  0x17   :  { %p7074_p9 = pnand %p7073_p8, %p7067_p5 }
  0x19   :  { %7077 = shalt.err (!%p7074_p9)
}
  0x1a   :  { %s7212_s11 = smov 256   ;;  %s7213_s12 = smov 16  }
  0x1b   :  { %62 = dma.hbm_to_vmem [thread:$0]  %s7494_s3, 65536, %s57_s9, [#allocation10], %s7212_s11, %s7212_s11, %s7213_s12  }
  0x1c   :  { %s7214_s15 = smov [#allocation12]   ;;  %s7215_s1 = smov [#allocation3]  }
  0x1d   :  { %s78_s16 = sshll.u32 %s7214_s15, 4  ;;  %s22_s17 = sshll.u32 %s7215_s1, 4  ;;  %s79_s16 = int_to_ptr.vmem [resolvable:$true] %s78_s16  ;;  %s23_s17 = int_to_ptr.vmem [resolvable:$true] %s22_s17 }
  0x1e   :  { %s7086_s18 = scalar_lea.vmem %s79_s16, 4096  ;;  %p7091_p11 = scmp.lt.s32.totalorder %s79_s16, %s79_s16 }
  0x1f   :  { %p7087_p10 = scmp.ne.s32.totalorder %s79_s16, %s7086_s18  ;;  %p7092_p12 = scmp.lt.s32.totalorder %s7086_s18, %s7086_s18 }
  0x21   :  { %p7093_p13 = por %p7092_p12, %p7091_p11 }
  0x23   :  { %p7094_p0 = pnand %p7093_p13, %p7087_p10 }
  0x25   :  { %7097 = shalt.err (!%p7094_p0)
}
  0x26   :  { %s7216_s19 = smov 4   ;;  %s7106_s3 = scalar_lea.vmem %s23_s17, 512 }
  0x27   :  { %84 = dma.hbm_to_vmem [thread:$0]  %s7496_s5, 4096, %s79_s16, [#allocation13], %s7210_s28, %s7210_s28, %s7216_s19  }
  0x28   :  { %p7107_p1 = scmp.ne.s32.totalorder %s23_s17, %s7106_s3  ;;  %p7111_p2 = scmp.lt.s32.totalorder %s23_s17, %s23_s17 }
  0x29   :  { %p7112_p3 = scmp.lt.s32.totalorder %s7106_s3, %s7106_s3 }
  0x2b   :  { %p7113_p4 = por %p7112_p3, %p7111_p2 }
  0x2d   :  { %p7114_p5 = pnand %p7113_p4, %p7107_p1 }
  0x2f   :  { %7117 = shalt.err (!%p7114_p5)
}
  0x30   :  { %s7217_s22 = smov 128   ;;  %s7218_s23 = smov 8  }
  0x31   :  { %28 = dma.hbm_to_vmem [thread:$0]  %s7491_s0, 512, %s23_s17, [#allocation4], %s7217_s22, %s7217_s22, %s7218_s23  }
  0x32   :  { %s7219_s26 = smov [#allocation8]   ;;  %s7220_s29 = smov [#allocation11]  }
  0x33   :  { %s47_s27 = sshll.u32 %s7219_s26, 4  ;;  %s69_s30 = sshll.u32 %s7220_s29, 4  ;;  %s48_s27 = int_to_ptr.vmem [resolvable:$true] %s47_s27  ;;  %s70_s30 = int_to_ptr.vmem [resolvable:$true] %s69_s30 }
  0x34   :  { %s7126_s5 = scalar_lea.vmem %s48_s27, 256  ;;  %p7131_p7 = scmp.lt.s32.totalorder %s48_s27, %s48_s27 }
  0x35   :  { %p7127_p6 = scmp.ne.s32.totalorder %s48_s27, %s7126_s5  ;;  %p7132_p8 = scmp.lt.s32.totalorder %s7126_s5, %s7126_s5 }
  0x37   :  { %p7133_p9 = por %p7132_p8, %p7131_p7 }
  0x39   :  { %p7134_p10 = pnand %p7133_p9, %p7127_p6 }
  0x3b   :  { %7137 = shalt.err (!%p7134_p10)
}
  0x3c   :  { %50 = dma.hbm_to_vmem [thread:$0]  %s7493_s2, 256, %s48_s27, [#allocation7]  }
  0x3d   :  { %s7146_s9 = scalar_lea.vmem %s70_s30, 64  ;;  %p7151_p12 = scmp.lt.s32.totalorder %s70_s30, %s70_s30 }
  0x3e   :  { %p7147_p11 = scmp.ne.s32.totalorder %s70_s30, %s7146_s9  ;;  %p7152_p13 = scmp.lt.s32.totalorder %s7146_s9, %s7146_s9 }
  0x40   :  { %p7153_p0 = por %p7152_p13, %p7151_p12 }
  0x42   :  { %p7154_p1 = pnand %p7153_p0, %p7147_p11 }
  0x44   :  { %7157 = shalt.err (!%p7154_p1)
}
  0x45   :  { %72 = dma.hbm_to_vmem [thread:$0]  %s7495_s4, 64, %s70_s30, [#allocation10]  }
  0x46   :  { %s7221_s11 = smov [#allocation14]  }
  0x47   :  { %s91_s12 = sshll.u32 %s7221_s11, 4  ;;  %s92_s12 = int_to_ptr.vmem [resolvable:$true] %s91_s12 }
  0x48   :  { %s7166_s13 = scalar_lea.vmem %s92_s12, 16  ;;  %s7170_s14 = scalar_lea.vmem %s92_s12, 32 }
  0x49   :  { %p7167_p2 = scmp.ne.s32.totalorder %s92_s12, %s7166_s13  ;;  %p7171_p3 = scmp.lt.s32.totalorder %s92_s12, %s92_s12 }
  0x4a   :  { %p7172_p4 = scmp.lt.s32.totalorder %s7170_s14, %s7166_s13 }
  0x4c   :  { %p7173_p5 = por %p7172_p4, %p7171_p3 }
  0x4e   :  { %p7174_p6 = pnand %p7173_p5, %p7167_p2 }
  0x50   :  { %7177 = shalt.err (!%p7174_p6)
}
  0x51   :  { %94 = dma.hbm_to_vmem [thread:$0]  %s7497_s6, 16, %s92_s12, [#allocation13]  }
  0x52   :  { %7198 = dma.done.wait [#allocation4], 512  }
  0x53   :  { %7199 = vsyncadd [#allocation4], 4294966784 }
  0x54   :  { %7200 = dma.done.wait [#allocation7], 16640  }
  0x55   :  { %7201 = vsyncadd [#allocation7], 4294950656 }
  0x56   :  { %7202 = dma.done.wait [#allocation10], 65600  }
  0x57   :  { %7203 = vsyncadd [#allocation10], 4294901696 }
  0x58   :  { %7204 = dma.done.wait [#allocation13], 4112  }
  0x59   :  { %7205 = vsyncadd [#allocation13], 4294963184  ;;  %v7222_v0 = vmov 0.0   ;;  %v122_v1 = vld [vmem:[#allocation3] sm:$0xff]  ;;  %v133_v2 = vld [vmem:[#allocation3 + $0x8] sm:$0xff]  ;;  %vm130_vm0 = vcmask 7168  }
  0x5a   :  { %121 = vst [vmem:[#allocation2] sm:$0xff] %v7222_v0  ;;  %v144_v3 = vld [vmem:[#allocation3 + $0x10] sm:$0xff]  ;;  %v123_v4 = vunpack.c.l.bf16 %v122_v1  ;;  %v124_v5 = vunpack.c.h.bf16 %v122_v1  ;;  %v134_v6 = vunpack.c.l.bf16 %v133_v2  ;;  %v135_v7 = vunpack.c.h.bf16 %v133_v2  ;;  %v155_v8 = vld [vmem:[#allocation3 + $0x18] sm:$0xff]  ;;  %v282_v17 = vld [vmem:[#allocation6 + $0x380] sm:$0xff]  ;;  %s7224_s4 = smov [#allocation15]  }
  0x5b   :  { %v145_v9 = vunpack.c.l.bf16 %v144_v3  ;;  %v146_v10 = vunpack.c.h.bf16 %v144_v3  ;;  %v156_v11 = vunpack.c.l.bf16 %v155_v8  ;;  %v157_v12 = vunpack.c.h.bf16 %v155_v8  ;;  %v290_v18 = vld [vmem:[#allocation6 + $0x3c0] sm:$0xff]  ;;  %v283_v19 = vld [vmem:[#allocation6 + $0x388] sm:$0xff]  ;;  %s5491_s6 = sshll.u32 %s7224_s4, 4  ;;  %s5492_s6 = int_to_ptr.vmem [resolvable:$true] %s5491_s6 }
  0x5c   :  { %v125_v13 = vadd.f32 %v124_v5, %v123_v4  ;;  %v136_v15 = vadd.f32 %v135_v7, %v134_v6  ;;  %v5616_v20 = vcombine.high %v282_v17, %v290_v18  ;;  %v291_v21 = vld [vmem:[#allocation6 + $0x3c8] sm:$0xff]  ;;  %v5615_v23 = vcombine.low %v282_v17, %v290_v18  ;;  %v266_v25 = vld [vmem:[#allocation6 + $0x300] sm:$0xff]  ;;  %s7178_s16 = scalar_lea.vmem %s5492_s6, 64  ;;  %p7183_p8 = scmp.lt.s32.totalorder %s5492_s6, %s5492_s6 }
  0x5d   :  { %v147_v14 = vadd.f32 %v146_v10, %v145_v9  ;;  %v158_v16 = vadd.f32 %v157_v12, %v156_v11  ;;  %v5618_v22 = vcombine.high %v283_v19, %v291_v21  ;;  %v5617_v24 = vcombine.low %v283_v19, %v291_v21  ;;  %v274_v26 = vld [vmem:[#allocation6 + $0x340] sm:$0xff]  ;;  %v267_v27 = vld [vmem:[#allocation6 + $0x308] sm:$0xff]  ;;  %v293_v21 = vld [vmem:[#allocation6 + $0x3d8] sm:$0xff]  ;;  %p7179_p7 = scmp.ne.s32.totalorder %s5492_s6, %s7178_s16  ;;  %p7184_p9 = scmp.lt.s32.totalorder %s7178_s16, %s7178_s16 }
  0x5e   :  { %126 = vadd.xlane.f32.xlu0 %v125_v13  ;;  %1022 = vmatprep.subr.bf16.mxu0 %v5616_v20  ;;  %v5600_v28 = vcombine.high %v266_v25, %v274_v26  ;;  %v275_v29 = vld [vmem:[#allocation6 + $0x348] sm:$0xff]  ;;  %v5599_v31 = vcombine.low %v266_v25, %v274_v26  ;;  %v250_v33 = vld [vmem:[#allocation6 + $0x280] sm:$0xff]  ;;  %v285_v20 = vld [vmem:[#allocation6 + $0x398] sm:$0xff]  ;;  %vm141_vm1 = vcmask 15368   ;;  %vm152_vm2 = vcmask 23568  }
  0x5f   :  { %148 = vadd.xlane.f32.xlu1 %v147_v14  ;;  %1063 = vmatprep.subr.bf16.mxu1 %v5618_v22  ;;  %v5602_v30 = vcombine.high %v267_v27, %v275_v29  ;;  %v5601_v32 = vcombine.low %v267_v27, %v275_v29  ;;  %v258_v34 = vld [vmem:[#allocation6 + $0x2c0] sm:$0xff]  ;;  %v251_v35 = vld [vmem:[#allocation6 + $0x288] sm:$0xff]  ;;  %v7223_v14 = vmov 0   ;;  %v5622_v25 = vcombine.high %v285_v20, %v293_v21  ;;  %p7185_p10 = por %p7184_p9, %p7183_p8 }
  0x60   :  { %1023 = vmatpush1.bf16.msra.mxu0 %v5615_v23  ;;  %1064 = vmatpush1.bf16.msra.mxu1 %v5617_v24  ;;  %v5584_v36 = vcombine.high %v250_v33, %v258_v34  ;;  %v259_v37 = vld [vmem:[#allocation6 + $0x2c8] sm:$0xff]  ;;  %v5583_v39 = vcombine.low %v250_v33, %v258_v34  ;;  %v234_v41 = vld [vmem:[#allocation6 + $0x200] sm:$0xff]  ;;  %v5621_v24 = vcombine.low %v285_v20, %v293_v21  ;;  %vm163_vm3 = vcmask 31768   ;;  %v180_v20 = vld [vmem:[#allocation6 + $0x50] sm:$0xff] }
  0x61   :  { %1024 = vmatprep.subr.bf16.mxu0 %v5600_v28  ;;  %1065 = vmatprep.subr.bf16.mxu1 %v5602_v30  ;;  %v5586_v38 = vcombine.high %v251_v35, %v259_v37  ;;  %v5585_v40 = vcombine.low %v251_v35, %v259_v37  ;;  %v242_v42 = vld [vmem:[#allocation6 + $0x240] sm:$0xff]  ;;  %v235_v43 = vld [vmem:[#allocation6 + $0x208] sm:$0xff]  ;;  %v276_v37 = vld [vmem:[#allocation6 + $0x350] sm:$0xff]  ;;  %p7186_p11 = pnand %p7185_p10, %p7179_p7 }
  0x62   :  { %137 = vadd.xlane.f32.xlu0 %v136_v15  ;;  %v5568_v44 = vcombine.high %v234_v41, %v242_v42  ;;  %v243_v45 = vld [vmem:[#allocation6 + $0x248] sm:$0xff]  ;;  %v5567_v47 = vcombine.low %v234_v41, %v242_v42  ;;  %v218_v49 = vld [vmem:[#allocation6 + $0x180] sm:$0xff]  ;;  %1054 = vmatprep.mubr.bf16.mxu0 %v7223_v14  ;;  %v284_v15 = vld [vmem:[#allocation6 + $0x390] sm:$0xff] }
  0x63   :  { %159 = vadd.xlane.f32.xlu1 %v158_v16  ;;  %v5570_v46 = vcombine.high %v235_v43, %v243_v45  ;;  %v5569_v48 = vcombine.low %v235_v43, %v243_v45  ;;  %v226_v50 = vld [vmem:[#allocation6 + $0x1c0] sm:$0xff]  ;;  %v219_v51 = vld [vmem:[#allocation6 + $0x188] sm:$0xff]  ;;  %v292_v16 = vld [vmem:[#allocation6 + $0x3d0] sm:$0xff]  ;;  %1095 = vmatprep.mubr.bf16.mxu1 %v7223_v14 }
  0x64   :  { %1025 = vmatpush1.bf16.msra.mxu0 %v5599_v31  ;;  %1066 = vmatpush1.bf16.msra.mxu1 %v5601_v32  ;;  %v5552_v52 = vcombine.high %v218_v49, %v226_v50  ;;  %v227_v53 = vld [vmem:[#allocation6 + $0x1c8] sm:$0xff]  ;;  %v5551_v54 = vcombine.low %v218_v49, %v226_v50  ;;  %v202_v55 = vld [vmem:[#allocation6 + $0x100] sm:$0xff]  ;;  %v5619_v19 = vcombine.low %v284_v15, %v292_v16  ;;  %v252_v41 = vld [vmem:[#allocation6 + $0x290] sm:$0xff] }
  0x65   :  { %1026 = vmatprep.subr.bf16.mxu0 %v5584_v36  ;;  %1067 = vmatprep.subr.bf16.mxu1 %v5586_v38  ;;  %v210_v56 = vld [vmem:[#allocation6 + $0x140] sm:$0xff]  ;;  %v5554_v57 = vcombine.high %v219_v51, %v227_v53  ;;  %v5553_v58 = vcombine.low %v219_v51, %v227_v53  ;;  %v203_v60 = vld [vmem:[#allocation6 + $0x108] sm:$0xff]  ;;  %v5620_v23 = vcombine.high %v284_v15, %v292_v16  ;;  %v268_v36 = vld [vmem:[#allocation6 + $0x310] sm:$0xff] }
  0x66   :  { %v5536_v59 = vcombine.high %v202_v55, %v210_v56  ;;  %v211_v61 = vld [vmem:[#allocation6 + $0x148] sm:$0xff]  ;;  %v5535_v63 = vcombine.low %v202_v55, %v210_v56  ;;  %v186_v1 = vld [vmem:[#allocation6 + $0x80] sm:$0xff]  ;;  %v269_v38 = vld [vmem:[#allocation6 + $0x318] sm:$0xff] }
  0x67   :  { %v5538_v62 = vcombine.high %v203_v60, %v211_v61  ;;  %v5537_v0 = vcombine.low %v203_v60, %v211_v61  ;;  %v194_v2 = vld [vmem:[#allocation6 + $0xc0] sm:$0xff]  ;;  %v187_v3 = vld [vmem:[#allocation6 + $0x88] sm:$0xff]  ;;  %v260_v42 = vld [vmem:[#allocation6 + $0x2d0] sm:$0xff] }
  0x68   :  { %1027 = vmatpush1.bf16.msra.mxu0 %v5583_v39  ;;  %1068 = vmatpush1.bf16.msra.mxu1 %v5585_v40  ;;  %v5520_v4 = vcombine.high %v186_v1, %v194_v2  ;;  %v195_v5 = vld [vmem:[#allocation6 + $0xc8] sm:$0xff]  ;;  %v5519_v7 = vcombine.low %v186_v1, %v194_v2  ;;  %v170_v9 = vld [vmem:[#allocation6] sm:$0xff]  ;;  %v277_v39 = vld [vmem:[#allocation6 + $0x358] sm:$0xff]  ;;  %v5587_v56 = vcombine.low %v252_v41, %v260_v42 }
  0x69   :  { %1028 = vmatprep.subr.bf16.mxu0 %v5568_v44  ;;  %1069 = vmatprep.subr.bf16.mxu1 %v5570_v46  ;;  %v5522_v6 = vcombine.high %v187_v3, %v195_v5  ;;  %v5521_v8 = vcombine.low %v187_v3, %v195_v5  ;;  %v178_v10 = vld [vmem:[#allocation6 + $0x40] sm:$0xff]  ;;  %v171_v11 = vld [vmem:[#allocation6 + $0x8] sm:$0xff]  ;;  %v5604_v44 = vcombine.high %v268_v36, %v276_v37  ;;  %v253_v46 = vld [vmem:[#allocation6 + $0x298] sm:$0xff] }
  0x6a   :  { %v5504_v12 = vcombine.high %v170_v9, %v178_v10  ;;  %v179_v13 = vld [vmem:[#allocation6 + $0x48] sm:$0xff]  ;;  %v5503_v18 = vcombine.low %v170_v9, %v178_v10  ;;  %v5606_v45 = vcombine.high %v269_v38, %v277_v39  ;;  %v5605_v49 = vcombine.low %v269_v38, %v277_v39  ;;  %v236_v50 = vld [vmem:[#allocation6 + $0x210] sm:$0xff]  ;;  %v245_v55 = vld [vmem:[#allocation6 + $0x258] sm:$0xff] }
  0x6b   :  { %v5506_v17 = vcombine.high %v171_v11, %v179_v13  ;;  %v5505_v22 = vcombine.low %v171_v11, %v179_v13  ;;  %v244_v51 = vld [vmem:[#allocation6 + $0x250] sm:$0xff]  ;;  %v189_v15 = vld [vmem:[#allocation6 + $0x98] sm:$0xff]  ;;  %v279_v38 = vld [vmem:[#allocation6 + $0x368] sm:$0xff] }
  0x6c   :  { %1029 = vmatpush1.bf16.msra.mxu0 %v5567_v47  ;;  %1070 = vmatpush1.bf16.msra.mxu1 %v5569_v48  ;;  %v261_v47 = vld [vmem:[#allocation6 + $0x2d8] sm:$0xff]  ;;  %v5603_v48 = vcombine.low %v268_v36, %v276_v37  ;;  %v5572_v60 = vcombine.high %v236_v50, %v244_v51  ;;  %v204_v2 = vld [vmem:[#allocation6 + $0x110] sm:$0xff]  ;;  %v278_v36 = vld [vmem:[#allocation6 + $0x360] sm:$0xff] }
  0x6d   :  { %1030 = vmatprep.subr.bf16.mxu0 %v5552_v52  ;;  %1071 = vmatprep.subr.bf16.mxu1 %v5554_v57  ;;  %v5588_v52 = vcombine.high %v252_v41, %v260_v42  ;;  %v5590_v53 = vcombine.high %v253_v46, %v261_v47  ;;  %v5589_v57 = vcombine.low %v253_v46, %v261_v47  ;;  %v212_v3 = vld [vmem:[#allocation6 + $0x150] sm:$0xff]  ;;  %v197_v16 = vld [vmem:[#allocation6 + $0xd8] sm:$0xff]  ;;  %v271_v37 = vld [vmem:[#allocation6 + $0x328] sm:$0xff] }
  0x6e   :  { %v188_v10 = vld [vmem:[#allocation6 + $0x90] sm:$0xff]  ;;  %v255_v46 = vld [vmem:[#allocation6 + $0x2a8] sm:$0xff] }
  0x6f   :  { %v196_v11 = vld [vmem:[#allocation6 + $0xd0] sm:$0xff]  ;;  %v263_v47 = vld [vmem:[#allocation6 + $0x2e8] sm:$0xff] }
  0x70   :  { %1031 = vmatpush1.bf16.msra.mxu0 %v5551_v54  ;;  %1072 = vmatpush1.bf16.msra.mxu1 %v5553_v58  ;;  %v237_v54 = vld [vmem:[#allocation6 + $0x218] sm:$0xff]  ;;  %v220_v58 = vld [vmem:[#allocation6 + $0x190] sm:$0xff]  ;;  %v5524_v21 = vcombine.high %v188_v10, %v196_v11 }
  0x71   :  { %1032 = vmatprep.subr.bf16.mxu0 %v5536_v59  ;;  %1073 = vmatprep.subr.bf16.mxu1 %v5538_v62  ;;  %v228_v59 = vld [vmem:[#allocation6 + $0x1d0] sm:$0xff]  ;;  %v5574_v61 = vcombine.high %v237_v54, %v245_v55  ;;  %v221_v62 = vld [vmem:[#allocation6 + $0x198] sm:$0xff]  ;;  %v5573_v1 = vcombine.low %v237_v54, %v245_v55  ;;  %v239_v54 = vld [vmem:[#allocation6 + $0x228] sm:$0xff] }
  0x72   :  { %v247_v55 = vld [vmem:[#allocation6 + $0x268] sm:$0xff] }
  0x74   :  { %1033 = vmatpush1.bf16.msra.mxu0 %v5535_v63  ;;  %1074 = vmatpush1.bf16.msra.mxu1 %v5537_v0  ;;  %v229_v63 = vld [vmem:[#allocation6 + $0x1d8] sm:$0xff]  ;;  %v5571_v0 = vcombine.low %v236_v50, %v244_v51  ;;  %v5609_v51 = vcombine.low %v271_v37, %v279_v38 }
  0x75   :  { %1034 = vmatprep.subr.bf16.mxu0 %v5520_v4  ;;  %1075 = vmatprep.subr.bf16.mxu1 %v5522_v6  ;;  %v5556_v4 = vcombine.high %v220_v58, %v228_v59  ;;  %v5558_v5 = vcombine.high %v221_v62, %v229_v63  ;;  %v205_v6 = vld [vmem:[#allocation6 + $0x118] sm:$0xff]  ;;  %v5557_v9 = vcombine.low %v221_v62, %v229_v63  ;;  %v223_v62 = vld [vmem:[#allocation6 + $0x1a8] sm:$0xff] }
  0x76   :  { %v231_v63 = vld [vmem:[#allocation6 + $0x1e8] sm:$0xff] }
  0x78   :  { %1035 = vmatpush1.bf16.msra.mxu0 %v5519_v7  ;;  %1076 = vmatpush1.bf16.msra.mxu1 %v5521_v8  ;;  %v213_v7 = vld [vmem:[#allocation6 + $0x158] sm:$0xff]  ;;  %v5555_v8 = vcombine.low %v220_v58, %v228_v59  ;;  %v5593_v59 = vcombine.low %v255_v46, %v263_v47 }
  0x79   :  { %1036 = vmatprep.subr.bf16.mxu0 %v5504_v12  ;;  %1077 = vmatprep.subr.bf16.mxu1 %v5506_v17  ;;  %v5540_v12 = vcombine.high %v204_v2, %v212_v3  ;;  %v5542_v13 = vcombine.high %v205_v6, %v213_v7  ;;  %v5539_v17 = vcombine.low %v204_v2, %v212_v3 }
  0x7a   :  { %v5577_v3 = vcombine.low %v239_v54, %v247_v55 }
  0x7c   :  { %1037 = vmatpush1.bf16.msra.mxu0 %v5503_v18  ;;  %1078 = vmatpush1.bf16.msra.mxu1 %v5505_v22  ;;  %v5541_v18 = vcombine.low %v205_v6, %v213_v7  ;;  %v5526_v22 = vcombine.high %v189_v15, %v197_v16  ;;  %v207_v6 = vld [vmem:[#allocation6 + $0x128] sm:$0xff] }
  0x7d   :  { %1104 = vmatprep.subr.bf16.mxu0 %v5620_v23  ;;  %1145 = vmatprep.subr.bf16.mxu1 %v5622_v25  ;;  %v173_v23 = vld [vmem:[#allocation6 + $0x18] sm:$0xff]  ;;  %v5523_v25 = vcombine.low %v188_v10, %v196_v11  ;;  %v215_v7 = vld [vmem:[#allocation6 + $0x168] sm:$0xff]  ;;  %v5561_v11 = vcombine.low %v223_v62, %v231_v63 }
  0xe7   :  { %v127_v26 = vpop.xlane.xlu0 %126 }
  0xe8   :  { %131 = vst.msk [vmem:[#allocation2] sm:$0xff] %vm130_vm0, %v127_v26  ;;  %v149_v30 = vpop.xlane.xlu1 %148  ;;  %v5525_v26 = vcombine.low %v189_v15, %v197_v16  ;;  %v191_v15 = vld [vmem:[#allocation6 + $0xa8] sm:$0xff] }
  0xe9   :  { %v199_v16 = vld [vmem:[#allocation6 + $0xe8] sm:$0xff] }
  0xeb   :  { %v138_v27 = vpop.xlane.xlu0 %137 }
  0xec   :  { %v160_v33 = vpop.xlane.xlu1 %159 }
  0xef   :  { %v139_v28 = vld [vmem:[#allocation2] sm:$0xff] }
  0xf0   :  { %v140_v29 = vadd.f32 %v139_v28, %v138_v27  ;;  %v286_v27 = vld [vmem:[#allocation6 + $0x3a0] sm:$0xff] }
  0xf1   :  { %v294_v28 = vld [vmem:[#allocation6 + $0x3e0] sm:$0xff] }
  0xf2   :  { %142 = vst.msk [vmem:[#allocation2] sm:$0xff] %vm141_vm1, %v140_v29  ;;  %v287_v29 = vld [vmem:[#allocation6 + $0x3a8] sm:$0xff]  ;;  %v5624_v39 = vcombine.high %v286_v27, %v294_v28  ;;  %v5623_v41 = vcombine.low %v286_v27, %v294_v28  ;;  %v5529_v28 = vcombine.low %v191_v15, %v199_v16 }
  0xf9   :  { %v150_v31 = vld [vmem:[#allocation2] sm:$0xff] }
  0xfa   :  { %v151_v32 = vadd.f32 %v150_v31, %v149_v30  ;;  %v295_v30 = vld [vmem:[#allocation6 + $0x3e8] sm:$0xff] }
  0xfb   :  { %v5625_v42 = vcombine.low %v287_v29, %v295_v30 }
  0xfc   :  { %153 = vst.msk [vmem:[#allocation2] sm:$0xff] %vm152_vm2, %v151_v32 }
 0x103   :  { %v161_v34 = vld [vmem:[#allocation2] sm:$0xff] }
 0x104   :  { %v162_v35 = vadd.f32 %v161_v34, %v160_v33 }
 0x106   :  { %164 = vst.msk [vmem:[#allocation2] sm:$0xff] %vm163_vm3, %v162_v35  ;;  %v270_v35 = vld [vmem:[#allocation6 + $0x320] sm:$0xff] }
 0x107   :  { %v5607_v50 = vcombine.low %v270_v35, %v278_v36 }
 0x10d   :  { %v168_v40 = vld [vmem:[#allocation2] sm:$0xff] }
 0x10e   :  { %v7291_v43 = vpack.c.bf16 %v168_v40, %v168_v40  ;;  %v5626_v40 = vcombine.high %v287_v29, %v295_v30  ;;  %v288_v29 = vld [vmem:[#allocation6 + $0x3b0] sm:$0xff] }
 0x10f   :  { %v296_v30 = vld [vmem:[#allocation6 + $0x3f0] sm:$0xff] }
 0x110   :  { %1055 = vmatmul.mubr.bf16.vlgmr.msra.gmra.mxu0 %v7291_v43  ;;  %1096 = vmatmul.mubr.bf16.vlgmr.msra.gmra.mxu1 %v7291_v43 }
 0x111   :  { %1105 = vmatpush1.bf16.msra.mxu0 %v5619_v19  ;;  %1146 = vmatpush1.bf16.msra.mxu1 %v5621_v24  ;;  %v172_v19 = vld [vmem:[#allocation6 + $0x10] sm:$0xff]  ;;  %v181_v24 = vld [vmem:[#allocation6 + $0x58] sm:$0xff] }
 0x112   :  { %1106 = vmatprep.subr.bf16.mxu0 %v5604_v44  ;;  %1147 = vmatprep.subr.bf16.mxu1 %v5606_v45  ;;  %v5508_v31 = vcombine.high %v172_v19, %v180_v20  ;;  %v5510_v32 = vcombine.high %v173_v23, %v181_v24  ;;  %v5507_v33 = vcombine.low %v172_v19, %v180_v20  ;;  %v254_v44 = vld [vmem:[#allocation6 + $0x2a0] sm:$0xff] }
 0x113   :  { %1136 = vmatprep.mubr.bf16.mxu0 %v7223_v14  ;;  %1177 = vmatprep.mubr.bf16.mxu1 %v7223_v14  ;;  %v5509_v34 = vcombine.low %v173_v23, %v181_v24  ;;  %v262_v45 = vld [vmem:[#allocation6 + $0x2e0] sm:$0xff]  ;;  %v5545_v20 = vcombine.low %v207_v6, %v215_v7  ;;  %v175_v23 = vld [vmem:[#allocation6 + $0x28] sm:$0xff] }
 0x114   :  { %v5591_v58 = vcombine.low %v254_v44, %v262_v45  ;;  %v183_v24 = vld [vmem:[#allocation6 + $0x68] sm:$0xff] }
 0x115   :  { %1107 = vmatpush1.bf16.msra.mxu0 %v5603_v48  ;;  %1148 = vmatpush1.bf16.msra.mxu1 %v5605_v49  ;;  %v5608_v48 = vcombine.high %v270_v35, %v278_v36  ;;  %v5610_v49 = vcombine.high %v271_v37, %v279_v38  ;;  %v5513_v36 = vcombine.low %v175_v23, %v183_v24  ;;  %v272_v37 = vld [vmem:[#allocation6 + $0x330] sm:$0xff] }
 0x116   :  { %1108 = vmatprep.subr.bf16.mxu0 %v5588_v52  ;;  %1149 = vmatprep.subr.bf16.mxu1 %v5590_v53  ;;  %v238_v52 = vld [vmem:[#allocation6 + $0x220] sm:$0xff]  ;;  %v280_v38 = vld [vmem:[#allocation6 + $0x370] sm:$0xff] }
 0x117   :  { %v246_v53 = vld [vmem:[#allocation6 + $0x260] sm:$0xff] }
 0x118   :  { %v5575_v2 = vcombine.low %v238_v52, %v246_v53 }
 0x119   :  { %1109 = vmatpush1.bf16.msra.mxu0 %v5587_v56  ;;  %1150 = vmatpush1.bf16.msra.mxu1 %v5589_v57  ;;  %v5592_v56 = vcombine.high %v254_v44, %v262_v45  ;;  %v5594_v57 = vcombine.high %v255_v46, %v263_v47  ;;  %v5627_v44 = vcombine.low %v288_v29, %v296_v30  ;;  %v256_v46 = vld [vmem:[#allocation6 + $0x2b0] sm:$0xff] }
 0x11a   :  { %1110 = vmatprep.subr.bf16.mxu0 %v5572_v60  ;;  %1151 = vmatprep.subr.bf16.mxu1 %v5574_v61  ;;  %v222_v60 = vld [vmem:[#allocation6 + $0x1a0] sm:$0xff]  ;;  %v264_v47 = vld [vmem:[#allocation6 + $0x2f0] sm:$0xff] }
 0x11b   :  { %v230_v61 = vld [vmem:[#allocation6 + $0x1e0] sm:$0xff] }
 0x11c   :  { %v5559_v10 = vcombine.low %v222_v60, %v230_v61 }
 0x11d   :  { %1111 = vmatpush1.bf16.msra.mxu0 %v5571_v0  ;;  %1152 = vmatpush1.bf16.msra.mxu1 %v5573_v1  ;;  %v5576_v0 = vcombine.high %v238_v52, %v246_v53  ;;  %v5578_v1 = vcombine.high %v239_v54, %v247_v55  ;;  %v5611_v52 = vcombine.low %v272_v37, %v280_v38  ;;  %v240_v54 = vld [vmem:[#allocation6 + $0x230] sm:$0xff] }
 0x11e   :  { %1112 = vmatprep.subr.bf16.mxu0 %v5556_v4  ;;  %1153 = vmatprep.subr.bf16.mxu1 %v5558_v5  ;;  %v206_v4 = vld [vmem:[#allocation6 + $0x120] sm:$0xff]  ;;  %v248_v55 = vld [vmem:[#allocation6 + $0x270] sm:$0xff] }
 0x11f   :  { %v214_v5 = vld [vmem:[#allocation6 + $0x160] sm:$0xff] }
 0x120   :  { %v5543_v19 = vcombine.low %v206_v4, %v214_v5 }
 0x121   :  { %1113 = vmatpush1.bf16.msra.mxu0 %v5555_v8  ;;  %1154 = vmatpush1.bf16.msra.mxu1 %v5557_v9  ;;  %v5560_v8 = vcombine.high %v222_v60, %v230_v61  ;;  %v5562_v9 = vcombine.high %v223_v62, %v231_v63  ;;  %v5595_v60 = vcombine.low %v256_v46, %v264_v47  ;;  %v224_v62 = vld [vmem:[#allocation6 + $0x1b0] sm:$0xff] }
 0x122   :  { %1114 = vmatprep.subr.bf16.mxu0 %v5540_v12  ;;  %1155 = vmatprep.subr.bf16.mxu1 %v5542_v13  ;;  %v190_v12 = vld [vmem:[#allocation6 + $0xa0] sm:$0xff]  ;;  %v232_v63 = vld [vmem:[#allocation6 + $0x1f0] sm:$0xff] }
 0x123   :  { %v198_v13 = vld [vmem:[#allocation6 + $0xe0] sm:$0xff] }
 0x124   :  { %v5527_v27 = vcombine.low %v190_v12, %v198_v13 }
 0x125   :  { %1115 = vmatpush1.bf16.msra.mxu0 %v5539_v17  ;;  %1156 = vmatpush1.bf16.msra.mxu1 %v5541_v18  ;;  %v5544_v17 = vcombine.high %v206_v4, %v214_v5  ;;  %v5546_v18 = vcombine.high %v207_v6, %v215_v7  ;;  %v5579_v4 = vcombine.low %v240_v54, %v248_v55  ;;  %v208_v6 = vld [vmem:[#allocation6 + $0x130] sm:$0xff] }
 0x126   :  { %1116 = vmatprep.subr.bf16.mxu0 %v5524_v21  ;;  %1157 = vmatprep.subr.bf16.mxu1 %v5526_v22  ;;  %v174_v21 = vld [vmem:[#allocation6 + $0x20] sm:$0xff]  ;;  %v216_v7 = vld [vmem:[#allocation6 + $0x170] sm:$0xff] }
 0x127   :  { %v182_v22 = vld [vmem:[#allocation6 + $0x60] sm:$0xff] }
 0x128   :  { %v5511_v35 = vcombine.low %v174_v21, %v182_v22 }
 0x129   :  { %1117 = vmatpush1.bf16.msra.mxu0 %v5523_v25  ;;  %1158 = vmatpush1.bf16.msra.mxu1 %v5525_v26  ;;  %v5528_v25 = vcombine.high %v190_v12, %v198_v13  ;;  %v5530_v26 = vcombine.high %v191_v15, %v199_v16  ;;  %v5548_v13 = vcombine.high %v208_v6, %v216_v7  ;;  %v192_v16 = vld [vmem:[#allocation6 + $0xb0] sm:$0xff] }
 0x12a   :  { %1118 = vmatprep.subr.bf16.mxu0 %v5508_v31  ;;  %1159 = vmatprep.subr.bf16.mxu1 %v5510_v32  ;;  %v289_v31 = vld [vmem:[#allocation6 + $0x3b8] sm:$0xff] }
 0x12b   :  { %v297_v32 = vld [vmem:[#allocation6 + $0x3f8] sm:$0xff] }
 0x12c   :  { %v5629_v45 = vcombine.low %v289_v31, %v297_v32 }
 0x12d   :  { %1119 = vmatpush1.bf16.msra.mxu0 %v5507_v33  ;;  %1160 = vmatpush1.bf16.msra.mxu1 %v5509_v34  ;;  %v5512_v33 = vcombine.high %v174_v21, %v182_v22  ;;  %v5514_v34 = vcombine.high %v175_v23, %v183_v24  ;;  %v176_v24 = vld [vmem:[#allocation6 + $0x30] sm:$0xff] }
 0x12e   :  { %1186 = vmatprep.subr.bf16.mxu0 %v5624_v39  ;;  %1227 = vmatprep.subr.bf16.mxu1 %v5626_v40  ;;  %v273_v39 = vld [vmem:[#allocation6 + $0x338] sm:$0xff] }
 0x12f   :  { %v281_v40 = vld [vmem:[#allocation6 + $0x378] sm:$0xff] }
 0x130   :  { %1137 = vmatmul.mubr.bf16.vlgmr.msra.gmra.mxu0 %v7291_v43  ;;  %1178 = vmatmul.mubr.bf16.vlgmr.msra.gmra.mxu1 %v7291_v43  ;;  %v5613_v53 = vcombine.low %v273_v39, %v281_v40 }
 0x131   :  { %1187 = vmatpush1.bf16.msra.mxu0 %v5623_v41  ;;  %1228 = vmatpush1.bf16.msra.mxu1 %v5625_v42  ;;  %v5628_v41 = vcombine.high %v288_v29, %v296_v30  ;;  %v5630_v42 = vcombine.high %v289_v31, %v297_v32 }
 0x132   :  { %1188 = vmatprep.subr.bf16.mxu0 %v5608_v48  ;;  %1229 = vmatprep.subr.bf16.mxu1 %v5610_v49  ;;  %v257_v48 = vld [vmem:[#allocation6 + $0x2b8] sm:$0xff]  ;;  %v5612_v49 = vcombine.high %v272_v37, %v280_v38  ;;  %v6240_v37 = vld [vmem:[#allocation9 + $0x2e0] ss:$16 sps:$4 sm:$0xff]   ;;  %v6245_v38 = vld [vmem:[#allocation9 + $0xc4] ss:$16 sps:$4 sm:$0xff]  }
 0x133   :  { %1218 = vmatprep.mubr.bf16.mxu0 %v7223_v14  ;;  %1259 = vmatprep.mubr.bf16.mxu1 %v7223_v14 }
 0x135   :  { %1189 = vmatpush1.bf16.msra.mxu0 %v5607_v50  ;;  %1230 = vmatpush1.bf16.msra.mxu1 %v5609_v51  ;;  %v5614_v50 = vcombine.high %v273_v39, %v281_v40  ;;  %v265_v51 = vld [vmem:[#allocation6 + $0x2f8] sm:$0xff]  ;;  %v6248_v39 = vld [vmem:[#allocation9 + $0x2c4] ss:$16 sps:$4 sm:$0xff]   ;;  %v6243_v40 = vld [vmem:[#allocation9 + $0xc0] ss:$16 sps:$4 sm:$0xff]  }
 0x136   :  { %1190 = vmatprep.subr.bf16.mxu0 %v5592_v56  ;;  %1231 = vmatprep.subr.bf16.mxu1 %v5594_v57  ;;  %v241_v56 = vld [vmem:[#allocation6 + $0x238] sm:$0xff]  ;;  %v5597_v61 = vcombine.low %v257_v48, %v265_v51 }
 0x137   :  { %v249_v57 = vld [vmem:[#allocation6 + $0x278] sm:$0xff] }
 0x138   :  { %v5581_v5 = vcombine.low %v241_v56, %v249_v57 }
 0x139   :  { %1191 = vmatpush1.bf16.msra.mxu0 %v5591_v58  ;;  %1232 = vmatpush1.bf16.msra.mxu1 %v5593_v59  ;;  %v5596_v58 = vcombine.high %v256_v46, %v264_v47  ;;  %v5598_v59 = vcombine.high %v257_v48, %v265_v51  ;;  %v6252_v46 = vld [vmem:[#allocation9 + $0x2a0] ss:$16 sps:$4 sm:$0xff]   ;;  %v6257_v47 = vld [vmem:[#allocation9 + $0x84] ss:$16 sps:$4 sm:$0xff]  }
 0x13a   :  { %1192 = vmatprep.subr.bf16.mxu0 %v5576_v0  ;;  %1233 = vmatprep.subr.bf16.mxu1 %v5578_v1  ;;  %v225_v0 = vld [vmem:[#allocation6 + $0x1b8] sm:$0xff]  ;;  %v6260_v48 = vld [vmem:[#allocation9 + $0x284] ss:$16 sps:$4 sm:$0xff]  }
 0x13b   :  { %v233_v1 = vld [vmem:[#allocation6 + $0x1f8] sm:$0xff]  ;;  %v6266_v51 = vld [vmem:[#allocation9 + $0x264] ss:$16 sps:$4 sm:$0xff]  }
 0x13c   :  { %v5565_v12 = vcombine.low %v225_v0, %v233_v1 }
 0x13d   :  { %1193 = vmatpush1.bf16.msra.mxu0 %v5575_v2  ;;  %1234 = vmatpush1.bf16.msra.mxu1 %v5577_v3  ;;  %v5580_v2 = vcombine.high %v240_v54, %v248_v55  ;;  %v5582_v3 = vcombine.high %v241_v56, %v249_v57  ;;  %v6269_v54 = vld [vmem:[#allocation9 + $0x44] ss:$16 sps:$4 sm:$0xff]   ;;  %v6267_v56 = vld [vmem:[#allocation9 + $0x40] ss:$16 sps:$4 sm:$0xff]  }
 0x13e   :  { %1194 = vmatprep.subr.bf16.mxu0 %v5560_v8  ;;  %1235 = vmatprep.subr.bf16.mxu1 %v5562_v9  ;;  %v5566_v8 = vcombine.high %v225_v0, %v233_v1  ;;  %v209_v9 = vld [vmem:[#allocation6 + $0x138] sm:$0xff]  ;;  %v6272_v55 = vld [vmem:[#allocation9 + $0x244] ss:$16 sps:$4 sm:$0xff]   ;;  %v6270_v57 = vld [vmem:[#allocation9 + $0x240] ss:$16 sps:$4 sm:$0xff]  }
 0x13f   :  { %v6279_v0 = vld [vmem:[#allocation9] ss:$16 sps:$4 sm:$0xff]  }
 0x140   :  { %v6282_v1 = vld [vmem:[#allocation9 + $0x200] ss:$16 sps:$4 sm:$0xff]  }
 0x141   :  { %1195 = vmatpush1.bf16.msra.mxu0 %v5559_v10  ;;  %1236 = vmatpush1.bf16.msra.mxu1 %v5561_v11  ;;  %v217_v10 = vld [vmem:[#allocation6 + $0x178] sm:$0xff]  ;;  %v5563_v11 = vcombine.low %v224_v62, %v232_v63 }
 0x142   :  { %1196 = vmatprep.subr.bf16.mxu0 %v5544_v17  ;;  %1237 = vmatprep.subr.bf16.mxu1 %v5546_v18  ;;  %v5550_v15 = vcombine.high %v209_v9, %v217_v10  ;;  %v200_v17 = vld [vmem:[#allocation6 + $0xf0] sm:$0xff]  ;;  %v193_v18 = vld [vmem:[#allocation6 + $0xb8] sm:$0xff]  ;;  %v5549_v21 = vcombine.low %v209_v9, %v217_v10 }
 0x143   :  { %v5532_v22 = vcombine.high %v192_v16, %v200_v17  ;;  %v6299_v9 = vld [vmem:[#allocation9 + $0x1a4] ss:$16 sps:$4 sm:$0xff]  }
 0x144   :  { %v6302_v10 = vld [vmem:[#allocation9 + $0x3a4] ss:$16 sps:$4 sm:$0xff]  }
 0x145   :  { %1197 = vmatpush1.bf16.msra.mxu0 %v5543_v19  ;;  %1238 = vmatpush1.bf16.msra.mxu1 %v5545_v20  ;;  %v201_v19 = vld [vmem:[#allocation6 + $0xf8] sm:$0xff]  ;;  %v5547_v20 = vcombine.low %v208_v6, %v216_v7  ;;  %v6293_v6 = vld [vmem:[#allocation9 + $0x1c4] ss:$16 sps:$4 sm:$0xff]  }
 0x146   :  { %1198 = vmatprep.subr.bf16.mxu0 %v5528_v25  ;;  %1239 = vmatprep.subr.bf16.mxu1 %v5530_v26  ;;  %v5534_v23 = vcombine.high %v193_v18, %v201_v19  ;;  %v184_v25 = vld [vmem:[#allocation6 + $0x70] sm:$0xff]  ;;  %v177_v26 = vld [vmem:[#allocation6 + $0x38] sm:$0xff]  ;;  %v5533_v29 = vcombine.low %v193_v18, %v201_v19 }
 0x147   :  { %v5516_v30 = vcombine.high %v176_v24, %v184_v25  ;;  %v5515_v32 = vcombine.low %v176_v24, %v184_v25  ;;  %v6296_v7 = vld [vmem:[#allocation9 + $0x3c4] ss:$16 sps:$4 sm:$0xff]   ;;  %v6315_v24 = vld [vmem:[#allocation9 + $0x140] ss:$16 sps:$4 sm:$0xff]  }
 0x148   :  { %v6311_v18 = vld [vmem:[#allocation9 + $0x164] ss:$16 sps:$4 sm:$0xff]   ;;  %v6318_v25 = vld [vmem:[#allocation9 + $0x340] ss:$16 sps:$4 sm:$0xff]  }
 0x149   :  { %1199 = vmatpush1.bf16.msra.mxu0 %v5527_v27  ;;  %1240 = vmatpush1.bf16.msra.mxu1 %v5529_v28  ;;  %v185_v27 = vld [vmem:[#allocation6 + $0x78] sm:$0xff]  ;;  %v5531_v28 = vcombine.low %v192_v16, %v200_v17  ;;  %v6303_v16 = vld [vmem:[#allocation9 + $0x180] ss:$16 sps:$4 sm:$0xff]   ;;  %v6314_v19 = vld [vmem:[#allocation9 + $0x364] ss:$16 sps:$4 sm:$0xff]  }
 0x14a   :  { %1200 = vmatprep.subr.bf16.mxu0 %v5512_v33  ;;  %1241 = vmatprep.subr.bf16.mxu1 %v5514_v34  ;;  %v5518_v31 = vcombine.high %v177_v26, %v185_v27  ;;  %v5517_v33 = vcombine.low %v177_v26, %v185_v27  ;;  %v6239_v34 = vld [vmem:[#allocation9 + $0xe4] ss:$16 sps:$4 sm:$0xff]   ;;  %v6306_v17 = vld [vmem:[#allocation9 + $0x380] ss:$16 sps:$4 sm:$0xff]  }
 0x14b   :  { %v6323_v26 = vld [vmem:[#allocation9 + $0x124] ss:$16 sps:$4 sm:$0xff]  }
 0x14c   :  { %v6326_v27 = vld [vmem:[#allocation9 + $0x324] ss:$16 sps:$4 sm:$0xff]  }
 0x14d   :  { %1201 = vmatpush1.bf16.msra.mxu0 %v5511_v35  ;;  %1242 = vmatpush1.bf16.msra.mxu1 %v5513_v36  ;;  %v6242_v35 = vld [vmem:[#allocation9 + $0x2e4] ss:$16 sps:$4 sm:$0xff]   ;;  %v6237_v36 = vld [vmem:[#allocation9 + $0xe0] ss:$16 sps:$4 sm:$0xff]  }
 0x14e   :  { %1268 = vmatprep.subr.bf16.mxu0 %v5628_v41  ;;  %1309 = vmatprep.subr.bf16.mxu1 %v5630_v42  ;;  %v6246_v41 = vld [vmem:[#allocation9 + $0x2c0] ss:$16 sps:$4 sm:$0xff]   ;;  %v6251_v42 = vld [vmem:[#allocation9 + $0xa4] ss:$16 sps:$4 sm:$0xff]  }
 0x150   :  { %1219 = vmatmul.mubr.bf16.vlgmr.msra.gmra.mxu0 %v7291_v43  ;;  %1260 = vmatmul.mubr.bf16.vlgmr.msra.gmra.mxu1 %v7291_v43 }
 0x151   :  { %1269 = vmatpush1.bf16.msra.mxu0 %v5627_v44  ;;  %1310 = vmatpush1.bf16.msra.mxu1 %v5629_v45  ;;  %v6254_v44 = vld [vmem:[#allocation9 + $0x2a4] ss:$16 sps:$4 sm:$0xff]   ;;  %v6249_v45 = vld [vmem:[#allocation9 + $0xa0] ss:$16 sps:$4 sm:$0xff]  }
 0x152   :  { %1270 = vmatprep.subr.bf16.mxu0 %v5612_v49  ;;  %1311 = vmatprep.subr.bf16.mxu1 %v5614_v50  ;;  %v6255_v49 = vld [vmem:[#allocation9 + $0x80] ss:$16 sps:$4 sm:$0xff]   ;;  %v6263_v50 = vld [vmem:[#allocation9 + $0x64] ss:$16 sps:$4 sm:$0xff]  }
 0x153   :  { %1300 = vmatprep.mubr.bf16.mxu0 %v7223_v14  ;;  %1341 = vmatprep.mubr.bf16.mxu1 %v7223_v14  ;;  %v5564_v14 = vcombine.high %v224_v62, %v232_v63  ;;  %v6281_v62 = vld [vmem:[#allocation9 + $0x4] ss:$16 sps:$4 sm:$0xff]  }
 0x154   :  { %v6284_v63 = vld [vmem:[#allocation9 + $0x204] ss:$16 sps:$4 sm:$0xff]  }
 0x155   :  { %1271 = vmatpush1.bf16.msra.mxu0 %v5611_v52  ;;  %1312 = vmatpush1.bf16.msra.mxu1 %v5613_v53  ;;  %v6261_v52 = vld [vmem:[#allocation9 + $0x60] ss:$16 sps:$4 sm:$0xff]  }
 0x156   :  { %1272 = vmatprep.subr.bf16.mxu0 %v5596_v58  ;;  %1313 = vmatprep.subr.bf16.mxu1 %v5598_v59  ;;  %v6264_v53 = vld [vmem:[#allocation9 + $0x260] ss:$16 sps:$4 sm:$0xff]   ;;  %v6275_v58 = vld [vmem:[#allocation9 + $0x24] ss:$16 sps:$4 sm:$0xff]  }
 0x157   :  { %v6278_v59 = vld [vmem:[#allocation9 + $0x224] ss:$16 sps:$4 sm:$0xff]  }
 0x159   :  { %1273 = vmatpush1.bf16.msra.mxu0 %v5595_v60  ;;  %1314 = vmatpush1.bf16.msra.mxu1 %v5597_v61  ;;  %v6273_v60 = vld [vmem:[#allocation9 + $0x20] ss:$16 sps:$4 sm:$0xff]  }
 0x15a   :  { %1274 = vmatprep.subr.bf16.mxu0 %v5580_v2  ;;  %1315 = vmatprep.subr.bf16.mxu1 %v5582_v3  ;;  %v6276_v61 = vld [vmem:[#allocation9 + $0x220] ss:$16 sps:$4 sm:$0xff]   ;;  %v6287_v2 = vld [vmem:[#allocation9 + $0x1e4] ss:$16 sps:$4 sm:$0xff]  }
 0x15b   :  { %v6290_v3 = vld [vmem:[#allocation9 + $0x3e4] ss:$16 sps:$4 sm:$0xff]  }
 0x15d   :  { %1275 = vmatpush1.bf16.msra.mxu0 %v5579_v4  ;;  %1316 = vmatpush1.bf16.msra.mxu1 %v5581_v5  ;;  %v6285_v4 = vld [vmem:[#allocation9 + $0x1e0] ss:$16 sps:$4 sm:$0xff]  }
 0x15e   :  { %1276 = vmatprep.subr.bf16.mxu0 %v5564_v14  ;;  %1317 = vmatprep.subr.bf16.mxu1 %v5566_v8  ;;  %v6288_v5 = vld [vmem:[#allocation9 + $0x3e0] ss:$16 sps:$4 sm:$0xff]  }
 0x15f   :  { %v6291_v14 = vld [vmem:[#allocation9 + $0x1c0] ss:$16 sps:$4 sm:$0xff]  }
 0x160   :  { %v6294_v8 = vld [vmem:[#allocation9 + $0x3c0] ss:$16 sps:$4 sm:$0xff]  }
 0x161   :  { %1277 = vmatpush1.bf16.msra.mxu0 %v5563_v11  ;;  %1318 = vmatpush1.bf16.msra.mxu1 %v5565_v12  ;;  %v6297_v11 = vld [vmem:[#allocation9 + $0x1a0] ss:$16 sps:$4 sm:$0xff]  }
 0x162   :  { %1278 = vmatprep.subr.bf16.mxu0 %v5548_v13  ;;  %1319 = vmatprep.subr.bf16.mxu1 %v5550_v15  ;;  %v6300_v12 = vld [vmem:[#allocation9 + $0x3a0] ss:$16 sps:$4 sm:$0xff]   ;;  %v6305_v13 = vld [vmem:[#allocation9 + $0x184] ss:$16 sps:$4 sm:$0xff]  }
 0x163   :  { %v6308_v15 = vld [vmem:[#allocation9 + $0x384] ss:$16 sps:$4 sm:$0xff]  }
 0x165   :  { %1279 = vmatpush1.bf16.msra.mxu0 %v5547_v20  ;;  %1320 = vmatpush1.bf16.msra.mxu1 %v5549_v21  ;;  %v6309_v20 = vld [vmem:[#allocation9 + $0x160] ss:$16 sps:$4 sm:$0xff]  }
 0x166   :  { %1280 = vmatprep.subr.bf16.mxu0 %v5532_v22  ;;  %1321 = vmatprep.subr.bf16.mxu1 %v5534_v23  ;;  %v6312_v21 = vld [vmem:[#allocation9 + $0x360] ss:$16 sps:$4 sm:$0xff]   ;;  %v6317_v22 = vld [vmem:[#allocation9 + $0x144] ss:$16 sps:$4 sm:$0xff]  }
 0x167   :  { %v6320_v23 = vld [vmem:[#allocation9 + $0x344] ss:$16 sps:$4 sm:$0xff]  }
 0x169   :  { %1281 = vmatpush1.bf16.msra.mxu0 %v5531_v28  ;;  %1322 = vmatpush1.bf16.msra.mxu1 %v5533_v29  ;;  %v6321_v28 = vld [vmem:[#allocation9 + $0x120] ss:$16 sps:$4 sm:$0xff]  }
 0x16a   :  { %1282 = vmatprep.subr.bf16.mxu0 %v5516_v30  ;;  %1323 = vmatprep.subr.bf16.mxu1 %v5518_v31  ;;  %v6324_v29 = vld [vmem:[#allocation9 + $0x320] ss:$16 sps:$4 sm:$0xff]   ;;  %v6329_v30 = vld [vmem:[#allocation9 + $0x104] ss:$16 sps:$4 sm:$0xff]  }
 0x16b   :  { %v6332_v31 = vld [vmem:[#allocation9 + $0x304] ss:$16 sps:$4 sm:$0xff]  }
 0x16d   :  { %1283 = vmatpush1.bf16.msra.mxu0 %v5515_v32  ;;  %1324 = vmatpush1.bf16.msra.mxu1 %v5517_v33  ;;  %v6327_v32 = vld [vmem:[#allocation9 + $0x100] ss:$16 sps:$4 sm:$0xff]  }
 0x16e   :  { %4476 = vmatprep.subr.bf16.mxu0 %v6239_v34  ;;  %4517 = vmatprep.subr.bf16.mxu1 %v6242_v35  ;;  %v6330_v33 = vld [vmem:[#allocation9 + $0x300] ss:$16 sps:$4 sm:$0xff]   ;;  %v6335_v34 = vld [vmem:[#allocation9 + $0x4e4] ss:$16 sps:$4 sm:$0xff]  }
 0x16f   :  { %v6338_v35 = vld [vmem:[#allocation9 + $0x6e4] ss:$16 sps:$4 sm:$0xff]  }
 0x170   :  { %1301 = vmatmul.mubr.bf16.vlgmr.msra.gmra.mxu0 %v7291_v43  ;;  %1342 = vmatmul.mubr.bf16.vlgmr.msra.gmra.mxu1 %v7291_v43  ;;  %v6258_v43 = vld [vmem:[#allocation9 + $0x280] ss:$16 sps:$4 sm:$0xff]  }
 0x171   :  { %4477 = vmatpush1.bf16.msra.mxu0 %v6237_v36  ;;  %4518 = vmatpush1.bf16.msra.mxu1 %v6240_v37  ;;  %v302_v36 = vlaneseq }
 0x172   :  { %4478 = vmatprep.subr.bf16.mxu0 %v6245_v38  ;;  %4519 = vmatprep.subr.bf16.mxu1 %v6248_v39 }
 0x173   :  { %v7307_v37 = vshrl.u32 %v302_v36, 7  ;;  %v6380_v36 = vld [vmem:[#allocation9 + $0x604] ss:$16 sps:$4 sm:$0xff]  }
 0x175   :  { %4479 = vmatpush1.bf16.msra.mxu0 %v6243_v40  ;;  %4520 = vmatpush1.bf16.msra.mxu1 %v6246_v41  ;;  %v7310_v38 = vsub.s32 0, %v7307_v37  ;;  %v7313_v39 = vsub.s32 2, %v7307_v37  ;;  %v7315_v40 = vld [vmem:[#allocation8] sm:$0xff]  ;;  %v7318_v41 = vsub.s32 1, %v7307_v37 }
 0x176   :  { %4480 = vmatprep.subr.bf16.mxu0 %v6251_v42  ;;  %4521 = vmatprep.subr.bf16.mxu1 %v6254_v44  ;;  %v7321_v42 = vsub.s32 3, %v7307_v37 }
 0x177   :  { %v305_v44 = vrot.slane %v7315_v40, %v7310_v38 }
 0x179   :  { %4481 = vmatpush1.bf16.msra.mxu0 %v6249_v45  ;;  %4522 = vmatpush1.bf16.msra.mxu1 %v6252_v46  ;;  %v313_v45 = vrot.slane %v7315_v40, %v7313_v39  ;;  %v309_v46 = vrot.slane %v7315_v40, %v7318_v41 }
 0x17a   :  { %4482 = vmatprep.subr.bf16.mxu0 %v6257_v47  ;;  %4523 = vmatprep.subr.bf16.mxu1 %v6260_v48  ;;  %v317_v47 = vrot.slane %v7315_v40, %v7321_v42 }
 0x17d   :  { %4483 = vmatpush1.bf16.msra.mxu0 %v6255_v49  ;;  %4524 = vmatpush1.bf16.msra.mxu1 %v6258_v43 }
 0x17e   :  { %4484 = vmatprep.subr.bf16.mxu0 %v6263_v50  ;;  %4525 = vmatprep.subr.bf16.mxu1 %v6266_v51 }
 0x181   :  { %4485 = vmatpush1.bf16.msra.mxu0 %v6261_v52  ;;  %4526 = vmatpush1.bf16.msra.mxu1 %v6264_v53 }
 0x182   :  { %4486 = vmatprep.subr.bf16.mxu0 %v6269_v54  ;;  %4527 = vmatprep.subr.bf16.mxu1 %v6272_v55 }
 0x185   :  { %4487 = vmatpush1.bf16.msra.mxu0 %v6267_v56  ;;  %4528 = vmatpush1.bf16.msra.mxu1 %v6270_v57 }
 0x186   :  { %4488 = vmatprep.subr.bf16.mxu0 %v6275_v58  ;;  %4529 = vmatprep.subr.bf16.mxu1 %v6278_v59 }
 0x189   :  { %4489 = vmatpush1.bf16.msra.mxu0 %v6273_v60  ;;  %4530 = vmatpush1.bf16.msra.mxu1 %v6276_v61 }
 0x18a   :  { %4490 = vmatprep.subr.bf16.mxu0 %v6281_v62  ;;  %4531 = vmatprep.subr.bf16.mxu1 %v6284_v63 }
 0x18d   :  { %4491 = vmatpush1.bf16.msra.mxu0 %v6279_v0  ;;  %4532 = vmatpush1.bf16.msra.mxu1 %v6282_v1  ;;  %v6333_v1 = vld [vmem:[#allocation9 + $0x4e0] ss:$16 sps:$4 sm:$0xff]  }
 0x18e   :  { %4492 = vmatprep.subr.bf16.mxu0 %v6287_v2  ;;  %4533 = vmatprep.subr.bf16.mxu1 %v6290_v3  ;;  %v6336_v2 = vld [vmem:[#allocation9 + $0x6e0] ss:$16 sps:$4 sm:$0xff]  }
 0x191   :  { %4493 = vmatpush2.bf16.msra.mxu0 %v6285_v4  ;;  %4534 = vmatpush2.bf16.msra.mxu1 %v6288_v5  ;;  %v6341_v5 = vld [vmem:[#allocation9 + $0x4c4] ss:$16 sps:$4 sm:$0xff]  }
 0x192   :  { %4494 = vmatprep.subr.bf16.mxu0 %v6293_v6  ;;  %4535 = vmatprep.subr.bf16.mxu1 %v6296_v7  ;;  %v6344_v6 = vld [vmem:[#allocation9 + $0x6c4] ss:$16 sps:$4 sm:$0xff]   ;;  %v6339_v7 = vld [vmem:[#allocation9 + $0x4c0] ss:$16 sps:$4 sm:$0xff]  }
 0x195   :  { %4495 = vmatpush2.bf16.msra.mxu0 %v6291_v14  ;;  %4536 = vmatpush2.bf16.msra.mxu1 %v6294_v8  ;;  %v6342_v14 = vld [vmem:[#allocation9 + $0x6c0] ss:$16 sps:$4 sm:$0xff]   ;;  %v6347_v8 = vld [vmem:[#allocation9 + $0x4a4] ss:$16 sps:$4 sm:$0xff]  }
 0x196   :  { %4496 = vmatprep.subr.bf16.mxu0 %v6299_v9  ;;  %4537 = vmatprep.subr.bf16.mxu1 %v6302_v10  ;;  %v6350_v9 = vld [vmem:[#allocation9 + $0x6a4] ss:$16 sps:$4 sm:$0xff]   ;;  %v6345_v10 = vld [vmem:[#allocation9 + $0x4a0] ss:$16 sps:$4 sm:$0xff]  }
 0x199   :  { %4497 = vmatpush2.bf16.msra.mxu0 %v6297_v11  ;;  %4538 = vmatpush2.bf16.msra.mxu1 %v6300_v12  ;;  %v6348_v11 = vld [vmem:[#allocation9 + $0x6a0] ss:$16 sps:$4 sm:$0xff]   ;;  %v6353_v12 = vld [vmem:[#allocation9 + $0x484] ss:$16 sps:$4 sm:$0xff]  }
 0x19a   :  { %4498 = vmatprep.subr.bf16.mxu0 %v6305_v13  ;;  %4539 = vmatprep.subr.bf16.mxu1 %v6308_v15  ;;  %v6356_v13 = vld [vmem:[#allocation9 + $0x684] ss:$16 sps:$4 sm:$0xff]   ;;  %v6351_v15 = vld [vmem:[#allocation9 + $0x480] ss:$16 sps:$4 sm:$0xff]  }
 0x19d   :  { %4499 = vmatpush2.bf16.msra.mxu0 %v6303_v16  ;;  %4540 = vmatpush2.bf16.msra.mxu1 %v6306_v17  ;;  %v6354_v16 = vld [vmem:[#allocation9 + $0x680] ss:$16 sps:$4 sm:$0xff]   ;;  %v6359_v17 = vld [vmem:[#allocation9 + $0x464] ss:$16 sps:$4 sm:$0xff]  }
 0x19e   :  { %4500 = vmatprep.subr.bf16.mxu0 %v6311_v18  ;;  %4541 = vmatprep.subr.bf16.mxu1 %v6314_v19  ;;  %v6362_v18 = vld [vmem:[#allocation9 + $0x664] ss:$16 sps:$4 sm:$0xff]   ;;  %v6357_v19 = vld [vmem:[#allocation9 + $0x460] ss:$16 sps:$4 sm:$0xff]  }
 0x1a1   :  { %4501 = vmatpush2.bf16.msra.mxu0 %v6309_v20  ;;  %4542 = vmatpush2.bf16.msra.mxu1 %v6312_v21  ;;  %v6360_v20 = vld [vmem:[#allocation9 + $0x660] ss:$16 sps:$4 sm:$0xff]   ;;  %v6365_v21 = vld [vmem:[#allocation9 + $0x444] ss:$16 sps:$4 sm:$0xff]  }
 0x1a2   :  { %4502 = vmatprep.subr.bf16.mxu0 %v6317_v22  ;;  %4543 = vmatprep.subr.bf16.mxu1 %v6320_v23  ;;  %v6368_v22 = vld [vmem:[#allocation9 + $0x644] ss:$16 sps:$4 sm:$0xff]   ;;  %v6363_v23 = vld [vmem:[#allocation9 + $0x440] ss:$16 sps:$4 sm:$0xff]  }
 0x1a5   :  { %4503 = vmatpush2.bf16.msra.mxu0 %v6315_v24  ;;  %4544 = vmatpush2.bf16.msra.mxu1 %v6318_v25  ;;  %v6366_v24 = vld [vmem:[#allocation9 + $0x640] ss:$16 sps:$4 sm:$0xff]   ;;  %v324_v25 = vsub.s32 5, %v7307_v37 }
 0x1a6   :  { %4504 = vmatprep.subr.bf16.mxu0 %v6323_v26  ;;  %4545 = vmatprep.subr.bf16.mxu1 %v6326_v27  ;;  %v332_v26 = vsub.s32 7, %v7307_v37  ;;  %v6371_v27 = vld [vmem:[#allocation9 + $0x424] ss:$16 sps:$4 sm:$0xff]  }
 0x1a9   :  { %4505 = vmatpush2.bf16.msra.mxu0 %v6321_v28  ;;  %4546 = vmatpush2.bf16.msra.mxu1 %v6324_v29  ;;  %v6374_v28 = vld [vmem:[#allocation9 + $0x624] ss:$16 sps:$4 sm:$0xff]   ;;  %v325_v29 = vrot.slane %v7315_v40, %v324_v25 }
 0x1aa   :  { %4506 = vmatprep.subr.bf16.mxu0 %v6329_v30  ;;  %4547 = vmatprep.subr.bf16.mxu1 %v6332_v31  ;;  %v333_v30 = vrot.slane %v7315_v40, %v332_v26  ;;  %v6369_v31 = vld [vmem:[#allocation9 + $0x420] ss:$16 sps:$4 sm:$0xff]  }
 0x1ad   :  { %4507 = vmatpush2.bf16.msra.mxu0 %v6327_v32  ;;  %4548 = vmatpush2.bf16.msra.mxu1 %v6330_v33  ;;  %v6372_v32 = vld [vmem:[#allocation9 + $0x620] ss:$16 sps:$4 sm:$0xff]  }
 0x1ae   :  { %4558 = vmatprep.subr.bf16.mxu0 %v6335_v34  ;;  %4599 = vmatprep.subr.bf16.mxu1 %v6338_v35  ;;  %v6377_v35 = vld [vmem:[#allocation9 + $0x404] ss:$16 sps:$4 sm:$0xff]  }
 0x1d0   :  { %v1056_v48 = vpop.f32.mrf.mxu0  ;;  %v1097_v49 = vpop.f32.mrf.mxu1 }
 0x1d1   :  { %v1057_v43 = vadd.f32 %v1056_v48, %v305_v44  ;;  %v1098_v50 = vadd.f32 %v1097_v49, %v313_v45  ;;  %v6375_v48 = vld [vmem:[#allocation9 + $0x400] ss:$16 sps:$4 sm:$0xff]  }
 0x1d2   :  { %v1058_v51 = vpop.f32.mrf.mxu0  ;;  %v1099_v52 = vpop.f32.mrf.mxu1  ;;  %v6378_v49 = vld [vmem:[#allocation9 + $0x600] ss:$16 sps:$4 sm:$0xff]  }
 0x1d3   :  { %v1059_v53 = vadd.f32 %v1058_v51, %v309_v46  ;;  %v1100_v54 = vadd.f32 %v1099_v52, %v317_v47  ;;  %v1350_v55 = vmax.f32 %v1057_v43, 0.0  ;;  %v1352_v56 = vmax.f32 %v1098_v50, 0.0  ;;  %v6383_v51 = vld [vmem:[#allocation9 + $0x5e4] ss:$16 sps:$4 sm:$0xff]  }
 0x1d4   :  { %v1060_v57 = vpop.f32.mrf.mxu0  ;;  %v1101_v58 = vpop.f32.mrf.mxu1  ;;  %v6386_v52 = vld [vmem:[#allocation9 + $0x7e4] ss:$16 sps:$4 sm:$0xff]  }
 0x1d5   :  { %v1351_v59 = vmax.f32 %v1059_v53, 0.0  ;;  %v1353_v60 = vmax.f32 %v1100_v54, 0.0  ;;  %v7335_v3 = vpack.c.bf16 %v1350_v55, %v1350_v55  ;;  %v7337_v4 = vpack.c.bf16 %v1352_v56, %v1352_v56 }
 0x1d6   :  { %v1061_v61 = vpop.f32.mrf.mxu0  ;;  %v1102_v62 = vpop.f32.mrf.mxu1 }
 0x1d7   :  { %v7331_v63 = vpack.c.bf16 %v1351_v59, %v1351_v59  ;;  %v7333_v0 = vpack.c.bf16 %v1353_v60, %v1353_v60  ;;  %v6381_v59 = vld [vmem:[#allocation9 + $0x5e0] ss:$16 sps:$4 sm:$0xff]   ;;  %v6389_v61 = vld [vmem:[#allocation9 + $0x5c4] ss:$16 sps:$4 sm:$0xff]  }
 0x1d8   :  { %v6384_v60 = vld [vmem:[#allocation9 + $0x7e0] ss:$16 sps:$4 sm:$0xff]   ;;  %v6392_v62 = vld [vmem:[#allocation9 + $0x7c4] ss:$16 sps:$4 sm:$0xff]  }
 0x1d9   :  { %4508 = vmatprep.mubr.bf16.mxu0 %v7331_v63  ;;  %4549 = vmatprep.mubr.bf16.mxu1 %v7333_v0 }
 0x1da   :  { %4509 = vmatmul.mubr.bf16.vlgmr.msra.gmra.mxu0 %v7335_v3  ;;  %4550 = vmatmul.mubr.bf16.vlgmr.msra.gmra.mxu1 %v7337_v4 }
 0x1db   :  { %4559 = vmatpush1.bf16.msra.mxu0 %v6333_v1  ;;  %4600 = vmatpush1.bf16.msra.mxu1 %v6336_v2  ;;  %v6387_v1 = vld [vmem:[#allocation9 + $0x5c0] ss:$16 sps:$4 sm:$0xff]  }
 0x1dc   :  { %4560 = vmatprep.subr.bf16.mxu0 %v6341_v5  ;;  %4601 = vmatprep.subr.bf16.mxu1 %v6344_v6  ;;  %v6390_v2 = vld [vmem:[#allocation9 + $0x7c0] ss:$16 sps:$4 sm:$0xff]   ;;  %v6395_v5 = vld [vmem:[#allocation9 + $0x5a4] ss:$16 sps:$4 sm:$0xff]  }
 0x1dd   :  { %v6398_v6 = vld [vmem:[#allocation9 + $0x7a4] ss:$16 sps:$4 sm:$0xff]  }
 0x1df   :  { %4561 = vmatpush1.bf16.msra.mxu0 %v6339_v7  ;;  %4602 = vmatpush1.bf16.msra.mxu1 %v6342_v14  ;;  %v6393_v7 = vld [vmem:[#allocation9 + $0x5a0] ss:$16 sps:$4 sm:$0xff]  }
 0x1e0   :  { %4562 = vmatprep.subr.bf16.mxu0 %v6347_v8  ;;  %4603 = vmatprep.subr.bf16.mxu1 %v6350_v9  ;;  %v6396_v14 = vld [vmem:[#allocation9 + $0x7a0] ss:$16 sps:$4 sm:$0xff]   ;;  %v6401_v8 = vld [vmem:[#allocation9 + $0x584] ss:$16 sps:$4 sm:$0xff]  }
 0x1e1   :  { %v6404_v9 = vld [vmem:[#allocation9 + $0x784] ss:$16 sps:$4 sm:$0xff]  }
 0x1e3   :  { %4563 = vmatpush1.bf16.msra.mxu0 %v6345_v10  ;;  %4604 = vmatpush1.bf16.msra.mxu1 %v6348_v11  ;;  %v6399_v10 = vld [vmem:[#allocation9 + $0x580] ss:$16 sps:$4 sm:$0xff]  }
 0x1e4   :  { %4564 = vmatprep.subr.bf16.mxu0 %v6353_v12  ;;  %4605 = vmatprep.subr.bf16.mxu1 %v6356_v13  ;;  %v6402_v11 = vld [vmem:[#allocation9 + $0x780] ss:$16 sps:$4 sm:$0xff]   ;;  %v6407_v12 = vld [vmem:[#allocation9 + $0x564] ss:$16 sps:$4 sm:$0xff]  }
 0x1e5   :  { %v6410_v13 = vld [vmem:[#allocation9 + $0x764] ss:$16 sps:$4 sm:$0xff]  }
 0x1e7   :  { %4565 = vmatpush1.bf16.msra.mxu0 %v6351_v15  ;;  %4606 = vmatpush1.bf16.msra.mxu1 %v6354_v16  ;;  %v6405_v15 = vld [vmem:[#allocation9 + $0x560] ss:$16 sps:$4 sm:$0xff]  }
 0x1e8   :  { %4566 = vmatprep.subr.bf16.mxu0 %v6359_v17  ;;  %4607 = vmatprep.subr.bf16.mxu1 %v6362_v18  ;;  %v6408_v16 = vld [vmem:[#allocation9 + $0x760] ss:$16 sps:$4 sm:$0xff]   ;;  %v320_v17 = vsub.s32 4, %v7307_v37  ;;  %v328_v18 = vsub.s32 6, %v7307_v37 }
 0x1e9   :  { %v6522_v37 = vld [vmem:[#allocation9 + $0xb00] ss:$16 sps:$4 sm:$0xff]  }
 0x1eb   :  { %4567 = vmatpush1.bf16.msra.mxu0 %v6357_v19  ;;  %4608 = vmatpush1.bf16.msra.mxu1 %v6360_v20  ;;  %v6413_v19 = vld [vmem:[#allocation9 + $0x544] ss:$16 sps:$4 sm:$0xff]  }
 0x1ec   :  { %4568 = vmatprep.subr.bf16.mxu0 %v6365_v21  ;;  %4609 = vmatprep.subr.bf16.mxu1 %v6368_v22  ;;  %v6416_v20 = vld [vmem:[#allocation9 + $0x744] ss:$16 sps:$4 sm:$0xff]   ;;  %v7363_v21 = vld [vmem:[#allocation8 + $0x8] sm:$0xff]  ;;  %v6411_v22 = vld [vmem:[#allocation9 + $0x540] ss:$16 sps:$4 sm:$0xff]  }
 0x1ef   :  { %4569 = vmatpush1.bf16.msra.mxu0 %v6363_v23  ;;  %4610 = vmatpush1.bf16.msra.mxu1 %v6366_v24  ;;  %v6414_v23 = vld [vmem:[#allocation9 + $0x740] ss:$16 sps:$4 sm:$0xff]   ;;  %v321_v24 = vrot.slane %v7315_v40, %v320_v17 }
 0x1f0   :  { %v7351_v33 = vpop.f32.mrf.mxu0  ;;  %v7353_v34 = vpop.f32.mrf.mxu1  ;;  %4570 = vmatprep.subr.bf16.mxu0 %v6371_v27  ;;  %4611 = vmatprep.subr.bf16.mxu1 %v6374_v28  ;;  %v329_v27 = vrot.slane %v7315_v40, %v328_v18  ;;  %v6419_v28 = vld [vmem:[#allocation9 + $0x524] ss:$16 sps:$4 sm:$0xff]  }
 0x1f2   :  { %v1140_v44 = vpop.f32.mrf.mxu0  ;;  %v1181_v45 = vpop.f32.mrf.mxu1  ;;  %v1180_v40 = vadd.f32 %v7353_v34, %v329_v27  ;;  %v6450_v27 = vld [vmem:[#allocation9 + $0xa80] ss:$16 sps:$4 sm:$0xff]  }
 0x1f3   :  { %v1141_v46 = vadd.f32 %v1140_v44, %v325_v29  ;;  %v1182_v47 = vadd.f32 %v1181_v45, %v333_v30  ;;  %4571 = vmatpush1.bf16.msra.mxu0 %v6369_v31  ;;  %4612 = vmatpush1.bf16.msra.mxu1 %v6372_v32  ;;  %v6422_v29 = vld [vmem:[#allocation9 + $0x724] ss:$16 sps:$4 sm:$0xff]   ;;  %v345_v30 = vrot.slane %v7363_v21, %v7313_v39 }
 0x1f4   :  { %v1142_v43 = vpop.f32.mrf.mxu0  ;;  %v1183_v50 = vpop.f32.mrf.mxu1  ;;  %4572 = vmatprep.subr.bf16.mxu0 %v6377_v35  ;;  %4613 = vmatprep.subr.bf16.mxu1 %v6380_v36  ;;  %v341_v31 = vrot.slane %v7363_v21, %v7318_v41  ;;  %v349_v32 = vrot.slane %v7363_v21, %v7321_v42  ;;  %v6417_v35 = vld [vmem:[#allocation9 + $0x520] ss:$16 sps:$4 sm:$0xff]   ;;  %v1139_v44 = vadd.f32 %v7351_v33, %v321_v24 }
 0x1f5   :  { %v1355_v53 = vmax.f32 %v1141_v46, 0.0  ;;  %v1357_v54 = vmax.f32 %v1182_v47, 0.0  ;;  %v6420_v36 = vld [vmem:[#allocation9 + $0x720] ss:$16 sps:$4 sm:$0xff]   ;;  %v6425_v47 = vld [vmem:[#allocation9 + $0x504] ss:$16 sps:$4 sm:$0xff]  }
 0x1f6   :  { %v1143_v55 = vpop.f32.mrf.mxu0  ;;  %v1184_v56 = vpop.f32.mrf.mxu1  ;;  %v1354_v33 = vmax.f32 %v1139_v44, 0.0  ;;  %v6447_v24 = vld [vmem:[#allocation9 + $0x880] ss:$16 sps:$4 sm:$0xff]  }
 0x1f7   :  { %v7355_v57 = vpack.c.bf16 %v1355_v53, %v1355_v53  ;;  %v7357_v58 = vpack.c.bf16 %v1357_v54, %v1357_v54  ;;  %4573 = vmatpush1.bf16.msra.mxu0 %v6375_v48  ;;  %4614 = vmatpush1.bf16.msra.mxu1 %v6378_v49  ;;  %v6428_v48 = vld [vmem:[#allocation9 + $0x704] ss:$16 sps:$4 sm:$0xff]   ;;  %v6423_v53 = vld [vmem:[#allocation9 + $0x500] ss:$16 sps:$4 sm:$0xff]   ;;  %v1356_v55 = vmax.f32 %v1180_v40, 0.0 }
 0x1f8   :  { %4574 = vmatprep.subr.bf16.mxu0 %v6383_v51  ;;  %4615 = vmatprep.subr.bf16.mxu1 %v6386_v52  ;;  %v6426_v54 = vld [vmem:[#allocation9 + $0x700] ss:$16 sps:$4 sm:$0xff]   ;;  %v6467_v40 = vld [vmem:[#allocation9 + $0x824] ss:$16 sps:$4 sm:$0xff]  }
 0x1f9   :  { %4590 = vmatprep.mubr.bf16.mxu0 %v7355_v57  ;;  %4631 = vmatprep.mubr.bf16.mxu1 %v7357_v58  ;;  %v6462_v44 = vld [vmem:[#allocation9 + $0xa40] ss:$16 sps:$4 sm:$0xff]  }
 0x1fb   :  { %4575 = vmatpush2.bf16.msra.mxu0 %v6381_v59  ;;  %4616 = vmatpush2.bf16.msra.mxu1 %v6384_v60  ;;  %v6431_v59 = vld [vmem:[#allocation9 + $0x8e4] ss:$16 sps:$4 sm:$0xff]  }
 0x1fc   :  { %4576 = vmatprep.subr.bf16.mxu0 %v6389_v61  ;;  %4617 = vmatprep.subr.bf16.mxu1 %v6392_v62  ;;  %v6434_v60 = vld [vmem:[#allocation9 + $0xae4] ss:$16 sps:$4 sm:$0xff]  }
 0x1ff   :  { %4577 = vmatpush2.bf16.msra.mxu0 %v6387_v1  ;;  %4618 = vmatpush2.bf16.msra.mxu1 %v6390_v2 }
 0x200   :  { %4578 = vmatprep.subr.bf16.mxu0 %v6395_v5  ;;  %4619 = vmatprep.subr.bf16.mxu1 %v6398_v6  ;;  %v6429_v5 = vld [vmem:[#allocation9 + $0x8e0] ss:$16 sps:$4 sm:$0xff]   ;;  %v7383_v6 = vpack.c.bf16 %v1354_v33, %v1354_v33 }
 0x203   :  { %4579 = vmatpush2.bf16.msra.mxu0 %v6393_v7  ;;  %4620 = vmatpush2.bf16.msra.mxu1 %v6396_v14  ;;  %v7385_v7 = vpack.c.bf16 %v1356_v55, %v1356_v55  ;;  %v6432_v14 = vld [vmem:[#allocation9 + $0xae0] ss:$16 sps:$4 sm:$0xff]   ;;  %v6476_v55 = vld [vmem:[#allocation9 + $0xa04] ss:$16 sps:$4 sm:$0xff]  }
 0x204   :  { %4580 = vmatprep.subr.bf16.mxu0 %v6401_v8  ;;  %4621 = vmatprep.subr.bf16.mxu1 %v6404_v9  ;;  %v6437_v9 = vld [vmem:[#allocation9 + $0x8c4] ss:$16 sps:$4 sm:$0xff]  }
 0x207   :  { %4581 = vmatpush2.bf16.msra.mxu0 %v6399_v10  ;;  %4622 = vmatpush2.bf16.msra.mxu1 %v6402_v11  ;;  %v6440_v10 = vld [vmem:[#allocation9 + $0xac4] ss:$16 sps:$4 sm:$0xff]  }
 0x208   :  { %4582 = vmatprep.subr.bf16.mxu0 %v6407_v12  ;;  %4623 = vmatprep.subr.bf16.mxu1 %v6410_v13  ;;  %v6435_v12 = vld [vmem:[#allocation9 + $0x8c0] ss:$16 sps:$4 sm:$0xff]  }
 0x209   :  { %v6438_v13 = vld [vmem:[#allocation9 + $0xac0] ss:$16 sps:$4 sm:$0xff]  }
 0x20b   :  { %4583 = vmatpush2.bf16.msra.mxu0 %v6405_v15  ;;  %4624 = vmatpush2.bf16.msra.mxu1 %v6408_v16  ;;  %v6443_v15 = vld [vmem:[#allocation9 + $0x8a4] ss:$16 sps:$4 sm:$0xff]  }
 0x20c   :  { %4584 = vmatprep.subr.bf16.mxu0 %v6413_v19  ;;  %4625 = vmatprep.subr.bf16.mxu1 %v6416_v20  ;;  %v6446_v16 = vld [vmem:[#allocation9 + $0xaa4] ss:$16 sps:$4 sm:$0xff]   ;;  %v6441_v19 = vld [vmem:[#allocation9 + $0x8a0] ss:$16 sps:$4 sm:$0xff]  }
 0x20d   :  { %v6444_v20 = vld [vmem:[#allocation9 + $0xaa0] ss:$16 sps:$4 sm:$0xff]  }
 0x20f   :  { %4585 = vmatpush2.bf16.msra.mxu0 %v6411_v22  ;;  %4626 = vmatpush2.bf16.msra.mxu1 %v6414_v23  ;;  %v6449_v22 = vld [vmem:[#allocation9 + $0x884] ss:$16 sps:$4 sm:$0xff]  }
 0x210   :  { %v7379_v45 = vpop.f32.mrf.mxu0  ;;  %v1261_v46 = vpop.f32.mrf.mxu1  ;;  %4586 = vmatprep.subr.bf16.mxu0 %v6419_v28  ;;  %4627 = vmatprep.subr.bf16.mxu1 %v6422_v29  ;;  %v6452_v23 = vld [vmem:[#allocation9 + $0xa84] ss:$16 sps:$4 sm:$0xff]  }
 0x211   :  { %v7381_v49 = vadd.f32 %v1261_v46, %v345_v30  ;;  %v6455_v28 = vld [vmem:[#allocation9 + $0x864] ss:$16 sps:$4 sm:$0xff]   ;;  %v6453_v30 = vld [vmem:[#allocation9 + $0x860] ss:$16 sps:$4 sm:$0xff]   ;;  %v353_v46 = vrot.slane %v7363_v21, %v320_v17 }
 0x212   :  { %v1222_v43 = vpop.f32.mrf.mxu0  ;;  %v1263_v50 = vpop.f32.mrf.mxu1  ;;  %v6458_v29 = vld [vmem:[#allocation9 + $0xa64] ss:$16 sps:$4 sm:$0xff]  }
 0x213   :  { %v1223_v51 = vadd.f32 %v1222_v43, %v341_v31  ;;  %v1264_v52 = vadd.f32 %v1263_v50, %v349_v32  ;;  %4587 = vmatpush2.bf16.msra.mxu0 %v6417_v35  ;;  %4628 = vmatpush2.bf16.msra.mxu1 %v6420_v36  ;;  %v6456_v31 = vld [vmem:[#allocation9 + $0xa60] ss:$16 sps:$4 sm:$0xff]   ;;  %v6461_v32 = vld [vmem:[#allocation9 + $0x844] ss:$16 sps:$4 sm:$0xff]  }
 0x214   :  { %v1224_v34 = vpop.f32.mrf.mxu0  ;;  %v1265_v56 = vpop.f32.mrf.mxu1  ;;  %4588 = vmatprep.subr.bf16.mxu0 %v6425_v47  ;;  %4629 = vmatprep.subr.bf16.mxu1 %v6428_v48  ;;  %v6464_v35 = vld [vmem:[#allocation9 + $0xa44] ss:$16 sps:$4 sm:$0xff]   ;;  %v6459_v36 = vld [vmem:[#allocation9 + $0x840] ss:$16 sps:$4 sm:$0xff]   ;;  %v361_v47 = vrot.slane %v7363_v21, %v328_v18 }
 0x215   :  { %v1359_v61 = vmax.f32 %v1223_v51, 0.0  ;;  %v1361_v62 = vmax.f32 %v1264_v52, 0.0  ;;  %v6470_v48 = vld [vmem:[#allocation9 + $0xa24] ss:$16 sps:$4 sm:$0xff]   ;;  %v6465_v43 = vld [vmem:[#allocation9 + $0x820] ss:$16 sps:$4 sm:$0xff]  }
 0x216   :  { %v1225_v1 = vpop.f32.mrf.mxu0  ;;  %v1266_v2 = vpop.f32.mrf.mxu1  ;;  %v6468_v52 = vld [vmem:[#allocation9 + $0xa20] ss:$16 sps:$4 sm:$0xff]  }
 0x217   :  { %4589 = vmatpush2.bf16.msra.mxu0 %v6423_v53  ;;  %4630 = vmatpush2.bf16.msra.mxu1 %v6426_v54  ;;  %v7387_v8 = vpack.c.bf16 %v1359_v61, %v1359_v61  ;;  %v7389_v11 = vpack.c.bf16 %v1361_v62, %v1361_v62  ;;  %v6473_v53 = vld [vmem:[#allocation9 + $0x804] ss:$16 sps:$4 sm:$0xff]   ;;  %v6471_v18 = vld [vmem:[#allocation9 + $0x800] ss:$16 sps:$4 sm:$0xff]  }
 0x218   :  { %4640 = vmatprep.subr.bf16.mxu0 %v6431_v59  ;;  %4681 = vmatprep.subr.bf16.mxu1 %v6434_v60  ;;  %v6474_v60 = vld [vmem:[#allocation9 + $0xa00] ss:$16 sps:$4 sm:$0xff]   ;;  %v6479_v61 = vld [vmem:[#allocation9 + $0x9e4] ss:$16 sps:$4 sm:$0xff]  }
 0x219   :  { %v6482_v62 = vld [vmem:[#allocation9 + $0xbe4] ss:$16 sps:$4 sm:$0xff]  }
 0x21a   :  { %4591 = vmatmul.mubr.bf16.vlgmr.msra.gmra.mxu0 %v7383_v6  ;;  %4632 = vmatmul.mubr.bf16.vlgmr.msra.gmra.mxu1 %v7385_v7 }
 0x21b   :  { %4641 = vmatpush1.bf16.msra.mxu0 %v6429_v5  ;;  %4672 = vmatprep.mubr.bf16.mxu0 %v7387_v8  ;;  %v6477_v5 = vld [vmem:[#allocation9 + $0x9e0] ss:$16 sps:$4 sm:$0xff]  }
 0x21c   :  { %4682 = vmatpush1.bf16.msra.mxu1 %v6432_v14  ;;  %4713 = vmatprep.mubr.bf16.mxu1 %v7389_v11  ;;  %v6480_v14 = vld [vmem:[#allocation9 + $0xbe0] ss:$16 sps:$4 sm:$0xff]  }
 0x21d   :  { %4642 = vmatprep.subr.bf16.mxu0 %v6437_v9  ;;  %4683 = vmatprep.subr.bf16.mxu1 %v6440_v10  ;;  %v6485_v9 = vld [vmem:[#allocation9 + $0x9c4] ss:$16 sps:$4 sm:$0xff]  }
 0x21e   :  { %v6488_v10 = vld [vmem:[#allocation9 + $0xbc4] ss:$16 sps:$4 sm:$0xff]  }
 0x21f   :  { %4643 = vmatpush1.bf16.msra.mxu0 %v6435_v12  ;;  %v6483_v12 = vld [vmem:[#allocation9 + $0x9c0] ss:$16 sps:$4 sm:$0xff]  }
 0x220   :  { %4684 = vmatpush1.bf16.msra.mxu1 %v6438_v13  ;;  %4644 = vmatprep.subr.bf16.mxu0 %v6443_v15  ;;  %v6486_v13 = vld [vmem:[#allocation9 + $0xbc0] ss:$16 sps:$4 sm:$0xff]   ;;  %v6491_v15 = vld [vmem:[#allocation9 + $0x9a4] ss:$16 sps:$4 sm:$0xff]  }
 0x221   :  { %4685 = vmatprep.subr.bf16.mxu1 %v6446_v16  ;;  %v6494_v16 = vld [vmem:[#allocation9 + $0xba4] ss:$16 sps:$4 sm:$0xff]  }
 0x223   :  { %4645 = vmatpush1.bf16.msra.mxu0 %v6441_v19  ;;  %v6489_v19 = vld [vmem:[#allocation9 + $0x9a0] ss:$16 sps:$4 sm:$0xff]  }
 0x224   :  { %4686 = vmatpush1.bf16.msra.mxu1 %v6444_v20  ;;  %4646 = vmatprep.subr.bf16.mxu0 %v6449_v22  ;;  %v6492_v20 = vld [vmem:[#allocation9 + $0xba0] ss:$16 sps:$4 sm:$0xff]   ;;  %v6497_v22 = vld [vmem:[#allocation9 + $0x984] ss:$16 sps:$4 sm:$0xff]  }
 0x225   :  { %4687 = vmatprep.subr.bf16.mxu1 %v6452_v23  ;;  %v6500_v23 = vld [vmem:[#allocation9 + $0xb84] ss:$16 sps:$4 sm:$0xff]  }
 0x227   :  { %4647 = vmatpush1.bf16.msra.mxu0 %v6447_v24  ;;  %v6495_v24 = vld [vmem:[#allocation9 + $0x980] ss:$16 sps:$4 sm:$0xff]  }
 0x228   :  { %4688 = vmatpush1.bf16.msra.mxu1 %v6450_v27  ;;  %4648 = vmatprep.subr.bf16.mxu0 %v6455_v28  ;;  %v6498_v27 = vld [vmem:[#allocation9 + $0xb80] ss:$16 sps:$4 sm:$0xff]   ;;  %v6503_v28 = vld [vmem:[#allocation9 + $0x964] ss:$16 sps:$4 sm:$0xff]  }
 0x229   :  { %4689 = vmatprep.subr.bf16.mxu1 %v6458_v29  ;;  %v6506_v29 = vld [vmem:[#allocation9 + $0xb64] ss:$16 sps:$4 sm:$0xff]  }
 0x22b   :  { %4649 = vmatpush1.bf16.msra.mxu0 %v6453_v30  ;;  %v6501_v30 = vld [vmem:[#allocation9 + $0x960] ss:$16 sps:$4 sm:$0xff]  }
 0x22c   :  { %4690 = vmatpush1.bf16.msra.mxu1 %v6456_v31  ;;  %4650 = vmatprep.subr.bf16.mxu0 %v6461_v32  ;;  %v6504_v31 = vld [vmem:[#allocation9 + $0xb60] ss:$16 sps:$4 sm:$0xff]   ;;  %v6509_v32 = vld [vmem:[#allocation9 + $0x944] ss:$16 sps:$4 sm:$0xff]  }
 0x22d   :  { %4691 = vmatprep.subr.bf16.mxu1 %v6464_v35  ;;  %v6512_v35 = vld [vmem:[#allocation9 + $0xb44] ss:$16 sps:$4 sm:$0xff]  }
 0x22f   :  { %4651 = vmatpush1.bf16.msra.mxu0 %v6459_v36  ;;  %v6507_v36 = vld [vmem:[#allocation9 + $0x940] ss:$16 sps:$4 sm:$0xff]  }
 0x230   :  { %4692 = vmatpush1.bf16.msra.mxu1 %v6462_v44  ;;  %v1302_v50 = vpop.f32.mrf.mxu0  ;;  %v1343_v51 = vpop.f32.mrf.mxu1  ;;  %4652 = vmatprep.subr.bf16.mxu0 %v6467_v40  ;;  %v337_v44 = vrot.slane %v7363_v21, %v7310_v38  ;;  %v6510_v40 = vld [vmem:[#allocation9 + $0xb40] ss:$16 sps:$4 sm:$0xff]  }
 0x231   :  { %v7401_v54 = vadd.f32 %v1302_v50, %v353_v46  ;;  %v7403_v33 = vadd.f32 %v1343_v51, %v361_v47  ;;  %4693 = vmatprep.subr.bf16.mxu1 %v6470_v48  ;;  %v6515_v46 = vld [vmem:[#allocation9 + $0x924] ss:$16 sps:$4 sm:$0xff]   ;;  %v357_v48 = vrot.slane %v7363_v21, %v324_v25  ;;  %v6513_v50 = vld [vmem:[#allocation9 + $0x920] ss:$16 sps:$4 sm:$0xff]  }
 0x232   :  { %v7405_v17 = vpop.f32.mrf.mxu0  ;;  %v7407_v34 = vpop.f32.mrf.mxu1  ;;  %v6518_v47 = vld [vmem:[#allocation9 + $0xb24] ss:$16 sps:$4 sm:$0xff]   ;;  %v1221_v51 = vadd.f32 %v7379_v45, %v337_v44  ;;  %v6519_v25 = vld [vmem:[#allocation9 + $0x900] ss:$16 sps:$4 sm:$0xff]  }
 0x233   :  { %4653 = vmatpush1.bf16.msra.mxu0 %v6465_v43  ;;  %v365_v43 = vrot.slane %v7363_v21, %v332_v26  ;;  %v6527_v26 = vld [vmem:[#allocation9 + $0xce4] ss:$16 sps:$4 sm:$0xff]   ;;  %v1360_v21 = vmax.f32 %v7381_v49, 0.0 }
 0x234   :  { %4694 = vmatpush1.bf16.msra.mxu1 %v6468_v52  ;;  %v1306_v56 = vpop.f32.mrf.mxu0  ;;  %v1347_v59 = vpop.f32.mrf.mxu1  ;;  %4654 = vmatprep.subr.bf16.mxu0 %v6473_v53  ;;  %v6516_v52 = vld [vmem:[#allocation9 + $0xb20] ss:$16 sps:$4 sm:$0xff]   ;;  %v6521_v53 = vld [vmem:[#allocation9 + $0x904] ss:$16 sps:$4 sm:$0xff]  }
 0x235   :  { %4695 = vmatprep.subr.bf16.mxu1 %v6476_v55  ;;  %v6524_v55 = vld [vmem:[#allocation9 + $0xb04] ss:$16 sps:$4 sm:$0xff]   ;;  %v1346_v56 = vadd.f32 %v7407_v34, %v365_v43  ;;  %v1358_v59 = vmax.f32 %v1221_v51, 0.0  ;;  %v7423_v34 = vpack.c.bf16 %v1360_v21, %v1360_v21  ;;  %v6567_v43 = vld [vmem:[#allocation9 + $0xc00] ss:$16 sps:$4 sm:$0xff]  }
 0x236   :  { %v1307_v1 = vpop.f32.mrf.mxu0  ;;  %v1348_v2 = vpop.f32.mrf.mxu1  ;;  %v6530_v45 = vld [vmem:[#allocation9 + $0xee4] ss:$16 sps:$4 sm:$0xff]   ;;  %v6585_v21 = vld [vmem:[#allocation9 + $0xda0] ss:$16 sps:$4 sm:$0xff]  }
 0x237   :  { %4655 = vmatpush1.bf16.msra.mxu0 %v6471_v18  ;;  %v1305_v18 = vadd.f32 %v7405_v17, %v357_v48  ;;  %v7421_v1 = vpack.c.bf16 %v1358_v59, %v1358_v59  ;;  %v6528_v17 = vld [vmem:[#allocation9 + $0xee0] ss:$16 sps:$4 sm:$0xff]   ;;  %v6533_v2 = vld [vmem:[#allocation9 + $0xcc4] ss:$16 sps:$4 sm:$0xff]  }
 0x238   :  { %4696 = vmatpush1.bf16.msra.mxu1 %v6474_v60  ;;  %4656 = vmatprep.subr.bf16.mxu0 %v6479_v61  ;;  %v1365_v61 = vmax.f32 %v1346_v56, 0.0  ;;  %v6536_v49 = vld [vmem:[#allocation9 + $0xec4] ss:$16 sps:$4 sm:$0xff]   ;;  %v6582_v59 = vld [vmem:[#allocation9 + $0xfc0] ss:$16 sps:$4 sm:$0xff]  }
 0x239   :  { %4697 = vmatprep.subr.bf16.mxu1 %v6482_v62  ;;  %v1363_v60 = vmax.f32 %v1305_v18, 0.0  ;;  %v6525_v62 = vld [vmem:[#allocation9 + $0xce0] ss:$16 sps:$4 sm:$0xff]   ;;  %v6566_v44 = vld [vmem:[#allocation9 + $0xe24] ss:$16 sps:$4 sm:$0xff]  }
 0x23a   :  { %v6572_v48 = vld [vmem:[#allocation9 + $0xe04] ss:$16 sps:$4 sm:$0xff]  }
 0x23b   :  { %4657 = vmatpush2.bf16.msra.mxu0 %v6477_v5  ;;  %v7425_v5 = vpack.c.bf16 %v1363_v60, %v1363_v60  ;;  %v6575_v51 = vld [vmem:[#allocation9 + $0xde4] ss:$16 sps:$4 sm:$0xff]  }
 0x23c   :  { %4698 = vmatpush2.bf16.msra.mxu1 %v6480_v14  ;;  %4658 = vmatprep.subr.bf16.mxu0 %v6485_v9  ;;  %v7428_v14 = vpack.c.bf16 %v1365_v61, %v1365_v61  ;;  %v6531_v9 = vld [vmem:[#allocation9 + $0xcc0] ss:$16 sps:$4 sm:$0xff]   ;;  %v6581_v18 = vld [vmem:[#allocation9 + $0xdc4] ss:$16 sps:$4 sm:$0xff]  }
 0x23d   :  { %4699 = vmatprep.subr.bf16.mxu1 %v6488_v10  ;;  %v6534_v10 = vld [vmem:[#allocation9 + $0xec0] ss:$16 sps:$4 sm:$0xff]   ;;  %v6584_v56 = vld [vmem:[#allocation9 + $0xfc4] ss:$16 sps:$4 sm:$0xff]  }
 0x23e   :  { %v6593_v60 = vld [vmem:[#allocation9 + $0xd84] ss:$16 sps:$4 sm:$0xff]  }
 0x23f   :  { %4659 = vmatpush2.bf16.msra.mxu0 %v6483_v12  ;;  %v6539_v12 = vld [vmem:[#allocation9 + $0xca4] ss:$16 sps:$4 sm:$0xff]  }
 0x240   :  { %4700 = vmatpush2.bf16.msra.mxu1 %v6486_v13  ;;  %4660 = vmatprep.subr.bf16.mxu0 %v6491_v15  ;;  %v6542_v13 = vld [vmem:[#allocation9 + $0xea4] ss:$16 sps:$4 sm:$0xff]   ;;  %v6537_v15 = vld [vmem:[#allocation9 + $0xca0] ss:$16 sps:$4 sm:$0xff]  }
 0x241   :  { %4701 = vmatprep.subr.bf16.mxu1 %v6494_v16  ;;  %v6540_v16 = vld [vmem:[#allocation9 + $0xea0] ss:$16 sps:$4 sm:$0xff]   ;;  %v6596_v61 = vld [vmem:[#allocation9 + $0xf84] ss:$16 sps:$4 sm:$0xff]  }
 0x243   :  { %4661 = vmatpush2.bf16.msra.mxu0 %v6489_v19  ;;  %v6545_v19 = vld [vmem:[#allocation9 + $0xc84] ss:$16 sps:$4 sm:$0xff]  }
 0x244   :  { %4702 = vmatpush2.bf16.msra.mxu1 %v6492_v20  ;;  %4662 = vmatprep.subr.bf16.mxu0 %v6497_v22  ;;  %v6548_v20 = vld [vmem:[#allocation9 + $0xe84] ss:$16 sps:$4 sm:$0xff]   ;;  %v6543_v22 = vld [vmem:[#allocation9 + $0xc80] ss:$16 sps:$4 sm:$0xff]  }
 0x245   :  { %4703 = vmatprep.subr.bf16.mxu1 %v6500_v23  ;;  %v6546_v23 = vld [vmem:[#allocation9 + $0xe80] ss:$16 sps:$4 sm:$0xff]  }
 0x247   :  { %4663 = vmatpush2.bf16.msra.mxu0 %v6495_v24  ;;  %v6551_v24 = vld [vmem:[#allocation9 + $0xc64] ss:$16 sps:$4 sm:$0xff]  }
 0x248   :  { %4704 = vmatpush2.bf16.msra.mxu1 %v6498_v27  ;;  %4664 = vmatprep.subr.bf16.mxu0 %v6503_v28  ;;  %v6554_v27 = vld [vmem:[#allocation9 + $0xe64] ss:$16 sps:$4 sm:$0xff]   ;;  %v6549_v28 = vld [vmem:[#allocation9 + $0xc60] ss:$16 sps:$4 sm:$0xff]  }
 0x249   :  { %4705 = vmatprep.subr.bf16.mxu1 %v6506_v29  ;;  %v6552_v29 = vld [vmem:[#allocation9 + $0xe60] ss:$16 sps:$4 sm:$0xff]  }
 0x24b   :  { %4665 = vmatpush2.bf16.msra.mxu0 %v6501_v30  ;;  %v6557_v30 = vld [vmem:[#allocation9 + $0xc44] ss:$16 sps:$4 sm:$0xff]  }
 0x24c   :  { %4706 = vmatpush2.bf16.msra.mxu1 %v6504_v31  ;;  %4666 = vmatprep.subr.bf16.mxu0 %v6509_v32  ;;  %v6560_v31 = vld [vmem:[#allocation9 + $0xe44] ss:$16 sps:$4 sm:$0xff]   ;;  %v6555_v32 = vld [vmem:[#allocation9 + $0xc40] ss:$16 sps:$4 sm:$0xff]  }
 0x24d   :  { %4707 = vmatprep.subr.bf16.mxu1 %v6512_v35  ;;  %v6558_v35 = vld [vmem:[#allocation9 + $0xe40] ss:$16 sps:$4 sm:$0xff]  }
 0x24f   :  { %4667 = vmatpush2.bf16.msra.mxu0 %v6507_v36  ;;  %v6563_v36 = vld [vmem:[#allocation9 + $0xc24] ss:$16 sps:$4 sm:$0xff]  }
 0x250   :  { %4708 = vmatpush2.bf16.msra.mxu1 %v6510_v40  ;;  %4668 = vmatprep.subr.bf16.mxu0 %v6515_v46  ;;  %v6561_v40 = vld [vmem:[#allocation9 + $0xc20] ss:$16 sps:$4 sm:$0xff]  }
 0x251   :  { %4709 = vmatprep.subr.bf16.mxu1 %v6518_v47  ;;  %v6564_v46 = vld [vmem:[#allocation9 + $0xe20] ss:$16 sps:$4 sm:$0xff]   ;;  %v6569_v47 = vld [vmem:[#allocation9 + $0xc04] ss:$16 sps:$4 sm:$0xff]  }
 0x253   :  { %4669 = vmatpush2.bf16.msra.mxu0 %v6513_v50  ;;  %v6570_v50 = vld [vmem:[#allocation9 + $0xe00] ss:$16 sps:$4 sm:$0xff]  }
 0x254   :  { %4710 = vmatpush2.bf16.msra.mxu1 %v6516_v52  ;;  %4670 = vmatprep.subr.bf16.mxu0 %v6521_v53  ;;  %v6578_v52 = vld [vmem:[#allocation9 + $0xfe4] ss:$16 sps:$4 sm:$0xff]   ;;  %v6573_v53 = vld [vmem:[#allocation9 + $0xde0] ss:$16 sps:$4 sm:$0xff]  }
 0x255   :  { %4711 = vmatprep.subr.bf16.mxu1 %v6524_v55  ;;  %v6576_v55 = vld [vmem:[#allocation9 + $0xfe0] ss:$16 sps:$4 sm:$0xff]  }
 0x257   :  { %4671 = vmatpush2.bf16.msra.mxu0 %v6519_v25  ;;  %v6579_v25 = vld [vmem:[#allocation9 + $0xdc0] ss:$16 sps:$4 sm:$0xff]  }
 0x258   :  { %4712 = vmatpush2.bf16.msra.mxu1 %v6522_v37  ;;  %4722 = vmatprep.subr.bf16.mxu0 %v6527_v26  ;;  %v6587_v37 = vld [vmem:[#allocation9 + $0xda4] ss:$16 sps:$4 sm:$0xff]  }
 0x259   :  { %4763 = vmatprep.subr.bf16.mxu1 %v6530_v45  ;;  %v6590_v26 = vld [vmem:[#allocation9 + $0xfa4] ss:$16 sps:$4 sm:$0xff]   ;;  %v6588_v45 = vld [vmem:[#allocation9 + $0xfa0] ss:$16 sps:$4 sm:$0xff]  }
 0x25a   :  { %4673 = vmatmul.mubr.bf16.vlgmr.msra.gmra.mxu0 %v7421_v1 }
 0x25b   :  { %4714 = vmatmul.mubr.bf16.vlgmr.msra.gmra.mxu1 %v7423_v34  ;;  %4723 = vmatpush1.bf16.msra.mxu0 %v6525_v62  ;;  %v6591_v62 = vld [vmem:[#allocation9 + $0xd80] ss:$16 sps:$4 sm:$0xff]  }
 0x25c   :  { %4754 = vmatprep.mubr.bf16.mxu0 %v7425_v5  ;;  %4764 = vmatpush1.bf16.msra.mxu1 %v6528_v17  ;;  %v6594_v17 = vld [vmem:[#allocation9 + $0xf80] ss:$16 sps:$4 sm:$0xff]  }
 0x25d   :  { %4795 = vmatprep.mubr.bf16.mxu1 %v7428_v14  ;;  %4724 = vmatprep.subr.bf16.mxu0 %v6533_v2  ;;  %v6599_v2 = vld [vmem:[#allocation9 + $0xd64] ss:$16 sps:$4 sm:$0xff]  }
 0x25e   :  { %4765 = vmatprep.subr.bf16.mxu1 %v6536_v49  ;;  %v6602_v49 = vld [vmem:[#allocation9 + $0xf64] ss:$16 sps:$4 sm:$0xff]  }
 0x25f   :  { %4725 = vmatpush1.bf16.msra.mxu0 %v6531_v9  ;;  %v6597_v9 = vld [vmem:[#allocation9 + $0xd60] ss:$16 sps:$4 sm:$0xff]  }
 0x260   :  { %4766 = vmatpush1.bf16.msra.mxu1 %v6534_v10  ;;  %4726 = vmatprep.subr.bf16.mxu0 %v6539_v12  ;;  %v6600_v10 = vld [vmem:[#allocation9 + $0xf60] ss:$16 sps:$4 sm:$0xff]   ;;  %v6605_v12 = vld [vmem:[#allocation9 + $0xd44] ss:$16 sps:$4 sm:$0xff]  }
 0x261   :  { %4767 = vmatprep.subr.bf16.mxu1 %v6542_v13  ;;  %v6608_v13 = vld [vmem:[#allocation9 + $0xf44] ss:$16 sps:$4 sm:$0xff]  }
 0x263   :  { %4727 = vmatpush1.bf16.msra.mxu0 %v6537_v15  ;;  %v6603_v15 = vld [vmem:[#allocation9 + $0xd40] ss:$16 sps:$4 sm:$0xff]  }
 0x264   :  { %4768 = vmatpush1.bf16.msra.mxu1 %v6540_v16  ;;  %4728 = vmatprep.subr.bf16.mxu0 %v6545_v19  ;;  %v6606_v16 = vld [vmem:[#allocation9 + $0xf40] ss:$16 sps:$4 sm:$0xff]   ;;  %v6611_v19 = vld [vmem:[#allocation9 + $0xd24] ss:$16 sps:$4 sm:$0xff]  }
 0x265   :  { %4769 = vmatprep.subr.bf16.mxu1 %v6548_v20  ;;  %v6614_v20 = vld [vmem:[#allocation9 + $0xf24] ss:$16 sps:$4 sm:$0xff]  }
 0x267   :  { %4729 = vmatpush1.bf16.msra.mxu0 %v6543_v22  ;;  %v6609_v22 = vld [vmem:[#allocation9 + $0xd20] ss:$16 sps:$4 sm:$0xff]  }
 0x268   :  { %4770 = vmatpush1.bf16.msra.mxu1 %v6546_v23  ;;  %4730 = vmatprep.subr.bf16.mxu0 %v6551_v24  ;;  %v6612_v23 = vld [vmem:[#allocation9 + $0xf20] ss:$16 sps:$4 sm:$0xff]   ;;  %v6617_v24 = vld [vmem:[#allocation9 + $0xd04] ss:$16 sps:$4 sm:$0xff]  }
 0x269   :  { %4771 = vmatprep.subr.bf16.mxu1 %v6554_v27  ;;  %v6620_v27 = vld [vmem:[#allocation9 + $0xf04] ss:$16 sps:$4 sm:$0xff]  }
 0x26b   :  { %4731 = vmatpush1.bf16.msra.mxu0 %v6549_v28  ;;  %v6615_v28 = vld [vmem:[#allocation9 + $0xd00] ss:$16 sps:$4 sm:$0xff]  }
 0x26c   :  { %4772 = vmatpush1.bf16.msra.mxu1 %v6552_v29  ;;  %4732 = vmatprep.subr.bf16.mxu0 %v6557_v30  ;;  %v6618_v29 = vld [vmem:[#allocation9 + $0xf00] ss:$16 sps:$4 sm:$0xff]   ;;  %v1362_v30 = vmax.f32 %v7401_v54, 0.0 }
 0x26d   :  { %4773 = vmatprep.subr.bf16.mxu1 %v6560_v31  ;;  %v6623_v31 = vld [vmem:[#allocation9 + $0xec] ss:$16 sps:$4 sm:$0xff]  }
 0x26f   :  { %4733 = vmatpush1.bf16.msra.mxu0 %v6555_v32  ;;  %v1894_v32 = vld [vmem:[#allocation11] sm:$0xf] }
 0x270   :  { %4774 = vmatpush1.bf16.msra.mxu1 %v6558_v35  ;;  %4734 = vmatprep.subr.bf16.mxu0 %v6563_v36  ;;  %v1364_v35 = vmax.f32 %v7403_v33, 0.0  ;;  %v6626_v36 = vld [vmem:[#allocation9 + $0x2ec] ss:$16 sps:$4 sm:$0xff]   ;;  %v1903_v54 = vrot.slane %v1894_v32, %v7318_v41 }
 0x271   :  { %4775 = vmatprep.subr.bf16.mxu1 %v6566_v44  ;;  %v6621_v44 = vld [vmem:[#allocation9 + $0xe8] ss:$16 sps:$4 sm:$0xff]  }
 0x273   :  { %4735 = vmatpush1.bf16.msra.mxu0 %v6561_v40  ;;  %v1899_v40 = vrot.slane %v1894_v32, %v7310_v38  ;;  %v6627_v38 = vld [vmem:[#allocation9 + $0xc8] ss:$16 sps:$4 sm:$0xff]   ;;  %v6674_v32 = vld [vmem:[#allocation9 + $0x3ec] ss:$16 sps:$4 sm:$0xff]  }
 0x274   :  { %4776 = vmatpush1.bf16.msra.mxu1 %v6564_v46  ;;  %4736 = vmatprep.subr.bf16.mxu0 %v6569_v47  ;;  %v7436_v46 = vpack.c.bf16 %v1362_v30, %v1362_v30  ;;  %v6624_v47 = vld [vmem:[#allocation9 + $0x2e8] ss:$16 sps:$4 sm:$0xff]  }
 0x275   :  { %4777 = vmatprep.subr.bf16.mxu1 %v6572_v48  ;;  %v7438_v48 = vpack.c.bf16 %v1364_v35, %v1364_v35  ;;  %v6666_v30 = vld [vmem:[#allocation9 + $0x208] ss:$16 sps:$4 sm:$0xff]  }
 0x276   :  { %v6669_v35 = vld [vmem:[#allocation9 + $0x1e8] ss:$16 sps:$4 sm:$0xff]  }
 0x277   :  { %4737 = vmatpush1.bf16.msra.mxu0 %v6567_v43  ;;  %v6629_v43 = vld [vmem:[#allocation9 + $0xcc] ss:$16 sps:$4 sm:$0xff]  }
 0x278   :  { %4778 = vmatpush1.bf16.msra.mxu1 %v6570_v50  ;;  %4738 = vmatprep.subr.bf16.mxu0 %v6575_v51  ;;  %v6632_v51 = vld [vmem:[#allocation9 + $0x2cc] ss:$16 sps:$4 sm:$0xff]  }
 0x279   :  { %4779 = vmatprep.subr.bf16.mxu1 %v6578_v52 }
 0x27b   :  { %4739 = vmatpush2.bf16.msra.mxu0 %v6573_v53 }
 0x27c   :  { %4780 = vmatpush2.bf16.msra.mxu1 %v6576_v55  ;;  %4740 = vmatprep.subr.bf16.mxu0 %v6581_v18  ;;  %v6630_v18 = vld [vmem:[#allocation9 + $0x2c8] ss:$16 sps:$4 sm:$0xff]  }
 0x27d   :  { %4781 = vmatprep.subr.bf16.mxu1 %v6584_v56  ;;  %v6635_v56 = vld [vmem:[#allocation9 + $0xac] ss:$16 sps:$4 sm:$0xff]  }
 0x27f   :  { %4741 = vmatpush2.bf16.msra.mxu0 %v6579_v25 }
 0x280   :  { %4782 = vmatpush2.bf16.msra.mxu1 %v6582_v59  ;;  %4742 = vmatprep.subr.bf16.mxu0 %v6587_v37  ;;  %v6638_v59 = vld [vmem:[#allocation9 + $0x2ac] ss:$16 sps:$4 sm:$0xff]  }
 0x281   :  { %4783 = vmatprep.subr.bf16.mxu1 %v6590_v26 }
 0x283   :  { %4743 = vmatpush2.bf16.msra.mxu0 %v6585_v21 }
 0x284   :  { %4784 = vmatpush2.bf16.msra.mxu1 %v6588_v45  ;;  %4744 = vmatprep.subr.bf16.mxu0 %v6593_v60  ;;  %v6633_v45 = vld [vmem:[#allocation9 + $0xa8] ss:$16 sps:$4 sm:$0xff]  }
 0x285   :  { %4785 = vmatprep.subr.bf16.mxu1 %v6596_v61  ;;  %v6636_v61 = vld [vmem:[#allocation9 + $0x2a8] ss:$16 sps:$4 sm:$0xff]  }
 0x287   :  { %4745 = vmatpush2.bf16.msra.mxu0 %v6591_v62  ;;  %v6641_v62 = vld [vmem:[#allocation9 + $0x8c] ss:$16 sps:$4 sm:$0xff]  }
 0x288   :  { %4786 = vmatpush2.bf16.msra.mxu1 %v6594_v17  ;;  %4746 = vmatprep.subr.bf16.mxu0 %v6599_v2  ;;  %v6644_v17 = vld [vmem:[#allocation9 + $0x28c] ss:$16 sps:$4 sm:$0xff]   ;;  %v6642_v2 = vld [vmem:[#allocation9 + $0x288] ss:$16 sps:$4 sm:$0xff]  }
 0x289   :  { %4787 = vmatprep.subr.bf16.mxu1 %v6602_v49  ;;  %v6647_v49 = vld [vmem:[#allocation9 + $0x6c] ss:$16 sps:$4 sm:$0xff]  }
 0x28b   :  { %4747 = vmatpush2.bf16.msra.mxu0 %v6597_v9  ;;  %v6650_v9 = vld [vmem:[#allocation9 + $0x26c] ss:$16 sps:$4 sm:$0xff]  }
 0x28c   :  { %4788 = vmatpush2.bf16.msra.mxu1 %v6600_v10  ;;  %4748 = vmatprep.subr.bf16.mxu0 %v6605_v12  ;;  %v6645_v10 = vld [vmem:[#allocation9 + $0x68] ss:$16 sps:$4 sm:$0xff]  }
 0x28d   :  { %4789 = vmatprep.subr.bf16.mxu1 %v6608_v13  ;;  %v6648_v12 = vld [vmem:[#allocation9 + $0x268] ss:$16 sps:$4 sm:$0xff]   ;;  %v6653_v13 = vld [vmem:[#allocation9 + $0x4c] ss:$16 sps:$4 sm:$0xff]  }
 0x28f   :  { %4749 = vmatpush2.bf16.msra.mxu0 %v6603_v15  ;;  %v6656_v15 = vld [vmem:[#allocation9 + $0x24c] ss:$16 sps:$4 sm:$0xff]  }
 0x290   :  { %4790 = vmatpush2.bf16.msra.mxu1 %v6606_v16  ;;  %4750 = vmatprep.subr.bf16.mxu0 %v6611_v19  ;;  %v6651_v16 = vld [vmem:[#allocation9 + $0x48] ss:$16 sps:$4 sm:$0xff]  }
 0x291   :  { %4791 = vmatprep.subr.bf16.mxu1 %v6614_v20  ;;  %v6654_v19 = vld [vmem:[#allocation9 + $0x248] ss:$16 sps:$4 sm:$0xff]   ;;  %v6659_v20 = vld [vmem:[#allocation9 + $0x2c] ss:$16 sps:$4 sm:$0xff]  }
 0x293   :  { %4751 = vmatpush2.bf16.msra.mxu0 %v6609_v22  ;;  %v6662_v22 = vld [vmem:[#allocation9 + $0x22c] ss:$16 sps:$4 sm:$0xff]  }
 0x294   :  { %4792 = vmatpush2.bf16.msra.mxu1 %v6612_v23  ;;  %4752 = vmatprep.subr.bf16.mxu0 %v6617_v24  ;;  %v6657_v23 = vld [vmem:[#allocation9 + $0x28] ss:$16 sps:$4 sm:$0xff]  }
 0x295   :  { %4793 = vmatprep.subr.bf16.mxu1 %v6620_v27  ;;  %v6660_v24 = vld [vmem:[#allocation9 + $0x228] ss:$16 sps:$4 sm:$0xff]   ;;  %v6665_v27 = vld [vmem:[#allocation9 + $0xc] ss:$16 sps:$4 sm:$0xff]  }
 0x297   :  { %4753 = vmatpush2.bf16.msra.mxu0 %v6615_v28  ;;  %v6668_v28 = vld [vmem:[#allocation9 + $0x20c] ss:$16 sps:$4 sm:$0xff]  }
 0x298   :  { %4794 = vmatpush2.bf16.msra.mxu1 %v6618_v29  ;;  %4804 = vmatprep.subr.bf16.mxu0 %v6623_v31  ;;  %v6663_v29 = vld [vmem:[#allocation9 + $0x8] ss:$16 sps:$4 sm:$0xff]   ;;  %v6671_v31 = vld [vmem:[#allocation9 + $0x1ec] ss:$16 sps:$4 sm:$0xff]  }
 0x299   :  { %4845 = vmatprep.subr.bf16.mxu1 %v6626_v36  ;;  %v6672_v36 = vld [vmem:[#allocation9 + $0x3e8] ss:$16 sps:$4 sm:$0xff]  }
 0x29a   :  { %4755 = vmatmul.mubr.bf16.vlgmr.msra.gmra.mxu0 %v7436_v46  ;;  %v4510_v33 = vpop.f32.mrf.mxu0  ;;  %v4551_v50 = vpop.f32.mrf.mxu1 }
 0x29b   :  { %4796 = vmatmul.mubr.bf16.vlgmr.msra.gmra.mxu1 %v7438_v48  ;;  %v4511_v52 = vadd.f32 %v4510_v33, %v1899_v40  ;;  %4805 = vmatpush1.bf16.msra.mxu0 %v6621_v44  ;;  %v6677_v44 = vld [vmem:[#allocation9 + $0x1cc] ss:$16 sps:$4 sm:$0xff]  }
 0x29c   :  { %4836 = vmatprep.mubr.bf16.mxu0 %v7331_v63  ;;  %4846 = vmatpush1.bf16.msra.mxu1 %v6624_v47  ;;  %v4512_v53 = vpop.f32.mrf.mxu0  ;;  %v4553_v55 = vpop.f32.mrf.mxu1  ;;  %v6680_v40 = vld [vmem:[#allocation9 + $0x3cc] ss:$16 sps:$4 sm:$0xff]   ;;  %v6675_v47 = vld [vmem:[#allocation9 + $0x1c8] ss:$16 sps:$4 sm:$0xff]  }
 0x29d   :  { %v7444_v25 = vadd.f32 %v4551_v50, %v4511_v52  ;;  %4877 = vmatprep.mubr.bf16.mxu1 %v7333_v0  ;;  %v4513_v41 = vadd.f32 %v4512_v53, %v1903_v54  ;;  %4806 = vmatprep.subr.bf16.mxu0 %v6629_v43  ;;  %v6639_v0 = vld [vmem:[#allocation9 + $0x88] ss:$16 sps:$4 sm:$0xff]   ;;  %v6683_v43 = vld [vmem:[#allocation9 + $0x1ac] ss:$16 sps:$4 sm:$0xff]  }
 0x29e   :  { %4847 = vmatprep.subr.bf16.mxu1 %v6632_v51  ;;  %v4514_v37 = vpop.f32.mrf.mxu0  ;;  %v4555_v26 = vpop.f32.mrf.mxu1  ;;  %v6678_v54 = vld [vmem:[#allocation9 + $0x3c8] ss:$16 sps:$4 sm:$0xff]   ;;  %v6686_v33 = vld [vmem:[#allocation9 + $0x3ac] ss:$16 sps:$4 sm:$0xff]  }
 0x29f   :  { %v7447_v21 = vadd.f32 %v4553_v55, %v4513_v41  ;;  %4807 = vmatpush1.bf16.msra.mxu0 %v6627_v38  ;;  %v6681_v50 = vld [vmem:[#allocation9 + $0x1a8] ss:$16 sps:$4 sm:$0xff]   ;;  %v6689_v52 = vld [vmem:[#allocation9 + $0x18c] ss:$16 sps:$4 sm:$0xff]  }
 0x2a0   :  { %4848 = vmatpush1.bf16.msra.mxu1 %v6630_v18  ;;  %v4515_v63 = vpop.f32.mrf.mxu0  ;;  %v4556_v60 = vpop.f32.mrf.mxu1  ;;  %4808 = vmatprep.subr.bf16.mxu0 %v6635_v56  ;;  %v6684_v51 = vld [vmem:[#allocation9 + $0x3a8] ss:$16 sps:$4 sm:$0xff]   ;;  %v6692_v38 = vld [vmem:[#allocation9 + $0x38c] ss:$16 sps:$4 sm:$0xff]  }
 0x2a1   :  { %4849 = vmatprep.subr.bf16.mxu1 %v6638_v59  ;;  %v6687_v53 = vld [vmem:[#allocation9 + $0x188] ss:$16 sps:$4 sm:$0xff]   ;;  %v6695_v18 = vld [vmem:[#allocation9 + $0x16c] ss:$16 sps:$4 sm:$0xff]  }
 0x2a2   :  { %v6690_v55 = vld [vmem:[#allocation9 + $0x388] ss:$16 sps:$4 sm:$0xff]   ;;  %v6698_v56 = vld [vmem:[#allocation9 + $0x36c] ss:$16 sps:$4 sm:$0xff]  }
 0x2a3   :  { %4809 = vmatpush1.bf16.msra.mxu0 %v6633_v45  ;;  %v6693_v41 = vld [vmem:[#allocation9 + $0x168] ss:$16 sps:$4 sm:$0xff]   ;;  %v6701_v37 = vld [vmem:[#allocation9 + $0x14c] ss:$16 sps:$4 sm:$0xff]  }
 0x2a4   :  { %4850 = vmatpush1.bf16.msra.mxu1 %v6636_v61  ;;  %4810 = vmatprep.subr.bf16.mxu0 %v6641_v62  ;;  %v6696_v59 = vld [vmem:[#allocation9 + $0x368] ss:$16 sps:$4 sm:$0xff]   ;;  %v6704_v26 = vld [vmem:[#allocation9 + $0x34c] ss:$16 sps:$4 sm:$0xff]  }
 0x2a5   :  { %4851 = vmatprep.subr.bf16.mxu1 %v6644_v17  ;;  %v6699_v45 = vld [vmem:[#allocation9 + $0x148] ss:$16 sps:$4 sm:$0xff]   ;;  %v6707_v60 = vld [vmem:[#allocation9 + $0x12c] ss:$16 sps:$4 sm:$0xff]  }
 0x2a6   :  { %v6702_v63 = vld [vmem:[#allocation9 + $0x348] ss:$16 sps:$4 sm:$0xff]   ;;  %v6710_v61 = vld [vmem:[#allocation9 + $0x32c] ss:$16 sps:$4 sm:$0xff]  }
 0x2a7   :  { %4811 = vmatpush1.bf16.msra.mxu0 %v6639_v0  ;;  %v6705_v62 = vld [vmem:[#allocation9 + $0x128] ss:$16 sps:$4 sm:$0xff]   ;;  %v6713_v0 = vld [vmem:[#allocation9 + $0x10c] ss:$16 sps:$4 sm:$0xff]  }
 0x2a8   :  { %4852 = vmatpush1.bf16.msra.mxu1 %v6642_v2  ;;  %4812 = vmatprep.subr.bf16.mxu0 %v6647_v49  ;;  %v6708_v17 = vld [vmem:[#allocation9 + $0x328] ss:$16 sps:$4 sm:$0xff]   ;;  %v6716_v2 = vld [vmem:[#allocation9 + $0x30c] ss:$16 sps:$4 sm:$0xff]  }
 0x2a9   :  { %4853 = vmatprep.subr.bf16.mxu1 %v6650_v9  ;;  %v6711_v49 = vld [vmem:[#allocation9 + $0x108] ss:$16 sps:$4 sm:$0xff]  }
 0x2aa   :  { %v6714_v9 = vld [vmem:[#allocation9 + $0x308] ss:$16 sps:$4 sm:$0xff]  }
 0x2ab   :  { %4813 = vmatpush1.bf16.msra.mxu0 %v6645_v10  ;;  %v6719_v10 = vld [vmem:[#allocation9 + $0x4ec] ss:$16 sps:$4 sm:$0xff]  }
 0x2ac   :  { %4854 = vmatpush1.bf16.msra.mxu1 %v6648_v12  ;;  %4814 = vmatprep.subr.bf16.mxu0 %v6653_v13  ;;  %v6722_v12 = vld [vmem:[#allocation9 + $0x6ec] ss:$16 sps:$4 sm:$0xff]   ;;  %v6717_v13 = vld [vmem:[#allocation9 + $0x4e8] ss:$16 sps:$4 sm:$0xff]  }
 0x2ad   :  { %4855 = vmatprep.subr.bf16.mxu1 %v6656_v15  ;;  %v6720_v15 = vld [vmem:[#allocation9 + $0x6e8] ss:$16 sps:$4 sm:$0xff]  }
 0x2af   :  { %4815 = vmatpush1.bf16.msra.mxu0 %v6651_v16  ;;  %v6725_v16 = vld [vmem:[#allocation9 + $0x4cc] ss:$16 sps:$4 sm:$0xff]  }
 0x2b0   :  { %4856 = vmatpush1.bf16.msra.mxu1 %v6654_v19  ;;  %4816 = vmatprep.subr.bf16.mxu0 %v6659_v20 }
 0x2b1   :  { %4857 = vmatprep.subr.bf16.mxu1 %v6662_v22  ;;  %v6728_v22 = vld [vmem:[#allocation9 + $0x6cc] ss:$16 sps:$4 sm:$0xff]  }
 0x2b3   :  { %4817 = vmatpush1.bf16.msra.mxu0 %v6657_v23 }
 0x2b4   :  { %4858 = vmatpush1.bf16.msra.mxu1 %v6660_v24  ;;  %4818 = vmatprep.subr.bf16.mxu0 %v6665_v27  ;;  %v6723_v24 = vld [vmem:[#allocation9 + $0x4c8] ss:$16 sps:$4 sm:$0xff]  }
 0x2b5   :  { %4859 = vmatprep.subr.bf16.mxu1 %v6668_v28 }
 0x2b7   :  { %4819 = vmatpush1.bf16.msra.mxu0 %v6663_v29  ;;  %v6726_v29 = vld [vmem:[#allocation9 + $0x6c8] ss:$16 sps:$4 sm:$0xff]  }
 0x2b8   :  { %4860 = vmatpush1.bf16.msra.mxu1 %v6666_v30  ;;  %4820 = vmatprep.subr.bf16.mxu0 %v6671_v31  ;;  %v6731_v30 = vld [vmem:[#allocation9 + $0x4ac] ss:$16 sps:$4 sm:$0xff]  }
 0x2b9   :  { %4861 = vmatprep.subr.bf16.mxu1 %v6674_v32  ;;  %v6734_v32 = vld [vmem:[#allocation9 + $0x6ac] ss:$16 sps:$4 sm:$0xff]  }
 0x2bb   :  { %4821 = vmatpush2.bf16.msra.mxu0 %v6669_v35 }
 0x2bc   :  { %4862 = vmatpush2.bf16.msra.mxu1 %v6672_v36  ;;  %4822 = vmatprep.subr.bf16.mxu0 %v6677_v44 }
 0x2bd   :  { %4863 = vmatprep.subr.bf16.mxu1 %v6680_v40  ;;  %v6732_v40 = vld [vmem:[#allocation9 + $0x6a8] ss:$16 sps:$4 sm:$0xff]  }
 0x2bf   :  { %4823 = vmatpush2.bf16.msra.mxu0 %v6675_v47  ;;  %v6737_v47 = vld [vmem:[#allocation9 + $0x48c] ss:$16 sps:$4 sm:$0xff]  }
 0x2c0   :  { %4864 = vmatpush2.bf16.msra.mxu1 %v6678_v54  ;;  %4824 = vmatprep.subr.bf16.mxu0 %v6683_v43  ;;  %v6740_v54 = vld [vmem:[#allocation9 + $0x68c] ss:$16 sps:$4 sm:$0xff]  }
 0x2c1   :  { %4865 = vmatprep.subr.bf16.mxu1 %v6686_v33  ;;  %v6743_v43 = vld [vmem:[#allocation9 + $0x46c] ss:$16 sps:$4 sm:$0xff]  }
 0x2c2   :  { %v6746_v33 = vld [vmem:[#allocation9 + $0x66c] ss:$16 sps:$4 sm:$0xff]  }
 0x2c3   :  { %4825 = vmatpush2.bf16.msra.mxu0 %v6681_v50  ;;  %v6741_v50 = vld [vmem:[#allocation9 + $0x468] ss:$16 sps:$4 sm:$0xff]  }
 0x2c4   :  { %4866 = vmatpush2.bf16.msra.mxu1 %v6684_v51  ;;  %4826 = vmatprep.subr.bf16.mxu0 %v6689_v52  ;;  %v6744_v51 = vld [vmem:[#allocation9 + $0x668] ss:$16 sps:$4 sm:$0xff]   ;;  %v6749_v52 = vld [vmem:[#allocation9 + $0x44c] ss:$16 sps:$4 sm:$0xff]  }
 0x2c5   :  { %4867 = vmatprep.subr.bf16.mxu1 %v6692_v38  ;;  %v6752_v38 = vld [vmem:[#allocation9 + $0x64c] ss:$16 sps:$4 sm:$0xff]  }
 0x2c7   :  { %4827 = vmatpush2.bf16.msra.mxu0 %v6687_v53  ;;  %v6747_v53 = vld [vmem:[#allocation9 + $0x448] ss:$16 sps:$4 sm:$0xff]  }
 0x2c8   :  { %4868 = vmatpush2.bf16.msra.mxu1 %v6690_v55  ;;  %4828 = vmatprep.subr.bf16.mxu0 %v6695_v18  ;;  %v6750_v55 = vld [vmem:[#allocation9 + $0x648] ss:$16 sps:$4 sm:$0xff]   ;;  %v6755_v18 = vld [vmem:[#allocation9 + $0x42c] ss:$16 sps:$4 sm:$0xff]  }
 0x2c9   :  { %4869 = vmatprep.subr.bf16.mxu1 %v6698_v56  ;;  %v6758_v56 = vld [vmem:[#allocation9 + $0x62c] ss:$16 sps:$4 sm:$0xff]  }
 0x2cb   :  { %4829 = vmatpush2.bf16.msra.mxu0 %v6693_v41  ;;  %v6753_v41 = vld [vmem:[#allocation9 + $0x428] ss:$16 sps:$4 sm:$0xff]  }
 0x2cc   :  { %4870 = vmatpush2.bf16.msra.mxu1 %v6696_v59  ;;  %4830 = vmatprep.subr.bf16.mxu0 %v6701_v37  ;;  %v6756_v59 = vld [vmem:[#allocation9 + $0x628] ss:$16 sps:$4 sm:$0xff]   ;;  %v6761_v37 = vld [vmem:[#allocation9 + $0x40c] ss:$16 sps:$4 sm:$0xff]  }
 0x2cd   :  { %4871 = vmatprep.subr.bf16.mxu1 %v6704_v26  ;;  %v6764_v26 = vld [vmem:[#allocation9 + $0x60c] ss:$16 sps:$4 sm:$0xff]  }
 0x2cf   :  { %4831 = vmatpush2.bf16.msra.mxu0 %v6699_v45  ;;  %v6759_v45 = vld [vmem:[#allocation9 + $0x408] ss:$16 sps:$4 sm:$0xff]  }
 0x2d0   :  { %4872 = vmatpush2.bf16.msra.mxu1 %v6702_v63  ;;  %4832 = vmatprep.subr.bf16.mxu0 %v6707_v60  ;;  %v6762_v63 = vld [vmem:[#allocation9 + $0x608] ss:$16 sps:$4 sm:$0xff]   ;;  %v6767_v60 = vld [vmem:[#allocation9 + $0x5ec] ss:$16 sps:$4 sm:$0xff]  }
 0x2d1   :  { %4873 = vmatprep.subr.bf16.mxu1 %v6710_v61  ;;  %v6770_v61 = vld [vmem:[#allocation9 + $0x7ec] ss:$16 sps:$4 sm:$0xff]  }
 0x2d3   :  { %4833 = vmatpush2.bf16.msra.mxu0 %v6705_v62  ;;  %v6765_v62 = vld [vmem:[#allocation9 + $0x5e8] ss:$16 sps:$4 sm:$0xff]  }
 0x2d4   :  { %4874 = vmatpush2.bf16.msra.mxu1 %v6708_v17  ;;  %4834 = vmatprep.subr.bf16.mxu0 %v6713_v0  ;;  %v6768_v17 = vld [vmem:[#allocation9 + $0x7e8] ss:$16 sps:$4 sm:$0xff]   ;;  %v6773_v0 = vld [vmem:[#allocation9 + $0x5cc] ss:$16 sps:$4 sm:$0xff]  }
 0x2d5   :  { %4875 = vmatprep.subr.bf16.mxu1 %v6716_v2  ;;  %v6776_v2 = vld [vmem:[#allocation9 + $0x7cc] ss:$16 sps:$4 sm:$0xff]  }
 0x2d7   :  { %4835 = vmatpush2.bf16.msra.mxu0 %v6711_v49  ;;  %v6771_v49 = vld [vmem:[#allocation9 + $0x5c8] ss:$16 sps:$4 sm:$0xff]  }
 0x2d8   :  { %4876 = vmatpush2.bf16.msra.mxu1 %v6714_v9  ;;  %4886 = vmatprep.subr.bf16.mxu0 %v6719_v10  ;;  %v6774_v9 = vld [vmem:[#allocation9 + $0x7c8] ss:$16 sps:$4 sm:$0xff]   ;;  %v6779_v10 = vld [vmem:[#allocation9 + $0x5ac] ss:$16 sps:$4 sm:$0xff]  }
 0x2d9   :  { %4927 = vmatprep.subr.bf16.mxu1 %v6722_v12  ;;  %v6782_v12 = vld [vmem:[#allocation9 + $0x7ac] ss:$16 sps:$4 sm:$0xff]  }
 0x2da   :  { %v4592_v19 = vpop.f32.mrf.mxu0  ;;  %v4633_v20 = vpop.f32.mrf.mxu1  ;;  %4837 = vmatmul.mubr.bf16.vlgmr.msra.gmra.mxu0 %v7335_v3 }
 0x2db   :  { %v4593_v23 = vadd.f32 %v4592_v19, %v7444_v25  ;;  %4878 = vmatmul.mubr.bf16.vlgmr.msra.gmra.mxu1 %v7337_v4  ;;  %4887 = vmatpush1.bf16.msra.mxu0 %v6717_v13  ;;  %v6777_v13 = vld [vmem:[#allocation9 + $0x5a8] ss:$16 sps:$4 sm:$0xff]   ;;  %v6788_v19 = vld [vmem:[#allocation9 + $0x78c] ss:$16 sps:$4 sm:$0xff]  }
 0x2dc   :  { %4918 = vmatprep.mubr.bf16.mxu0 %v7355_v57  ;;  %4928 = vmatpush1.bf16.msra.mxu1 %v6720_v15  ;;  %v4594_v27 = vpop.f32.mrf.mxu0  ;;  %v4635_v28 = vpop.f32.mrf.mxu1  ;;  %v6729_v57 = vld [vmem:[#allocation9 + $0x4a8] ss:$16 sps:$4 sm:$0xff]  }
 0x2dd   :  { %v7453_v31 = vadd.f32 %v4633_v20, %v4593_v23  ;;  %4959 = vmatprep.mubr.bf16.mxu1 %v7357_v58  ;;  %v4595_v3 = vadd.f32 %v4594_v27, %v7447_v21  ;;  %4888 = vmatprep.subr.bf16.mxu0 %v6725_v16  ;;  %v6735_v58 = vld [vmem:[#allocation9 + $0x488] ss:$16 sps:$4 sm:$0xff]   ;;  %v6785_v16 = vld [vmem:[#allocation9 + $0x58c] ss:$16 sps:$4 sm:$0xff]  }
 0x2de   :  { %v4596_v25 = vpop.f32.mrf.mxu0  ;;  %v4637_v35 = vpop.f32.mrf.mxu1  ;;  %4929 = vmatprep.subr.bf16.mxu1 %v6728_v22  ;;  %v6738_v21 = vld [vmem:[#allocation9 + $0x688] ss:$16 sps:$4 sm:$0xff]   ;;  %v6791_v23 = vld [vmem:[#allocation9 + $0x56c] ss:$16 sps:$4 sm:$0xff]  }
 0x2df   :  { %v7457_v4 = vadd.f32 %v4635_v28, %v4595_v3  ;;  %4889 = vmatpush1.bf16.msra.mxu0 %v6723_v24  ;;  %v6780_v15 = vld [vmem:[#allocation9 + $0x7a8] ss:$16 sps:$4 sm:$0xff]   ;;  %v6794_v24 = vld [vmem:[#allocation9 + $0x76c] ss:$16 sps:$4 sm:$0xff]  }
 0x2e0   :  { %4930 = vmatpush1.bf16.msra.mxu1 %v6726_v29  ;;  %v4597_v36 = vpop.f32.mrf.mxu0  ;;  %v4638_v44 = vpop.f32.mrf.mxu1  ;;  %4890 = vmatprep.subr.bf16.mxu0 %v6731_v30  ;;  %v6783_v20 = vld [vmem:[#allocation9 + $0x588] ss:$16 sps:$4 sm:$0xff]   ;;  %v6797_v29 = vld [vmem:[#allocation9 + $0x54c] ss:$16 sps:$4 sm:$0xff]  }
 0x2e1   :  { %4931 = vmatprep.subr.bf16.mxu1 %v6734_v32  ;;  %v6786_v22 = vld [vmem:[#allocation9 + $0x788] ss:$16 sps:$4 sm:$0xff]   ;;  %v6800_v30 = vld [vmem:[#allocation9 + $0x74c] ss:$16 sps:$4 sm:$0xff]  }
 0x2e2   :  { %v6789_v27 = vld [vmem:[#allocation9 + $0x568] ss:$16 sps:$4 sm:$0xff]   ;;  %v6803_v25 = vld [vmem:[#allocation9 + $0x52c] ss:$16 sps:$4 sm:$0xff]  }
 0x2e3   :  { %4891 = vmatpush1.bf16.msra.mxu0 %v6729_v57  ;;  %v6792_v28 = vld [vmem:[#allocation9 + $0x768] ss:$16 sps:$4 sm:$0xff]   ;;  %v6806_v35 = vld [vmem:[#allocation9 + $0x72c] ss:$16 sps:$4 sm:$0xff]  }
 0x2e4   :  { %4932 = vmatpush1.bf16.msra.mxu1 %v6732_v40  ;;  %4892 = vmatprep.subr.bf16.mxu0 %v6737_v47  ;;  %v6795_v3 = vld [vmem:[#allocation9 + $0x548] ss:$16 sps:$4 sm:$0xff]   ;;  %v6809_v44 = vld [vmem:[#allocation9 + $0x50c] ss:$16 sps:$4 sm:$0xff]  }
 0x2e5   :  { %4933 = vmatprep.subr.bf16.mxu1 %v6740_v54  ;;  %v6798_v32 = vld [vmem:[#allocation9 + $0x748] ss:$16 sps:$4 sm:$0xff]   ;;  %v6812_v40 = vld [vmem:[#allocation9 + $0x70c] ss:$16 sps:$4 sm:$0xff]  }
 0x2e6   :  { %v6801_v57 = vld [vmem:[#allocation9 + $0x528] ss:$16 sps:$4 sm:$0xff]  }
 0x2e7   :  { %4893 = vmatpush1.bf16.msra.mxu0 %v6735_v58  ;;  %v6804_v36 = vld [vmem:[#allocation9 + $0x728] ss:$16 sps:$4 sm:$0xff]   ;;  %v6815_v58 = vld [vmem:[#allocation9 + $0x8ec] ss:$16 sps:$4 sm:$0xff]  }
 0x2e8   :  { %4934 = vmatpush1.bf16.msra.mxu1 %v6738_v21  ;;  %4894 = vmatprep.subr.bf16.mxu0 %v6743_v43  ;;  %v6807_v47 = vld [vmem:[#allocation9 + $0x508] ss:$16 sps:$4 sm:$0xff]   ;;  %v6818_v21 = vld [vmem:[#allocation9 + $0xaec] ss:$16 sps:$4 sm:$0xff]  }
 0x2e9   :  { %4935 = vmatprep.subr.bf16.mxu1 %v6746_v33  ;;  %v6810_v54 = vld [vmem:[#allocation9 + $0x708] ss:$16 sps:$4 sm:$0xff]  }
 0x2ea   :  { %v6813_v43 = vld [vmem:[#allocation9 + $0x8e8] ss:$16 sps:$4 sm:$0xff]  }
 0x2eb   :  { %4895 = vmatpush1.bf16.msra.mxu0 %v6741_v50  ;;  %v6816_v33 = vld [vmem:[#allocation9 + $0xae8] ss:$16 sps:$4 sm:$0xff]   ;;  %v6821_v50 = vld [vmem:[#allocation9 + $0x8cc] ss:$16 sps:$4 sm:$0xff]  }
 0x2ec   :  { %4936 = vmatpush1.bf16.msra.mxu1 %v6744_v51  ;;  %4896 = vmatprep.subr.bf16.mxu0 %v6749_v52  ;;  %v6824_v52 = vld [vmem:[#allocation9 + $0xacc] ss:$16 sps:$4 sm:$0xff]  }
 0x2ed   :  { %4937 = vmatprep.subr.bf16.mxu1 %v6752_v38 }
 0x2ef   :  { %4897 = vmatpush1.bf16.msra.mxu0 %v6747_v53 }
 0x2f0   :  { %4938 = vmatpush1.bf16.msra.mxu1 %v6750_v55  ;;  %4898 = vmatprep.subr.bf16.mxu0 %v6755_v18  ;;  %v6819_v55 = vld [vmem:[#allocation9 + $0x8c8] ss:$16 sps:$4 sm:$0xff]  }
 0x2f1   :  { %4939 = vmatprep.subr.bf16.mxu1 %v6758_v56  ;;  %v6822_v56 = vld [vmem:[#allocation9 + $0xac8] ss:$16 sps:$4 sm:$0xff]  }
 0x2f3   :  { %4899 = vmatpush1.bf16.msra.mxu0 %v6753_v41  ;;  %v6827_v41 = vld [vmem:[#allocation9 + $0x8ac] ss:$16 sps:$4 sm:$0xff]  }
 0x2f4   :  { %4940 = vmatpush1.bf16.msra.mxu1 %v6756_v59  ;;  %4900 = vmatprep.subr.bf16.mxu0 %v6761_v37 }
 0x2f5   :  { %4941 = vmatprep.subr.bf16.mxu1 %v6764_v26 }
 0x2f7   :  { %4901 = vmatpush1.bf16.msra.mxu0 %v6759_v45 }
 0x2f8   :  { %4942 = vmatpush1.bf16.msra.mxu1 %v6762_v63  ;;  %4902 = vmatprep.subr.bf16.mxu0 %v6767_v60  ;;  %v6828_v60 = vld [vmem:[#allocation9 + $0xaa8] ss:$16 sps:$4 sm:$0xff]  }
 0x2f9   :  { %4943 = vmatprep.subr.bf16.mxu1 %v6770_v61  ;;  %v6833_v61 = vld [vmem:[#allocation9 + $0x88c] ss:$16 sps:$4 sm:$0xff]  }
 0x2fb   :  { %4903 = vmatpush2.bf16.msra.mxu0 %v6765_v62 }
 0x2fc   :  { %4944 = vmatpush2.bf16.msra.mxu1 %v6768_v17  ;;  %4904 = vmatprep.subr.bf16.mxu0 %v6773_v0  ;;  %v6834_v17 = vld [vmem:[#allocation9 + $0xa88] ss:$16 sps:$4 sm:$0xff]   ;;  %v6839_v0 = vld [vmem:[#allocation9 + $0x86c] ss:$16 sps:$4 sm:$0xff]  }
 0x2fd   :  { %4945 = vmatprep.subr.bf16.mxu1 %v6776_v2  ;;  %v6842_v2 = vld [vmem:[#allocation9 + $0xa6c] ss:$16 sps:$4 sm:$0xff]  }
 0x2ff   :  { %4905 = vmatpush2.bf16.msra.mxu0 %v6771_v49  ;;  %v6837_v49 = vld [vmem:[#allocation9 + $0x868] ss:$16 sps:$4 sm:$0xff]  }
 0x300   :  { %4946 = vmatpush2.bf16.msra.mxu1 %v6774_v9  ;;  %4906 = vmatprep.subr.bf16.mxu0 %v6779_v10  ;;  %v6840_v9 = vld [vmem:[#allocation9 + $0xa68] ss:$16 sps:$4 sm:$0xff]   ;;  %v6845_v10 = vld [vmem:[#allocation9 + $0x84c] ss:$16 sps:$4 sm:$0xff]  }
 0x301   :  { %4947 = vmatprep.subr.bf16.mxu1 %v6782_v12  ;;  %v6848_v12 = vld [vmem:[#allocation9 + $0xa4c] ss:$16 sps:$4 sm:$0xff]  }
 0x303   :  { %4907 = vmatpush2.bf16.msra.mxu0 %v6777_v13  ;;  %v6843_v13 = vld [vmem:[#allocation9 + $0x848] ss:$16 sps:$4 sm:$0xff]  }
 0x304   :  { %4948 = vmatpush2.bf16.msra.mxu1 %v6780_v15  ;;  %4908 = vmatprep.subr.bf16.mxu0 %v6785_v16  ;;  %v6846_v15 = vld [vmem:[#allocation9 + $0xa48] ss:$16 sps:$4 sm:$0xff]   ;;  %v6851_v16 = vld [vmem:[#allocation9 + $0x82c] ss:$16 sps:$4 sm:$0xff]  }
 0x305   :  { %4949 = vmatprep.subr.bf16.mxu1 %v6788_v19  ;;  %v6854_v19 = vld [vmem:[#allocation9 + $0xa2c] ss:$16 sps:$4 sm:$0xff]  }
 0x307   :  { %4909 = vmatpush2.bf16.msra.mxu0 %v6783_v20  ;;  %v6849_v20 = vld [vmem:[#allocation9 + $0x828] ss:$16 sps:$4 sm:$0xff]  }
 0x308   :  { %4950 = vmatpush2.bf16.msra.mxu1 %v6786_v22  ;;  %4910 = vmatprep.subr.bf16.mxu0 %v6791_v23  ;;  %v6852_v22 = vld [vmem:[#allocation9 + $0xa28] ss:$16 sps:$4 sm:$0xff]   ;;  %v6857_v23 = vld [vmem:[#allocation9 + $0x80c] ss:$16 sps:$4 sm:$0xff]  }
 0x309   :  { %4951 = vmatprep.subr.bf16.mxu1 %v6794_v24  ;;  %v6860_v24 = vld [vmem:[#allocation9 + $0xa0c] ss:$16 sps:$4 sm:$0xff]  }
 0x30b   :  { %4911 = vmatpush2.bf16.msra.mxu0 %v6789_v27  ;;  %v6855_v27 = vld [vmem:[#allocation9 + $0x808] ss:$16 sps:$4 sm:$0xff]  }
 0x30c   :  { %4952 = vmatpush2.bf16.msra.mxu1 %v6792_v28  ;;  %4912 = vmatprep.subr.bf16.mxu0 %v6797_v29  ;;  %v6858_v28 = vld [vmem:[#allocation9 + $0xa08] ss:$16 sps:$4 sm:$0xff]   ;;  %v6863_v29 = vld [vmem:[#allocation9 + $0x9ec] ss:$16 sps:$4 sm:$0xff]  }
 0x30d   :  { %4953 = vmatprep.subr.bf16.mxu1 %v6800_v30  ;;  %v6866_v30 = vld [vmem:[#allocation9 + $0xbec] ss:$16 sps:$4 sm:$0xff]  }
 0x30f   :  { %4913 = vmatpush2.bf16.msra.mxu0 %v6795_v3  ;;  %v6861_v3 = vld [vmem:[#allocation9 + $0x9e8] ss:$16 sps:$4 sm:$0xff]  }
 0x310   :  { %4954 = vmatpush2.bf16.msra.mxu1 %v6798_v32  ;;  %4914 = vmatprep.subr.bf16.mxu0 %v6803_v25  ;;  %v6864_v32 = vld [vmem:[#allocation9 + $0xbe8] ss:$16 sps:$4 sm:$0xff]   ;;  %v6869_v25 = vld [vmem:[#allocation9 + $0x9cc] ss:$16 sps:$4 sm:$0xff]  }
 0x311   :  { %4955 = vmatprep.subr.bf16.mxu1 %v6806_v35  ;;  %v6872_v35 = vld [vmem:[#allocation9 + $0xbcc] ss:$16 sps:$4 sm:$0xff]  }
 0x313   :  { %4915 = vmatpush2.bf16.msra.mxu0 %v6801_v57  ;;  %v6867_v57 = vld [vmem:[#allocation9 + $0x9c8] ss:$16 sps:$4 sm:$0xff]  }
 0x314   :  { %4956 = vmatpush2.bf16.msra.mxu1 %v6804_v36  ;;  %4916 = vmatprep.subr.bf16.mxu0 %v6809_v44  ;;  %v6870_v36 = vld [vmem:[#allocation9 + $0xbc8] ss:$16 sps:$4 sm:$0xff]   ;;  %v6875_v44 = vld [vmem:[#allocation9 + $0x9ac] ss:$16 sps:$4 sm:$0xff]  }
 0x315   :  { %4957 = vmatprep.subr.bf16.mxu1 %v6812_v40  ;;  %v6878_v40 = vld [vmem:[#allocation9 + $0xbac] ss:$16 sps:$4 sm:$0xff]  }
 0x317   :  { %4917 = vmatpush2.bf16.msra.mxu0 %v6807_v47  ;;  %v6873_v47 = vld [vmem:[#allocation9 + $0x9a8] ss:$16 sps:$4 sm:$0xff]  }
 0x318   :  { %4958 = vmatpush2.bf16.msra.mxu1 %v6810_v54  ;;  %4968 = vmatprep.subr.bf16.mxu0 %v6815_v58  ;;  %v6876_v54 = vld [vmem:[#allocation9 + $0xba8] ss:$16 sps:$4 sm:$0xff]   ;;  %v6881_v58 = vld [vmem:[#allocation9 + $0x98c] ss:$16 sps:$4 sm:$0xff]  }
 0x319   :  { %5009 = vmatprep.subr.bf16.mxu1 %v6818_v21  ;;  %v6884_v21 = vld [vmem:[#allocation9 + $0xb8c] ss:$16 sps:$4 sm:$0xff]  }
 0x31a   :  { %v4674_v51 = vpop.f32.mrf.mxu0  ;;  %4919 = vmatmul.mubr.bf16.vlgmr.msra.gmra.mxu0 %v7383_v6 }
 0x31b   :  { %v4675_v38 = vadd.f32 %v4674_v51, %v7453_v31  ;;  %v4715_v53 = vpop.f32.mrf.mxu1  ;;  %4960 = vmatmul.mubr.bf16.vlgmr.msra.gmra.mxu1 %v7385_v7  ;;  %4969 = vmatpush1.bf16.msra.mxu0 %v6813_v43  ;;  %v6830_v31 = vld [vmem:[#allocation9 + $0xaac] ss:$16 sps:$4 sm:$0xff]   ;;  %v6879_v43 = vld [vmem:[#allocation9 + $0x988] ss:$16 sps:$4 sm:$0xff]  }
 0x31c   :  { %5000 = vmatprep.mubr.bf16.mxu0 %v7387_v8  ;;  %5010 = vmatpush1.bf16.msra.mxu1 %v6816_v33  ;;  %v4676_v18 = vpop.f32.mrf.mxu0  ;;  %v6825_v8 = vld [vmem:[#allocation9 + $0x8a8] ss:$16 sps:$4 sm:$0xff]   ;;  %v6890_v51 = vld [vmem:[#allocation9 + $0xb6c] ss:$16 sps:$4 sm:$0xff]  }
 0x31d   :  { %v7463_v59 = vadd.f32 %v4715_v53, %v4675_v38  ;;  %5041 = vmatprep.mubr.bf16.mxu1 %v7389_v11  ;;  %v4677_v6 = vadd.f32 %v4676_v18, %v7457_v4  ;;  %v4717_v37 = vpop.f32.mrf.mxu1  ;;  %4970 = vmatprep.subr.bf16.mxu0 %v6821_v50  ;;  %v6836_v11 = vld [vmem:[#allocation9 + $0xa8c] ss:$16 sps:$4 sm:$0xff]   ;;  %v6831_v4 = vld [vmem:[#allocation9 + $0x888] ss:$16 sps:$4 sm:$0xff]  }
 0x31e   :  { %v4678_v26 = vpop.f32.mrf.mxu0  ;;  %5011 = vmatprep.subr.bf16.mxu1 %v6824_v52  ;;  %v6882_v33 = vld [vmem:[#allocation9 + $0xb88] ss:$16 sps:$4 sm:$0xff]   ;;  %v6887_v50 = vld [vmem:[#allocation9 + $0x96c] ss:$16 sps:$4 sm:$0xff]  }
 0x31f   :  { %v7467_v7 = vadd.f32 %v4717_v37, %v4677_v6  ;;  %v4719_v45 = vpop.f32.mrf.mxu1  ;;  %4971 = vmatpush1.bf16.msra.mxu0 %v6819_v55  ;;  %v6885_v52 = vld [vmem:[#allocation9 + $0x968] ss:$16 sps:$4 sm:$0xff]   ;;  %v6893_v53 = vld [vmem:[#allocation9 + $0x94c] ss:$16 sps:$4 sm:$0xff]  }
 0x320   :  { %5012 = vmatpush1.bf16.msra.mxu1 %v6822_v56  ;;  %v4679_v63 = vpop.f32.mrf.mxu0  ;;  %4972 = vmatprep.subr.bf16.mxu0 %v6827_v41  ;;  %v6888_v38 = vld [vmem:[#allocation9 + $0xb68] ss:$16 sps:$4 sm:$0xff]   ;;  %v6896_v55 = vld [vmem:[#allocation9 + $0xb4c] ss:$16 sps:$4 sm:$0xff]  }
 0x321   :  { %v4720_v62 = vpop.f32.mrf.mxu1  ;;  %5013 = vmatprep.subr.bf16.mxu1 %v6830_v31  ;;  %v6891_v18 = vld [vmem:[#allocation9 + $0x948] ss:$16 sps:$4 sm:$0xff]   ;;  %v6899_v41 = vld [vmem:[#allocation9 + $0x92c] ss:$16 sps:$4 sm:$0xff]  }
 0x322   :  { %v6894_v56 = vld [vmem:[#allocation9 + $0xb48] ss:$16 sps:$4 sm:$0xff]   ;;  %v6902_v6 = vld [vmem:[#allocation9 + $0xb2c] ss:$16 sps:$4 sm:$0xff]  }
 0x323   :  { %4973 = vmatpush1.bf16.msra.mxu0 %v6825_v8  ;;  %v6897_v37 = vld [vmem:[#allocation9 + $0x928] ss:$16 sps:$4 sm:$0xff]   ;;  %v6905_v26 = vld [vmem:[#allocation9 + $0x90c] ss:$16 sps:$4 sm:$0xff]  }
 0x324   :  { %5014 = vmatpush1.bf16.msra.mxu1 %v6828_v60  ;;  %4974 = vmatprep.subr.bf16.mxu0 %v6833_v61  ;;  %v6900_v31 = vld [vmem:[#allocation9 + $0xb28] ss:$16 sps:$4 sm:$0xff]   ;;  %v6908_v45 = vld [vmem:[#allocation9 + $0xb0c] ss:$16 sps:$4 sm:$0xff]  }
 0x325   :  { %5015 = vmatprep.subr.bf16.mxu1 %v6836_v11  ;;  %v6903_v8 = vld [vmem:[#allocation9 + $0x908] ss:$16 sps:$4 sm:$0xff]   ;;  %v6911_v60 = vld [vmem:[#allocation9 + $0xcec] ss:$16 sps:$4 sm:$0xff]  }
 0x326   :  { %v6906_v63 = vld [vmem:[#allocation9 + $0xb08] ss:$16 sps:$4 sm:$0xff]   ;;  %v6914_v61 = vld [vmem:[#allocation9 + $0xeec] ss:$16 sps:$4 sm:$0xff]  }
 0x327   :  { %4975 = vmatpush1.bf16.msra.mxu0 %v6831_v4  ;;  %v6909_v62 = vld [vmem:[#allocation9 + $0xce8] ss:$16 sps:$4 sm:$0xff]   ;;  %v6917_v4 = vld [vmem:[#allocation9 + $0xccc] ss:$16 sps:$4 sm:$0xff]  }
 0x328   :  { %5016 = vmatpush1.bf16.msra.mxu1 %v6834_v17  ;;  %4976 = vmatprep.subr.bf16.mxu0 %v6839_v0  ;;  %v6912_v11 = vld [vmem:[#allocation9 + $0xee8] ss:$16 sps:$4 sm:$0xff]   ;;  %v6920_v0 = vld [vmem:[#allocation9 + $0xecc] ss:$16 sps:$4 sm:$0xff]  }
 0x329   :  { %5017 = vmatprep.subr.bf16.mxu1 %v6842_v2 }
 0x32b   :  { %4977 = vmatpush1.bf16.msra.mxu0 %v6837_v49 }
 0x32c   :  { %5018 = vmatpush1.bf16.msra.mxu1 %v6840_v9  ;;  %4978 = vmatprep.subr.bf16.mxu0 %v6845_v10  ;;  %v6915_v9 = vld [vmem:[#allocation9 + $0xcc8] ss:$16 sps:$4 sm:$0xff]  }
 0x32d   :  { %5019 = vmatprep.subr.bf16.mxu1 %v6848_v12  ;;  %v6918_v12 = vld [vmem:[#allocation9 + $0xec8] ss:$16 sps:$4 sm:$0xff]  }
 0x32f   :  { %4979 = vmatpush1.bf16.msra.mxu0 %v6843_v13  ;;  %v6923_v13 = vld [vmem:[#allocation9 + $0xcac] ss:$16 sps:$4 sm:$0xff]  }
 0x330   :  { %5020 = vmatpush1.bf16.msra.mxu1 %v6846_v15  ;;  %4980 = vmatprep.subr.bf16.mxu0 %v6851_v16 }
 0x331   :  { %5021 = vmatprep.subr.bf16.mxu1 %v6854_v19  ;;  %v6921_v19 = vld [vmem:[#allocation9 + $0xca8] ss:$16 sps:$4 sm:$0xff]  }
 0x333   :  { %4981 = vmatpush1.bf16.msra.mxu0 %v6849_v20  ;;  %v6924_v20 = vld [vmem:[#allocation9 + $0xea8] ss:$16 sps:$4 sm:$0xff]  }
 0x334   :  { %5022 = vmatpush1.bf16.msra.mxu1 %v6852_v22  ;;  %4982 = vmatprep.subr.bf16.mxu0 %v6857_v23  ;;  %v6929_v22 = vld [vmem:[#allocation9 + $0xc8c] ss:$16 sps:$4 sm:$0xff]  }
 0x335   :  { %5023 = vmatprep.subr.bf16.mxu1 %v6860_v24  ;;  %v6932_v24 = vld [vmem:[#allocation9 + $0xe8c] ss:$16 sps:$4 sm:$0xff]  }
 0x337   :  { %4983 = vmatpush1.bf16.msra.mxu0 %v6855_v27  ;;  %v6927_v27 = vld [vmem:[#allocation9 + $0xc88] ss:$16 sps:$4 sm:$0xff]  }
 0x338   :  { %5024 = vmatpush1.bf16.msra.mxu1 %v6858_v28  ;;  %4984 = vmatprep.subr.bf16.mxu0 %v6863_v29  ;;  %v6935_v28 = vld [vmem:[#allocation9 + $0xc6c] ss:$16 sps:$4 sm:$0xff]  }
 0x339   :  { %5025 = vmatprep.subr.bf16.mxu1 %v6866_v30  ;;  %v6938_v29 = vld [vmem:[#allocation9 + $0xe6c] ss:$16 sps:$4 sm:$0xff]   ;;  %v6933_v30 = vld [vmem:[#allocation9 + $0xc68] ss:$16 sps:$4 sm:$0xff]  }
 0x33b   :  { %4985 = vmatpush2.bf16.msra.mxu0 %v6861_v3  ;;  %v6936_v3 = vld [vmem:[#allocation9 + $0xe68] ss:$16 sps:$4 sm:$0xff]  }
 0x33c   :  { %5026 = vmatpush2.bf16.msra.mxu1 %v6864_v32  ;;  %4986 = vmatprep.subr.bf16.mxu0 %v6869_v25  ;;  %v6941_v32 = vld [vmem:[#allocation9 + $0xc4c] ss:$16 sps:$4 sm:$0xff]  }
 0x33d   :  { %5027 = vmatprep.subr.bf16.mxu1 %v6872_v35  ;;  %v6944_v25 = vld [vmem:[#allocation9 + $0xe4c] ss:$16 sps:$4 sm:$0xff]   ;;  %v6939_v35 = vld [vmem:[#allocation9 + $0xc48] ss:$16 sps:$4 sm:$0xff]  }
 0x33f   :  { %4987 = vmatpush2.bf16.msra.mxu0 %v6867_v57  ;;  %v6942_v57 = vld [vmem:[#allocation9 + $0xe48] ss:$16 sps:$4 sm:$0xff]  }
 0x340   :  { %5028 = vmatpush2.bf16.msra.mxu1 %v6870_v36  ;;  %4988 = vmatprep.subr.bf16.mxu0 %v6875_v44  ;;  %v6947_v36 = vld [vmem:[#allocation9 + $0xc2c] ss:$16 sps:$4 sm:$0xff]  }
 0x341   :  { %5029 = vmatprep.subr.bf16.mxu1 %v6878_v40  ;;  %v6950_v44 = vld [vmem:[#allocation9 + $0xe2c] ss:$16 sps:$4 sm:$0xff]   ;;  %v6945_v40 = vld [vmem:[#allocation9 + $0xc28] ss:$16 sps:$4 sm:$0xff]  }
 0x343   :  { %4989 = vmatpush2.bf16.msra.mxu0 %v6873_v47  ;;  %v6948_v47 = vld [vmem:[#allocation9 + $0xe28] ss:$16 sps:$4 sm:$0xff]  }
 0x344   :  { %5030 = vmatpush2.bf16.msra.mxu1 %v6876_v54  ;;  %4990 = vmatprep.subr.bf16.mxu0 %v6881_v58  ;;  %v6953_v54 = vld [vmem:[#allocation9 + $0xc0c] ss:$16 sps:$4 sm:$0xff]  }
 0x345   :  { %5031 = vmatprep.subr.bf16.mxu1 %v6884_v21  ;;  %v6956_v58 = vld [vmem:[#allocation9 + $0xe0c] ss:$16 sps:$4 sm:$0xff]   ;;  %v6951_v21 = vld [vmem:[#allocation9 + $0xc08] ss:$16 sps:$4 sm:$0xff]  }
 0x347   :  { %4991 = vmatpush2.bf16.msra.mxu0 %v6879_v43  ;;  %v6954_v43 = vld [vmem:[#allocation9 + $0xe08] ss:$16 sps:$4 sm:$0xff]  }
 0x348   :  { %5032 = vmatpush2.bf16.msra.mxu1 %v6882_v33  ;;  %4992 = vmatprep.subr.bf16.mxu0 %v6887_v50  ;;  %v6959_v33 = vld [vmem:[#allocation9 + $0xdec] ss:$16 sps:$4 sm:$0xff]  }
 0x349   :  { %5033 = vmatprep.subr.bf16.mxu1 %v6890_v51  ;;  %v6962_v50 = vld [vmem:[#allocation9 + $0xfec] ss:$16 sps:$4 sm:$0xff]   ;;  %v6957_v51 = vld [vmem:[#allocation9 + $0xde8] ss:$16 sps:$4 sm:$0xff]  }
 0x34b   :  { %4993 = vmatpush2.bf16.msra.mxu0 %v6885_v52  ;;  %v6960_v52 = vld [vmem:[#allocation9 + $0xfe8] ss:$16 sps:$4 sm:$0xff]  }
 0x34c   :  { %5034 = vmatpush2.bf16.msra.mxu1 %v6888_v38  ;;  %4994 = vmatprep.subr.bf16.mxu0 %v6893_v53  ;;  %v6965_v38 = vld [vmem:[#allocation9 + $0xdcc] ss:$16 sps:$4 sm:$0xff]  }
 0x34d   :  { %5035 = vmatprep.subr.bf16.mxu1 %v6896_v55  ;;  %v6968_v53 = vld [vmem:[#allocation9 + $0xfcc] ss:$16 sps:$4 sm:$0xff]   ;;  %v6963_v55 = vld [vmem:[#allocation9 + $0xdc8] ss:$16 sps:$4 sm:$0xff]  }
 0x34f   :  { %4995 = vmatpush2.bf16.msra.mxu0 %v6891_v18  ;;  %v6966_v18 = vld [vmem:[#allocation9 + $0xfc8] ss:$16 sps:$4 sm:$0xff]  }
 0x350   :  { %5036 = vmatpush2.bf16.msra.mxu1 %v6894_v56  ;;  %4996 = vmatprep.subr.bf16.mxu0 %v6899_v41  ;;  %v6971_v56 = vld [vmem:[#allocation9 + $0xdac] ss:$16 sps:$4 sm:$0xff]  }
 0x351   :  { %5037 = vmatprep.subr.bf16.mxu1 %v6902_v6  ;;  %v6974_v41 = vld [vmem:[#allocation9 + $0xfac] ss:$16 sps:$4 sm:$0xff]   ;;  %v6969_v6 = vld [vmem:[#allocation9 + $0xda8] ss:$16 sps:$4 sm:$0xff]  }
 0x353   :  { %4997 = vmatpush2.bf16.msra.mxu0 %v6897_v37  ;;  %v6972_v37 = vld [vmem:[#allocation9 + $0xfa8] ss:$16 sps:$4 sm:$0xff]  }
 0x354   :  { %5038 = vmatpush2.bf16.msra.mxu1 %v6900_v31  ;;  %4998 = vmatprep.subr.bf16.mxu0 %v6905_v26  ;;  %v6977_v31 = vld [vmem:[#allocation9 + $0xd8c] ss:$16 sps:$4 sm:$0xff]  }
 0x355   :  { %5039 = vmatprep.subr.bf16.mxu1 %v6908_v45  ;;  %v6980_v26 = vld [vmem:[#allocation9 + $0xf8c] ss:$16 sps:$4 sm:$0xff]   ;;  %v6975_v45 = vld [vmem:[#allocation9 + $0xd88] ss:$16 sps:$4 sm:$0xff]  }
 0x357   :  { %4999 = vmatpush2.bf16.msra.mxu0 %v6903_v8  ;;  %v6978_v8 = vld [vmem:[#allocation9 + $0xf88] ss:$16 sps:$4 sm:$0xff]  }
 0x358   :  { %5040 = vmatpush2.bf16.msra.mxu1 %v6906_v63  ;;  %5050 = vmatprep.subr.bf16.mxu0 %v6911_v60  ;;  %v6983_v63 = vld [vmem:[#allocation9 + $0xd6c] ss:$16 sps:$4 sm:$0xff]  }
 0x359   :  { %5091 = vmatprep.subr.bf16.mxu1 %v6914_v61  ;;  %v6986_v60 = vld [vmem:[#allocation9 + $0xf6c] ss:$16 sps:$4 sm:$0xff]   ;;  %v6981_v61 = vld [vmem:[#allocation9 + $0xd68] ss:$16 sps:$4 sm:$0xff]  }
 0x35a   :  { %v4756_v17 = vpop.f32.mrf.mxu0  ;;  %5001 = vmatmul.mubr.bf16.vlgmr.msra.gmra.mxu0 %v7421_v1 }
 0x35b   :  { %v4757_v2 = vadd.f32 %v4756_v17, %v7463_v59  ;;  %v4797_v49 = vpop.f32.mrf.mxu1  ;;  %5042 = vmatmul.mubr.bf16.vlgmr.msra.gmra.mxu1 %v7423_v34  ;;  %5051 = vmatpush1.bf16.msra.mxu0 %v6909_v62  ;;  %v6926_v59 = vld [vmem:[#allocation9 + $0xeac] ss:$16 sps:$4 sm:$0xff]   ;;  %v6984_v62 = vld [vmem:[#allocation9 + $0xf68] ss:$16 sps:$4 sm:$0xff]  }
 0x35c   :  { %5082 = vmatprep.mubr.bf16.mxu0 %v7425_v5  ;;  %5092 = vmatpush1.bf16.msra.mxu1 %v6912_v11  ;;  %v7473_v10 = vpop.f32.mrf.mxu0  ;;  %v6989_v11 = vld [vmem:[#allocation9 + $0xd4c] ss:$16 sps:$4 sm:$0xff]   ;;  %v6987_v17 = vld [vmem:[#allocation9 + $0xd48] ss:$16 sps:$4 sm:$0xff]  }
 0x35d   :  { %v7475_v15 = vadd.f32 %v4797_v49, %v4757_v2  ;;  %5123 = vmatprep.mubr.bf16.mxu1 %v7428_v14  ;;  %v7478_v1 = vpop.f32.mrf.mxu1  ;;  %5052 = vmatprep.subr.bf16.mxu0 %v6917_v4  ;;  %v6930_v14 = vld [vmem:[#allocation9 + $0xe88] ss:$16 sps:$4 sm:$0xff]   ;;  %v6992_v4 = vld [vmem:[#allocation9 + $0xf4c] ss:$16 sps:$4 sm:$0xff]  }
 0x35e   :  { %v4760_v16 = vpop.f32.mrf.mxu0  ;;  %5093 = vmatprep.subr.bf16.mxu1 %v6920_v0  ;;  %v6990_v0 = vld [vmem:[#allocation9 + $0xf48] ss:$16 sps:$4 sm:$0xff]   ;;  %v6995_v2 = vld [vmem:[#allocation9 + $0xd2c] ss:$16 sps:$4 sm:$0xff]  }
 0x35f   :  { %v4801_v34 = vpop.f32.mrf.mxu1  ;;  %5053 = vmatpush1.bf16.msra.mxu0 %v6915_v9  ;;  %v6998_v49 = vld [vmem:[#allocation9 + $0xf2c] ss:$16 sps:$4 sm:$0xff]   ;;  %v4759_v9 = vadd.f32 %v7473_v10, %v7467_v7  ;;  %v7037_v7 = vld [vmem:[#allocation11] sm:$0xf] }
 0x360   :  { %5094 = vmatpush1.bf16.msra.mxu1 %v6918_v12  ;;  %v4761_v5 = vpop.f32.mrf.mxu0  ;;  %5054 = vmatprep.subr.bf16.mxu0 %v6923_v13  ;;  %v6993_v12 = vld [vmem:[#allocation9 + $0xd28] ss:$16 sps:$4 sm:$0xff]   ;;  %v7004_v16 = vld [vmem:[#allocation9 + $0xf0c] ss:$16 sps:$4 sm:$0xff]   ;;  %v1907_v10 = vrot.slane %v7037_v7, %v7313_v39 }
 0x361   :  { %v4802_v23 = vpop.f32.mrf.mxu1  ;;  %5095 = vmatprep.subr.bf16.mxu1 %v6926_v59  ;;  %v6996_v13 = vld [vmem:[#allocation9 + $0xf28] ss:$16 sps:$4 sm:$0xff]   ;;  %v7001_v59 = vld [vmem:[#allocation9 + $0xd0c] ss:$16 sps:$4 sm:$0xff]   ;;  %v4800_v34 = vadd.f32 %v7478_v1, %v4759_v9 }
 0x362   :  { %v7002_v5 = vld [vmem:[#allocation9 + $0xf08] ss:$16 sps:$4 sm:$0xff]   ;;  %v7006_v23 = vld [vmem:[#allocation12 + $0x38] sm:$0xff]   ;;  %v7009_v39 = vld [vmem:[#allocation12 + $0x68] sm:$0xff]  }
 0x363   :  { %5055 = vmatpush1.bf16.msra.mxu0 %v6921_v19  ;;  %v6999_v19 = vld [vmem:[#allocation9 + $0xd08] ss:$16 sps:$4 sm:$0xff]   ;;  %v7033_v9 = vld [vmem:[#allocation12 + $0xc8] sm:$0xff]  }
 0x364   :  { %5096 = vmatpush1.bf16.msra.mxu1 %v6924_v20  ;;  %5056 = vmatprep.subr.bf16.mxu0 %v6929_v22  ;;  %v7005_v20 = vld [vmem:[#allocation12 + $0x78] sm:$0xff]   ;;  %v5133_v22 = vmax.f32 %v4800_v34, 0.0  ;;  %v7035_v34 = vld [vmem:[#allocation12 + $0xc0] sm:$0xff]  }
 0x365   :  { %5097 = vmatprep.subr.bf16.mxu1 %v6932_v24  ;;  %v7007_v24 = vld [vmem:[#allocation12 + $0x70] sm:$0xff]  }
 0x367   :  { %5057 = vmatpush1.bf16.msra.mxu0 %v6927_v27  ;;  %v1911_v27 = vrot.slane %v7037_v7, %v7321_v42 }
 0x368   :  { %5098 = vmatpush1.bf16.msra.mxu1 %v6930_v14  ;;  %5058 = vmatprep.subr.bf16.mxu0 %v6935_v28  ;;  %v5137_v14 = vpack.c.bf16 %v5133_v22, %v5133_v22 }
 0x369   :  { %5099 = vmatprep.subr.bf16.mxu1 %v6938_v29 }
 0x36b   :  { %5059 = vmatpush1.bf16.msra.mxu0 %v6933_v30  ;;  %v7008_v30 = vld [vmem:[#allocation12 + $0x30] sm:$0xff]  }
 0x36c   :  { %5100 = vmatpush1.bf16.msra.mxu1 %v6936_v3  ;;  %5060 = vmatprep.subr.bf16.mxu0 %v6941_v32 }
 0x36d   :  { %5101 = vmatprep.subr.bf16.mxu1 %v6944_v25 }
 0x36f   :  { %5061 = vmatpush1.bf16.msra.mxu0 %v6939_v35 }
 0x370   :  { %5102 = vmatpush1.bf16.msra.mxu1 %v6942_v57  ;;  %5062 = vmatprep.subr.bf16.mxu0 %v6947_v36 }
 0x371   :  { %5103 = vmatprep.subr.bf16.mxu1 %v6950_v44  ;;  %v7010_v44 = vld [vmem:[#allocation12 + $0x28] sm:$0xff]  }
 0x373   :  { %5063 = vmatpush1.bf16.msra.mxu0 %v6945_v40 }
 0x374   :  { %5104 = vmatpush1.bf16.msra.mxu1 %v6948_v47  ;;  %5064 = vmatprep.subr.bf16.mxu0 %v6953_v54  ;;  %v7021_v54 = vld [vmem:[#allocation12 + $0xf8] sm:$0xff]  }
 0x375   :  { %5105 = vmatprep.subr.bf16.mxu1 %v6956_v58  ;;  %v7023_v58 = vld [vmem:[#allocation12 + $0xf0] sm:$0xff]  }
 0x377   :  { %5065 = vmatpush1.bf16.msra.mxu0 %v6951_v21  ;;  %v7012_v21 = vld [vmem:[#allocation12 + $0x20] sm:$0xff]  }
 0x378   :  { %5106 = vmatpush1.bf16.msra.mxu1 %v6954_v43  ;;  %5066 = vmatprep.subr.bf16.mxu0 %v6959_v33  ;;  %v7013_v43 = vld [vmem:[#allocation12 + $0x58] sm:$0xff]   ;;  %v7024_v33 = vld [vmem:[#allocation12 + $0xb0] sm:$0xff]  }
 0x379   :  { %5107 = vmatprep.subr.bf16.mxu1 %v6962_v50  ;;  %v7025_v50 = vld [vmem:[#allocation12 + $0xe8] sm:$0xff]  }
 0x37b   :  { %5067 = vmatpush2.bf16.msra.mxu0 %v6957_v51  ;;  %v7014_v51 = vld [vmem:[#allocation12 + $0x18] sm:$0xff]  }
 0x37c   :  { %5108 = vmatpush2.bf16.msra.mxu1 %v6960_v52  ;;  %5068 = vmatprep.subr.bf16.mxu0 %v6965_v38  ;;  %v7015_v52 = vld [vmem:[#allocation12 + $0x50] sm:$0xff]   ;;  %v7026_v38 = vld [vmem:[#allocation12 + $0xa8] sm:$0xff]  }
 0x37d   :  { %5109 = vmatprep.subr.bf16.mxu1 %v6968_v53  ;;  %v7027_v53 = vld [vmem:[#allocation12 + $0xe0] sm:$0xff]  }
 0x37f   :  { %5069 = vmatpush2.bf16.msra.mxu0 %v6963_v55  ;;  %v7016_v55 = vld [vmem:[#allocation12 + $0x10] sm:$0xff]  }
 0x380   :  { %5110 = vmatpush2.bf16.msra.mxu1 %v6966_v18  ;;  %5070 = vmatprep.subr.bf16.mxu0 %v6971_v56  ;;  %v7017_v18 = vld [vmem:[#allocation12 + $0x48] sm:$0xff]   ;;  %v7028_v56 = vld [vmem:[#allocation12 + $0xa0] sm:$0xff]  }
 0x381   :  { %5111 = vmatprep.subr.bf16.mxu1 %v6974_v41  ;;  %v7029_v41 = vld [vmem:[#allocation12 + $0xd8] sm:$0xff]  }
 0x383   :  { %5071 = vmatpush2.bf16.msra.mxu0 %v6969_v6  ;;  %v7018_v6 = vld [vmem:[#allocation12 + $0x8] sm:$0xff]  }
 0x384   :  { %5112 = vmatpush2.bf16.msra.mxu1 %v6972_v37  ;;  %5072 = vmatprep.subr.bf16.mxu0 %v6977_v31  ;;  %v7019_v37 = vld [vmem:[#allocation12 + $0x40] sm:$0xff]   ;;  %v7030_v31 = vld [vmem:[#allocation12 + $0x98] sm:$0xff]  }
 0x385   :  { %5113 = vmatprep.subr.bf16.mxu1 %v6980_v26  ;;  %v7020_v26 = vld [vmem:[#allocation12] sm:$0xff]  }
 0x387   :  { %5073 = vmatpush2.bf16.msra.mxu0 %v6975_v45  ;;  %v5132_v45 = vmax.f32 %v7475_v15, 0.0 }
 0x388   :  { %5114 = vmatpush2.bf16.msra.mxu1 %v6978_v8  ;;  %5074 = vmatprep.subr.bf16.mxu0 %v6983_v63 }
 0x389   :  { %5115 = vmatprep.subr.bf16.mxu1 %v6986_v60  ;;  %v5136_v8 = vpack.c.bf16 %v5132_v45, %v5132_v45  ;;  %v7031_v60 = vld [vmem:[#allocation12 + $0xd0] sm:$0xff]  }
 0x38b   :  { %5075 = vmatpush2.bf16.msra.mxu0 %v6981_v61 }
 0x38c   :  { %5116 = vmatpush2.bf16.msra.mxu1 %v6984_v62  ;;  %5076 = vmatprep.subr.bf16.mxu0 %v6989_v11  ;;  %v7032_v11 = vld [vmem:[#allocation12 + $0x90] sm:$0xff]  }
 0x38d   :  { %5117 = vmatprep.subr.bf16.mxu1 %v6992_v4 }
 0x38f   :  { %5077 = vmatpush2.bf16.msra.mxu0 %v6987_v17 }
 0x390   :  { %5118 = vmatpush2.bf16.msra.mxu1 %v6990_v0  ;;  %5078 = vmatprep.subr.bf16.mxu0 %v6995_v2 }
 0x391   :  { %5119 = vmatprep.subr.bf16.mxu1 %v6998_v49 }
 0x393   :  { %5079 = vmatpush2.bf16.msra.mxu0 %v6993_v12 }
 0x394   :  { %5120 = vmatpush2.bf16.msra.mxu1 %v6996_v13  ;;  %5080 = vmatprep.subr.bf16.mxu0 %v7001_v59  ;;  %v7034_v13 = vld [vmem:[#allocation12 + $0x88] sm:$0xff]  }
 0x395   :  { %5121 = vmatprep.subr.bf16.mxu1 %v7004_v16 }
 0x397   :  { %5081 = vmatpush2.bf16.msra.mxu0 %v6999_v19  ;;  %v7036_v19 = vld [vmem:[#allocation12 + $0x80] sm:$0xff]  }
 0x398   :  { %5122 = vmatpush2.bf16.msra.mxu1 %v7002_v5  ;;  %6176 = vmatprep.subr.bf16.mxu0 %v7005_v20 }
 0x399   :  { %6198 = vmatprep.subr.bf16.mxu1 %v7021_v54 }
 0x39a   :  { %v4838_v1 = vpop.f32.mrf.mxu0  ;;  %5083 = vmatmul.mubr.bf16.vlgmr.msra.gmra.mxu0 %v7436_v46  ;;  %v7011_v46 = vld [vmem:[#allocation12 + $0x60] sm:$0xff]  }
 0x39b   :  { %v4839_v28 = vadd.f32 %v4838_v1, %v1907_v10  ;;  %v4879_v29 = vpop.f32.mrf.mxu1  ;;  %5124 = vmatmul.mubr.bf16.vlgmr.msra.gmra.mxu1 %v7438_v48  ;;  %6177 = vmatpush3.bf16.msra.mxu0 %v7006_v23  ;;  %v7022_v48 = vld [vmem:[#allocation12 + $0xb8] sm:$0xff]  }
 0x39c   :  { %5435 = vmatprep.mubr.bf16.mxu0 %v5137_v14  ;;  %v4840_v3 = vpop.f32.mrf.mxu0  ;;  %6178 = vmatprep.subr.bf16.mxu0 %v7007_v24 }
 0x39d   :  { %v4880_v32 = vadd.f32 %v4879_v29, %v4839_v28  ;;  %v4841_v25 = vadd.f32 %v4840_v3, %v1911_v27  ;;  %v4881_v35 = vpop.f32.mrf.mxu1  ;;  %6199 = vmatpush3.bf16.msra.mxu1 %v7022_v48 }
 0x39e   :  { %v4842_v57 = vpop.f32.mrf.mxu0  ;;  %6200 = vmatprep.subr.bf16.mxu1 %v7023_v58 }
 0x39f   :  { %v4882_v36 = vadd.f32 %v4881_v35, %v4841_v25  ;;  %v4883_v42 = vpop.f32.mrf.mxu1  ;;  %6179 = vmatpush3.bf16.msra.mxu0 %v7008_v30 }
 0x3a0   :  { %v4843_v40 = vpop.f32.mrf.mxu0  ;;  %6180 = vmatprep.subr.bf16.mxu0 %v7009_v39 }
 0x3a1   :  { %v4884_v47 = vpop.f32.mrf.mxu1  ;;  %6201 = vmatpush3.bf16.msra.mxu1 %v7024_v33 }
 0x3a2   :  { %6202 = vmatprep.subr.bf16.mxu1 %v7025_v50 }
 0x3a3   :  { %6181 = vmatpush3.bf16.msra.mxu0 %v7010_v44 }
 0x3a4   :  { %6182 = vmatprep.subr.bf16.mxu0 %v7011_v46 }
 0x3a5   :  { %6203 = vmatpush3.bf16.msra.mxu1 %v7026_v38 }
 0x3a6   :  { %6204 = vmatprep.subr.bf16.mxu1 %v7027_v53 }
 0x3a7   :  { %6183 = vmatpush3.bf16.msra.mxu0 %v7012_v21 }
 0x3a8   :  { %6184 = vmatprep.subr.bf16.mxu0 %v7013_v43 }
 0x3a9   :  { %6205 = vmatpush3.bf16.msra.mxu1 %v7028_v56 }
 0x3aa   :  { %6206 = vmatprep.subr.bf16.mxu1 %v7029_v41 }
 0x3ab   :  { %6185 = vmatpush3.bf16.msra.mxu0 %v7014_v51 }
 0x3ac   :  { %6186 = vmatprep.subr.bf16.mxu0 %v7015_v52  ;;  %v6143_v52 = vld [vmem:[#allocation14] ss:$0 sm:$0xff] }
 0x3ad   :  { %6207 = vmatpush3.bf16.msra.mxu1 %v7030_v31 }
 0x3ae   :  { %6208 = vmatprep.subr.bf16.mxu1 %v7031_v60 }
 0x3af   :  { %6187 = vmatpush3.bf16.msra.mxu0 %v7016_v55 }
 0x3b0   :  { %6188 = vmatprep.subr.bf16.mxu0 %v7017_v18 }
 0x3b1   :  { %6209 = vmatpush3.bf16.msra.mxu1 %v7032_v11 }
 0x3b2   :  { %6210 = vmatprep.subr.bf16.mxu1 %v7033_v9 }
 0x3b3   :  { %6189 = vmatpush3.bf16.msra.mxu0 %v7018_v6 }
 0x3b4   :  { %6190 = vmatprep.subr.bf16.mxu0 %v7019_v37 }
 0x3b5   :  { %6211 = vmatpush3.bf16.msra.mxu1 %v7034_v13 }
 0x3b6   :  { %6212 = vmatprep.subr.bf16.mxu1 %v7035_v34 }
 0x3b7   :  { %6191 = vmatpush3.bf16.msra.mxu0 %v7020_v26 }
 0x3b9   :  { %6213 = vmatpush3.bf16.msra.mxu1 %v7036_v19 }
 0x3ba   :  { %5436 = vmatmul.mubr.bf16.vlgmr.msra.gmra.mxu0 %v5136_v8 }
 0x3da   :  { %v4920_v63 = vpop.f32.mrf.mxu0 }
 0x3db   :  { %v4921_v61 = vadd.f32 %v4920_v63, %v4880_v32  ;;  %v4961_v62 = vpop.f32.mrf.mxu1 }
 0x3dc   :  { %v4922_v4 = vpop.f32.mrf.mxu0 }
 0x3dd   :  { %v4962_v17 = vadd.f32 %v4961_v62, %v4921_v61  ;;  %v4923_v0 = vadd.f32 %v4922_v4, %v4882_v36  ;;  %v4963_v2 = vpop.f32.mrf.mxu1 }
 0x3de   :  { %v4924_v49 = vpop.f32.mrf.mxu0 }
 0x3df   :  { %v4964_v12 = vadd.f32 %v4963_v2, %v4923_v0  ;;  %v4965_v15 = vpop.f32.mrf.mxu1 }
 0x3e0   :  { %v4925_v59 = vpop.f32.mrf.mxu0 }
 0x3e1   :  { %v4966_v16 = vpop.f32.mrf.mxu1 }
 0x41a   :  { %v5002_v5 = vpop.f32.mrf.mxu0 }
 0x41b   :  { %v5003_v20 = vadd.f32 %v5002_v5, %v4962_v17  ;;  %v5043_v22 = vpop.f32.mrf.mxu1 }
 0x41c   :  { %v5004_v7 = vpop.f32.mrf.mxu0 }
 0x41d   :  { %v5044_v10 = vadd.f32 %v5043_v22, %v5003_v20  ;;  %v5045_v23 = vpop.f32.mrf.mxu1  ;;  %v5005_v28 = vadd.f32 %v5004_v7, %v4964_v12 }
 0x41e   :  { %v5006_v24 = vpop.f32.mrf.mxu0 }
 0x41f   :  { %v5047_v27 = vpop.f32.mrf.mxu1  ;;  %v5046_v30 = vadd.f32 %v5045_v23, %v5005_v28 }
 0x420   :  { %v5007_v14 = vpop.f32.mrf.mxu0 }
 0x421   :  { %v5048_v1 = vpop.f32.mrf.mxu1 }
 0x45a   :  { %v5084_v29 = vpop.f32.mrf.mxu0 }
 0x45b   :  { %v5085_v3 = vadd.f32 %v5084_v29, %v5044_v10  ;;  %v5125_v39 = vpop.f32.mrf.mxu1 }
 0x45c   :  { %v5086_v32 = vpop.f32.mrf.mxu0 }
 0x45d   :  { %v5126_v25 = vadd.f32 %v5125_v39, %v5085_v3  ;;  %v5087_v35 = vadd.f32 %v5086_v32, %v5046_v30  ;;  %v5127_v57 = vpop.f32.mrf.mxu1 }
 0x45e   :  { %v5088_v36 = vpop.f32.mrf.mxu0 }
 0x45f   :  { %v5128_v42 = vadd.f32 %v5127_v57, %v5087_v35  ;;  %v5129_v44 = vpop.f32.mrf.mxu1  ;;  %v5134_v40 = vmax.f32 %v5126_v25, 0.0 }
 0x460   :  { %v5089_v46 = vpop.f32.mrf.mxu0 }
 0x461   :  { %v5135_v47 = vmax.f32 %v5128_v42, 0.0  ;;  %v5130_v54 = vpop.f32.mrf.mxu1  ;;  %v5138_v58 = vpack.c.bf16 %v5134_v40, %v5134_v40 }
 0x463   :  { %v5139_v48 = vpack.c.bf16 %v5135_v47, %v5135_v47 }
 0x465   :  { %5475 = vmatprep.mubr.bf16.mxu1 %v5139_v48 }
 0x466   :  { %5476 = vmatmul.mubr.bf16.vlgmr.msra.gmra.mxu1 %v5138_v58 }
 0x47a   :  { %v6192_v21 = vpop.f32.mrf.mxu0 }
 0x47c   :  { %v6193_v43 = vpop.f32.mrf.mxu0 }
 0x47d   :  { %v6194_v33 = vadd.f32 %v6193_v43, %v6192_v21 }
 0x47e   :  { %v6195_v50 = vpop.f32.mrf.mxu0 }
 0x47f   :  { %v5438_v55 = vadd.f32 %v6194_v33, %v6143_v52 }
 0x480   :  { %v6196_v51 = vpop.f32.mrf.mxu0 }
 0x526   :  { %v6214_v38 = vpop.f32.mrf.mxu1 }
 0x528   :  { %v6215_v53 = vpop.f32.mrf.mxu1 }
 0x529   :  { %v6216_v18 = vadd.f32 %v6215_v53, %v6214_v38 }
 0x52a   :  { %v6217_v56 = vpop.f32.mrf.mxu1 }
 0x52b   :  { %v5478_v41 = vadd.f32 %v6216_v18, %v5438_v55 }
 0x52c   :  { %v6218_v6 = vpop.f32.mrf.mxu1 }
 0x52d   :  { %v5483_v37 = vpack.c.bf16 %v5478_v41, %v5478_v41 }
 0x52f   :  { %5484 = vst [vmem:[#allocation15] sm:$0xf] %v5483_v37 }
 0x530   :  { %7189 = shalt.err (!%p7186_p11)
}
 0x531   :  { %5494 = dma.vmem_to_hbm [thread:$0]  %s5492_s6, 64, %s7498_s7, [#allocation5]  }
 0x532   :  { %7206 = dma.done.wait [#allocation5], 64  }
 0x533   :  { %7207 = vsyncadd [#allocation5], 4294967232 }
 0x534   :  { %5498 = vsyncpa [#allocation4], 1 }
 0x535   :  { %5499 = vsyncpa [#allocation7], 1 }
 0x536   :  { %5500 = vsyncpa [#allocation10], 1 }
 0x537   :  { %5501 = vsyncpa [#allocation13], 1 }
 0x538   :  { %5502 = vsyncpa [#allocation5], 1 }

</bundles_post_ra>
